<compile_context>
chip_gen: v6e
topology: v6e:2x2x1
jax: 0.10.0
libtpu: 0.0.40
codegen_flags: <defaults>
</compile_context>

<pallas_src>
import numpy as np
import jax
import jax.numpy as jnp
from jax import lax
from jax.experimental import pallas as pl
from jax.experimental.pallas import tpu as pltpu


# --------------------------------------------------------------------------
# Kernel: fused fwd+bwd LSTM recurrence over a streamed, bf16 gate tensor.
# Grid = (batch blocks [parallel], time chunks [arbitrary, innermost]).
# --------------------------------------------------------------------------
def _bilstm_kernel(xgf_ref, xgb_ref, len_ref, whhf_ref, whhb_ref, out_ref,
                   h_f, c_f, m_f, h_b, c_b, m_b):
    """xgf_ref: (tile_t, Bt, 4Hp) bf16  forward gate pre-activations, chunk c
       xgb_ref: (tile_t, Bt, 4Hp) bf16  backward gate pre-activations, mirror
                                        chunk (n_chunks-1-c); iterated reversed
       len_ref: (Bt, 1) i32             per-row valid lengths
       whh*_ref:(Hp, 4Hp) f32           recurrent weights (loop invariant)
       out_ref: (2, Bt, Hp) f32         [max_fwd ; max_bwd] over valid steps
       h/c/m_*: (Bt, Hp) f32 scratch    persistent state across time chunks
    """
    tile_t = xgf_ref.shape[0]
    Hp = h_f.shape[1]
    chunk = pl.program_id(1)
    n_chunks = pl.num_programs(1)
    Lp = n_chunks * tile_t

    @pl.when(chunk == 0)
    def _init():
        for r in (h_f, c_f, h_b, c_b):
            r[...] = jnp.zeros_like(r)
        m_f[...] = jnp.full_like(m_f, -jnp.inf)
        m_b[...] = jnp.full_like(m_b, -jnp.inf)

    lens = len_ref[...]                     # (Bt, 1) int32, hoisted
    whh_fwd = whhf_ref[...]                 # loop-invariant, stays resident
    whh_bwd = whhb_ref[...]

    def sigmoid(z):                         # single EUP tanh instead of exp+recip
        return 0.5 * jnp.tanh(0.5 * z) + 0.5

    # TODO(synk): on v6e/v7x the gate nonlinearities could run in bf16 to
    # relieve the single EUP slot (skipped here to keep one code path).
    def dir_step(xrow, h_ref, c_ref, m_ref, whh, valid):
        h_prev = h_ref[...]
        c_prev = c_ref[...]
        gates = xrow.astype(jnp.float32) + jnp.dot(
            h_prev, whh,
            preferred_element_type=jnp.float32,
            precision=lax.Precision.HIGHEST)          # tiny matmul, exact passes
        i = sigmoid(gates[:, 0 * Hp:1 * Hp])
        f = sigmoid(gates[:, 1 * Hp:2 * Hp])
        g = jnp.tanh(gates[:, 2 * Hp:3 * Hp])
        o = sigmoid(gates[:, 3 * Hp:4 * Hp])
        c_new = f * c_prev + i * g
        h_new = o * jnp.tanh(c_new)
        h_ref[...] = jnp.where(valid, h_new, h_prev)
        c_ref[...] = jnp.where(valid, c_new, c_prev)
        m_ref[...] = jnp.where(valid, jnp.maximum(m_ref[...], h_new), m_ref[...])

    base = chunk * tile_t

    @pl.loop(0, tile_t)
    def _steps(i):
        tt = base + i                              # global step index (both chains)
        valid_fwd = tt < lens                      # fwd processes time tt
        valid_bwd = (Lp - 1 - tt) < lens           # bwd processes time Lp-1-tt
        dir_step(xgf_ref[i], h_f, c_f, m_f, whh_fwd, valid_fwd)
        dir_step(xgb_ref[tile_t - 1 - i], h_b, c_b, m_b, whh_bwd, valid_bwd)

    @pl.when(chunk == n_chunks - 1)
    def _finalize():
        has_tokens = lens > 0                      # guard seq_length == 0 rows
        out_ref[0] = jnp.where(has_tokens, m_f[...], 0.0)
        out_ref[1] = jnp.where(has_tokens, m_b[...], 0.0)


# --------------------------------------------------------------------------
# Host-side helpers
# --------------------------------------------------------------------------
def _device_budget():
    try:
        kind = jax.devices()[0].device_kind.lower()
    except Exception:
        kind = ""
    is_v7 = "v7" in kind
    if "v2" in kind or "v3" in kind:
        phys = 16 * (1 << 20)
    elif is_v7:
        phys = 64 * (1 << 20)        # v7x: 64 MiB VMEM per TensorCore
    else:
        phys = 128 * (1 << 20)       # v4/v5e/v6e
    vmem_limit = int(phys * 0.8)     # explicit limit, leave headroom
    tile_budget = int(phys * 0.5)    # budget used for tile sizing
    return is_v7, vmem_limit, tile_budget


def _select_tiles(B, L, Hp, tile_budget, is_v7):
    # Batch tile: fill the MXU M dimension (>=128, ideally 256) when possible.
    tile_b = B
    for cand in (256, 128, 64, 32, 16, 8):
        if B % cand == 0:
            tile_b = cand
            break
    # v7x: prefer >=2 batch blocks so the "parallel" axis shards across both TCs.
    if is_v7 and B // tile_b < 2:
        for cand in (256, 128, 64, 32, 16, 8):
            if B % cand == 0 and B // cand >= 2:
                tile_b = cand
                break
    # Time chunk: as large as fits the VMEM budget (bf16 gate stream for both
    # directions, double-buffered by the pipeline), capped for sane granularity.
    fixed = 2 * (Hp * 4 * Hp * 4) * 2        # whh_f/whh_b f32, x2 buffering slack
    fixed += 6 * tile_b * Hp * 4             # h/c/m scratch (both directions)
    fixed += 2 * (2 * tile_b * Hp * 4)       # output block, double buffered
    per_t = 2 * 2 * (tile_b * 4 * Hp * 2)    # fwd+bwd chunk rows, x2 buffers, bf16
    avail = max(tile_budget - fixed, per_t)
    tile_t = int(max(1, min(L, avail // per_t, 512)))
    return tile_b, tile_t


def _pad_gate_cols(w, H, Hp):
    """(..., 4H) -> (..., 4Hp): zero-pad each of the 4 gate blocks to Hp."""
    if Hp == H:
        return w
    lead = w.shape[:-1]
    w4 = w.reshape(lead + (4, H))
    pad = [(0, 0)] * (len(lead) + 1) + [(0, Hp - H)]
    return jnp.pad(w4, pad).reshape(lead + (4 * Hp,))


def _pad_rows(w, H, Hp):
    if Hp == H:
        return w
    return jnp.pad(w, ((0, Hp - H), (0, 0)))


# --------------------------------------------------------------------------
# Public wrapper
# --------------------------------------------------------------------------
def bi_lstm_sent_encoder(embeds, seq_lengths, params, max_seq_len=None):
    """embeds: (B, T, D) f32; seq_lengths: (B,) int; returns (B, 2*H) f32."""
    B, T, D = embeds.shape
    H = params["wih_f"].shape[1] // 4
    # Pad hidden size to a lane tile so gate slices / states / output are
    # 128-aligned (padded channels stay exactly zero and never feed real ones).
    Hp = max(128, -(-H // 128) * 128)

    x = embeds.astype(jnp.float32)

    # Static bound on the recurrence length (works under jit via max_seq_len).
    if max_seq_len is not None:
        L = int(max_seq_len)
    else:
        try:
            L = int(np.max(np.asarray(seq_lengths)))
        except Exception:          # traced lengths under jit -> padded length
            L = T
    L = max(1, min(L, T))

    is_v7, vmem_limit, tile_budget = _device_budget()
    tile_b, tile_t = _select_tiles(B, L, Hp, tile_budget, is_v7)
    n_chunks = -(-L // tile_t)
    Lp = n_chunks * tile_t

    lens = jnp.asarray(seq_lengths, jnp.int32).reshape(B, 1)

    # ---- parameters: per-gate pad H -> Hp; pack both directions column-wise --
    wih = jnp.concatenate(
        [_pad_gate_cols(params["wih_f"].astype(jnp.float32), H, Hp),
         _pad_gate_cols(params["wih_b"].astype(jnp.float32), H, Hp)],
        axis=-1)                                                   # (D, 8Hp)
    bias = jnp.concatenate(
        [_pad_gate_cols(params["b_f"].astype(jnp.float32), H, Hp),
         _pad_gate_cols(params["b_b"].astype(jnp.float32), H, Hp)],
        axis=-1)                                                   # (1, 8Hp)
    whh_f = _pad_rows(_pad_gate_cols(params["whh_f"].astype(jnp.float32), H, Hp),
                      H, Hp)                                       # (Hp, 4Hp)
    whh_b = _pad_rows(_pad_gate_cols(params["whh_b"].astype(jnp.float32), H, Hp),
                      H, Hp)

    # ---- single hoisted input projection for BOTH directions (one matmul),
    #      time-major, bias folded in, stored in bf16 for streaming -----------
    xs = x[:, :L, :]
    if Lp > L:
        xs = jnp.pad(xs, ((0, 0), (0, Lp - L), (0, 0)))            # (B, Lp, D)
    xg = (jnp.einsum('btd,dg->tbg', xs, wih) + bias).astype(jnp.bfloat16)
    # xg: (Lp, B, 8Hp) bf16, columns = [fwd 4Hp | bwd 4Hp]

    grid = (B // tile_b, n_chunks)

    out = pl.pallas_call(
        _bilstm_kernel,
        out_shape=jax.ShapeDtypeStruct((2, B, Hp), jnp.float32),
        grid_spec=pltpu.PrefetchScalarGridSpec(
            num_scalar_prefetch=0,
            grid=grid,
            in_specs=[
                # forward gate stream: time chunk c, column block 0
                pl.BlockSpec((tile_t, tile_b, 4 * Hp), lambda b, c: (c, b, 0)),
                # backward gate stream: mirrored time chunk, column block 1
                pl.BlockSpec((tile_t, tile_b, 4 * Hp),
                             lambda b, c: (n_chunks - 1 - c, b, 1)),
                pl.BlockSpec((tile_b, 1), lambda b, c: (b, 0)),       # lengths
                pl.BlockSpec((Hp, 4 * Hp), lambda b, c: (0, 0)),      # whh fwd (resident)
                pl.BlockSpec((Hp, 4 * Hp), lambda b, c: (0, 0)),      # whh bwd (resident)
            ],
            out_specs=pl.BlockSpec((2, tile_b, Hp), lambda b, c: (0, b, 0)),
            scratch_shapes=[pltpu.VMEM((tile_b, Hp), jnp.float32)] * 6,
        ),
        compiler_params=pltpu.CompilerParams(
            dimension_semantics=("parallel", "arbitrary"),
            vmem_limit_bytes=vmem_limit),
    )(xg, xg, lens, whh_f, whh_b)

    # (2, B, Hp) -> (B, 2H): drop hidden padding, concat [max_fwd | max_bwd]
    return jnp.concatenate([out[0, :, :H], out[1, :, :H]], axis=-1)


# --------------------------------------------------------------------------
# Parameter init (mirrors nn.LSTM shapes, transposed for x @ W) and reference
# --------------------------------------------------------------------------
def init_params(key, lstm_input_dim, lstm_out_dim):
    H = lstm_out_dim // 2
    bound = 1.0 / np.sqrt(H)
    ks = jax.random.split(key, 8)

    def u(k, shape):
        return jax.random.uniform(k, shape, jnp.float32, -bound, bound)

    return dict(
        wih_f=u(ks[0], (lstm_input_dim, 4 * H)),
        whh_f=u(ks[1], (H, 4 * H)),
        b_f=u(ks[2], (1, 4 * H)) + u(ks[3], (1, 4 * H)),   # b_ih + b_hh
        wih_b=u(ks[4], (lstm_input_dim, 4 * H)),
        whh_b=u(ks[5], (H, 4 * H)),
        b_b=u(ks[6], (1, 4 * H)) + u(ks[7], (1, 4 * H)),
    )


def _reference(embeds, seq_lengths, params):
    """Pure NumPy reference (same semantics as the PyTorch forward)."""
    x = np.asarray(embeds, np.float64)
    lens = np.asarray(seq_lengths)
    B, T, D = x.shape
    H = params["wih_f"].shape[1] // 4
    sig = lambda z: 1.0 / (1.0 + np.exp(-z))
    out = np.zeros((B, 2 * H))

    for b in range(B):
        L = int(lens[b])
        for direction, (wk, uk, bk), time_iter, off in (
            ("f", ("wih_f", "whh_f", "b_f"), range(L), 0),
            ("b", ("wih_b", "whh_b", "b_b"), range(L - 1, -1, -1), H),
        ):
            W = np.asarray(params[wk], np.float64)
            U = np.asarray(params[uk], np.float64)
            bb = np.asarray(params[bk], np.float64)[0]
            h = np.zeros(H); c = np.zeros(H)
            hs = []
            for t in time_iter:
                g = x[b, t] @ W + h @ U + bb
                i = sig(g[:H]); f = sig(g[H:2 * H])
                gg = np.tanh(g[2 * H:3 * H]); o = sig(g[3 * H:])
                c = f * c + i * gg
                h = o * np.tanh(c)
                hs.append(h)
            out[b, off:off + H] = np.max(np.stack(hs), axis=0)
    return out


if __name__ == "__main__":
    key = jax.random.PRNGKey(0)
    B, T, lstm_input_dim, lstm_out_dim = 2, 8, 16, 32

    k_x, k_p = jax.random.split(key)
    embeds = jax.random.normal(k_x, (B, T, lstm_input_dim), jnp.float32)
    seq_lengths = jnp.array([5, 8], dtype=jnp.int32)   # variable lengths (<= T)
    params = init_params(k_p, lstm_input_dim, lstm_out_dim)

    out = bi_lstm_sent_encoder(embeds, seq_lengths, params)
    out = jax.block_until_ready(out)

    ref = _reference(np.asarray(embeds), np.asarray(seq_lengths),
                     {k: np.asarray(v) for k, v in params.items()})
    assert out.shape == (B, lstm_out_dim)
    # bf16 gate stream + bf16 MXU pass on the input projection -> loose tolerance
    err = float(np.abs(np.asarray(out) - ref).max())
    assert np.allclose(np.asarray(out), ref, atol=3e-2, rtol=3e-2), err

    print("KERNEL_OK")
</pallas_src>

<mosaic_0001>
module attributes {stable_mosaic.version = 11 : i64} {
  func.func @_bilstm_kernel(%arg0: i32, %arg1: i32, %arg2: memref<8x2x512xbf16, #tpu.memory_space<vmem>>, %arg3: memref<8x2x512xbf16, #tpu.memory_space<vmem>>, %arg4: memref<2x1xi32, #tpu.memory_space<vmem>>, %arg5: memref<128x512xf32, #tpu.memory_space<vmem>>, %arg6: memref<128x512xf32, #tpu.memory_space<vmem>>, %arg7: memref<2x2x128xf32, #tpu.memory_space<vmem>>, %arg8: memref<2x128xf32, #tpu.memory_space<vmem>>, %arg9: memref<2x128xf32, #tpu.memory_space<vmem>>, %arg10: memref<2x128xf32, #tpu.memory_space<vmem>>, %arg11: memref<2x128xf32, #tpu.memory_space<vmem>>, %arg12: memref<2x128xf32, #tpu.memory_space<vmem>>, %arg13: memref<2x128xf32, #tpu.memory_space<vmem>>) attributes {dimension_semantics = [#tpu.dimension_semantics<parallel>, #tpu.dimension_semantics<arbitrary>], iteration_bounds = array<i64: 1, 1>, scalar_prefetch = 0 : i64, scratch_operands = 6 : i64, tpu.core_type = #tpu.core_type<tc>, window_params = [{transform_indices = @transform_0, window_bounds = array<i64: 8, 2, 512>}, {transform_indices = @transform_1, window_bounds = array<i64: 8, 2, 512>}, {transform_indices = @transform_2, window_bounds = array<i64: 2, 1>}, {pipeline_mode = #tpu.pipeline_mode<synchronous>, transform_indices = @transform_3, window_bounds = array<i64: 128, 512>}, {pipeline_mode = #tpu.pipeline_mode<synchronous>, transform_indices = @transform_4, window_bounds = array<i64: 128, 512>}, {transform_indices = @transform_5, window_bounds = array<i64: 2, 2, 128>}]} {
    %c0_i32 = arith.constant 0 : i32
    %0 = arith.cmpi eq, %arg1, %c0_i32 : i32
    %1 = arith.extui %0 : i1 to i32
    %c0_i32_0 = arith.constant 0 : i32
    %2 = arith.cmpi ne, %1, %c0_i32_0 : i32
    scf.if %2 {
      %cst = arith.constant 0.000000e+00 : f32
      %11 = vector.broadcast %cst : f32 to vector<2x128xf32>
      %c0_11 = arith.constant 0 : index
      %c0_12 = arith.constant 0 : index
      %12 = vector.load %arg8[%c0_11, %c0_12] : memref<2x128xf32, #tpu.memory_space<vmem>>, vector<2x128xf32>
      tpu.vector_store %arg8[%c0_11, %c0_12], %11 {strides = array<i32>} : memref<2x128xf32, #tpu.memory_space<vmem>>, vector<2x128xf32>,
      %cst_13 = arith.constant 0.000000e+00 : f32
      %13 = vector.broadcast %cst_13 : f32 to vector<2x128xf32>
      %c0_14 = arith.constant 0 : index
      %c0_15 = arith.constant 0 : index
      %14 = vector.load %arg9[%c0_14, %c0_15] : memref<2x128xf32, #tpu.memory_space<vmem>>, vector<2x128xf32>
      tpu.vector_store %arg9[%c0_14, %c0_15], %13 {strides = array<i32>} : memref<2x128xf32, #tpu.memory_space<vmem>>, vector<2x128xf32>,
      %cst_16 = arith.constant 0.000000e+00 : f32
      %15 = vector.broadcast %cst_16 : f32 to vector<2x128xf32>
      %c0_17 = arith.constant 0 : index
      %c0_18 = arith.constant 0 : index
      %16 = vector.load %arg11[%c0_17, %c0_18] : memref<2x128xf32, #tpu.memory_space<vmem>>, vector<2x128xf32>
      tpu.vector_store %arg11[%c0_17, %c0_18], %15 {strides = array<i32>} : memref<2x128xf32, #tpu.memory_space<vmem>>, vector<2x128xf32>,
      %cst_19 = arith.constant 0.000000e+00 : f32
      %17 = vector.broadcast %cst_19 : f32 to vector<2x128xf32>
      %c0_20 = arith.constant 0 : index
      %c0_21 = arith.constant 0 : index
      %18 = vector.load %arg12[%c0_20, %c0_21] : memref<2x128xf32, #tpu.memory_space<vmem>>, vector<2x128xf32>
      tpu.vector_store %arg12[%c0_20, %c0_21], %17 {strides = array<i32>} : memref<2x128xf32, #tpu.memory_space<vmem>>, vector<2x128xf32>,
      %cst_22 = arith.constant 0xFF800000 : f32
      %19 = vector.broadcast %cst_22 : f32 to vector<2x128xf32>
      %c0_23 = arith.constant 0 : index
      %c0_24 = arith.constant 0 : index
      %20 = vector.load %arg10[%c0_23, %c0_24] : memref<2x128xf32, #tpu.memory_space<vmem>>, vector<2x128xf32>
      tpu.vector_store %arg10[%c0_23, %c0_24], %19 {strides = array<i32>} : memref<2x128xf32, #tpu.memory_space<vmem>>, vector<2x128xf32>,
      %cst_25 = arith.constant 0xFF800000 : f32
      %21 = vector.broadcast %cst_25 : f32 to vector<2x128xf32>
      %c0_26 = arith.constant 0 : index
      %c0_27 = arith.constant 0 : index
      %22 = vector.load %arg13[%c0_26, %c0_27] : memref<2x128xf32, #tpu.memory_space<vmem>>, vector<2x128xf32>
      tpu.vector_store %arg13[%c0_26, %c0_27], %21 {strides = array<i32>} : memref<2x128xf32, #tpu.memory_space<vmem>>, vector<2x128xf32>,
    } else {
    }
    %c0 = arith.constant 0 : index
    %c0_1 = arith.constant 0 : index
    %3 = vector.load %arg4[%c0, %c0_1] : memref<2x1xi32, #tpu.memory_space<vmem>>, vector<2x1xi32>
    %c0_2 = arith.constant 0 : index
    %c0_3 = arith.constant 0 : index
    %4 = vector.load %arg5[%c0_2, %c0_3] : memref<128x512xf32, #tpu.memory_space<vmem>>, vector<128x512xf32>
    %c0_4 = arith.constant 0 : index
    %c0_5 = arith.constant 0 : index
    %5 = vector.load %arg6[%c0_4, %c0_5] : memref<128x512xf32, #tpu.memory_space<vmem>>, vector<128x512xf32>
    %c8_i32 = arith.constant 8 : i32
    %6 = arith.muli %arg1, %c8_i32 : i32
    %c0_i32_6 = arith.constant 0 : i32
    %c8_i32_7 = arith.constant 8 : i32
    %7 = arith.addi %c0_i32_6, %c8_i32_7 : i32
    %c1_i32 = arith.constant 1 : i32
    scf.for %arg14 = %c0_i32_6 to %7 step %c1_i32  : i32 {
      %c1_i32_11 = arith.constant 1 : i32
      %11 = arith.muli %arg14, %c1_i32_11 : i32
      %c0_i32_12 = arith.constant 0 : i32
      %12 = arith.addi %c0_i32_12, %11 : i32
      %13 = arith.addi %6, %12 : i32
      %14 = vector.broadcast %13 : i32 to vector<2x1xi32>
      %15 = arith.cmpi slt, %14, %3 : vector<2x1xi32>
      %c7_i32 = arith.constant 7 : i32
      %16 = arith.subi %c7_i32, %13 : i32
      %17 = vector.broadcast %16 : i32 to vector<2x1xi32>
      %18 = arith.cmpi slt, %17, %3 : vector<2x1xi32>
      %19 = arith.index_cast %12 : i32 to index
      %c0_13 = arith.constant 0 : index
      %c0_14 = arith.constant 0 : index
      %20 = vector.load %arg2[%19, %c0_13, %c0_14] : memref<8x2x512xbf16, #tpu.memory_space<vmem>>, vector<1x2x512xbf16>
      %21 = vector.shape_cast %20 : vector<1x2x512xbf16> to vector<2x512xbf16>
      %c0_15 = arith.constant 0 : index
      %c0_16 = arith.constant 0 : index
      %22 = vector.load %arg8[%c0_15, %c0_16] : memref<2x128xf32, #tpu.memory_space<vmem>>, vector<2x128xf32>
      %c0_17 = arith.constant 0 : index
      %c0_18 = arith.constant 0 : index
      %23 = vector.load %arg9[%c0_17, %c0_18] : memref<2x128xf32, #tpu.memory_space<vmem>>, vector<2x128xf32>
      %24 = arith.extf %21 : vector<2x512xbf16> to vector<2x512xf32>
      %cst = arith.constant dense<0.000000e+00> : vector<2x512xf32>
      %25 = tpu.matmul %22, %4, %cst {dimension_numbers = #tpu.dot_dimension_numbers<[1], [0], [0], [1], [0, 0, 1, 1], [], []>, precision = #tpu.contract_precision<fp32>} : vector<2x128xf32>, vector<128x512xf32>, vector<2x512xf32> -> vector<2x512xf32>
      %26 = arith.addf %24, %25 : vector<2x512xf32>
      %27 = vector.extract_strided_slice %26 {offsets = [0, 0], sizes = [2, 128], strides = [1, 1]} : vector<2x512xf32> to vector<2x128xf32>
      %cst_19 = arith.constant 5.000000e-01 : f32
      %28 = vector.broadcast %cst_19 : f32 to vector<2x128xf32>
      %29 = arith.mulf %28, %27 : vector<2x128xf32>
      %30 = math.tanh %29 : vector<2x128xf32>
      %cst_20 = arith.constant 5.000000e-01 : f32
      %31 = vector.broadcast %cst_20 : f32 to vector<2x128xf32>
      %32 = arith.mulf %31, %30 : vector<2x128xf32>
      %cst_21 = arith.constant 5.000000e-01 : f32
      %33 = vector.broadcast %cst_21 : f32 to vector<2x128xf32>
      %34 = arith.addf %32, %33 : vector<2x128xf32>
      %35 = vector.extract_strided_slice %26 {offsets = [0, 128], sizes = [2, 128], strides = [1, 1]} : vector<2x512xf32> to vector<2x128xf32>
      %cst_22 = arith.constant 5.000000e-01 : f32
      %36 = vector.broadcast %cst_22 : f32 to vector<2x128xf32>
      %37 = arith.mulf %36, %35 : vector<2x128xf32>
      %38 = math.tanh %37 : vector<2x128xf32>
      %cst_23 = arith.constant 5.000000e-01 : f32
      %39 = vector.broadcast %cst_23 : f32 to vector<2x128xf32>
      %40 = arith.mulf %39, %38 : vector<2x128xf32>
      %cst_24 = arith.constant 5.000000e-01 : f32
      %41 = vector.broadcast %cst_24 : f32 to vector<2x128xf32>
      %42 = arith.addf %40, %41 : vector<2x128xf32>
      %43 = vector.extract_strided_slice %26 {offsets = [0, 256], sizes = [2, 128], strides = [1, 1]} : vector<2x512xf32> to vector<2x128xf32>
      %44 = math.tanh %43 : vector<2x128xf32>
      %45 = vector.extract_strided_slice %26 {offsets = [0, 384], sizes = [2, 128], strides = [1, 1]} : vector<2x512xf32> to vector<2x128xf32>
      %cst_25 = arith.constant 5.000000e-01 : f32
      %46 = vector.broadcast %cst_25 : f32 to vector<2x128xf32>
      %47 = arith.mulf %46, %45 : vector<2x128xf32>
      %48 = math.tanh %47 : vector<2x128xf32>
      %cst_26 = arith.constant 5.000000e-01 : f32
      %49 = vector.broadcast %cst_26 : f32 to vector<2x128xf32>
      %50 = arith.mulf %49, %48 : vector<2x128xf32>
      %cst_27 = arith.constant 5.000000e-01 : f32
      %51 = vector.broadcast %cst_27 : f32 to vector<2x128xf32>
      %52 = arith.addf %50, %51 : vector<2x128xf32>
      %53 = arith.mulf %42, %23 : vector<2x128xf32>
      %54 = arith.mulf %34, %44 : vector<2x128xf32>
      %55 = arith.addf %53, %54 : vector<2x128xf32>
      %56 = math.tanh %55 : vector<2x128xf32>
      %57 = arith.mulf %52, %56 : vector<2x128xf32>
      %58 = vector.shape_cast %15 : vector<2x1xi1> to vector<2x1xi1>
      %59 = vector.broadcast %58 : vector<2x1xi1> to vector<2x128xi1>
      %60 = arith.select %59, %57, %22 : vector<2x128xi1>, vector<2x128xf32>
      %c0_28 = arith.constant 0 : index
      %c0_29 = arith.constant 0 : index
      %61 = vector.load %arg8[%c0_28, %c0_29] : memref<2x128xf32, #tpu.memory_space<vmem>>, vector<2x128xf32>
      tpu.vector_store %arg8[%c0_28, %c0_29], %60 {strides = array<i32>} : memref<2x128xf32, #tpu.memory_space<vmem>>, vector<2x128xf32>,
      %62 = vector.shape_cast %15 : vector<2x1xi1> to vector<2x1xi1>
      %63 = vector.broadcast %62 : vector<2x1xi1> to vector<2x128xi1>
      %64 = arith.select %63, %55, %23 : vector<2x128xi1>, vector<2x128xf32>
      %c0_30 = arith.constant 0 : index
      %c0_31 = arith.constant 0 : index
      %65 = vector.load %arg9[%c0_30, %c0_31] : memref<2x128xf32, #tpu.memory_space<vmem>>, vector<2x128xf32>
      tpu.vector_store %arg9[%c0_30, %c0_31], %64 {strides = array<i32>} : memref<2x128xf32, #tpu.memory_space<vmem>>, vector<2x128xf32>,
      %c0_32 = arith.constant 0 : index
      %c0_33 = arith.constant 0 : index
      %66 = vector.load %arg10[%c0_32, %c0_33] : memref<2x128xf32, #tpu.memory_space<vmem>>, vector<2x128xf32>
      %67 = arith.maximumf %66, %57 : vector<2x128xf32>
      %c0_34 = arith.constant 0 : index
      %c0_35 = arith.constant 0 : index
      %68 = vector.load %arg10[%c0_34, %c0_35] : memref<2x128xf32, #tpu.memory_space<vmem>>, vector<2x128xf32>
      %69 = vector.shape_cast %15 : vector<2x1xi1> to vector<2x1xi1>
      %70 = vector.broadcast %69 : vector<2x1xi1> to vector<2x128xi1>
      %71 = arith.select %70, %67, %68 : vector<2x128xi1>, vector<2x128xf32>
      %c0_36 = arith.constant 0 : index
      %c0_37 = arith.constant 0 : index
      %72 = vector.load %arg10[%c0_36, %c0_37] : memref<2x128xf32, #tpu.memory_space<vmem>>, vector<2x128xf32>
      tpu.vector_store %arg10[%c0_36, %c0_37], %71 {strides = array<i32>} : memref<2x128xf32, #tpu.memory_space<vmem>>, vector<2x128xf32>,
      %c7_i32_38 = arith.constant 7 : i32
      %73 = arith.subi %c7_i32_38, %12 : i32
      %74 = arith.index_cast %73 : i32 to index
      %c0_39 = arith.constant 0 : index
      %c0_40 = arith.constant 0 : index
      %75 = vector.load %arg3[%74, %c0_39, %c0_40] : memref<8x2x512xbf16, #tpu.memory_space<vmem>>, vector<1x2x512xbf16>
      %76 = vector.shape_cast %75 : vector<1x2x512xbf16> to vector<2x512xbf16>
      %c0_41 = arith.constant 0 : index
      %c0_42 = arith.constant 0 : index
      %77 = vector.load %arg11[%c0_41, %c0_42] : memref<2x128xf32, #tpu.memory_space<vmem>>, vector<2x128xf32>
      %c0_43 = arith.constant 0 : index
      %c0_44 = arith.constant 0 : index
      %78 = vector.load %arg12[%c0_43, %c0_44] : memref<2x128xf32, #tpu.memory_space<vmem>>, vector<2x128xf32>
      %79 = arith.extf %76 : vector<2x512xbf16> to vector<2x512xf32>
      %cst_45 = arith.constant dense<0.000000e+00> : vector<2x512xf32>
      %80 = tpu.matmul %77, %5, %cst_45 {dimension_numbers = #tpu.dot_dimension_numbers<[1], [0], [0], [1], [0, 0, 1, 1], [], []>, precision = #tpu.contract_precision<fp32>} : vector<2x128xf32>, vector<128x512xf32>, vector<2x512xf32> -> vector<2x512xf32>
      %81 = arith.addf %79, %80 : vector<2x512xf32>
      %82 = vector.extract_strided_slice %81 {offsets = [0, 0], sizes = [2, 128], strides = [1, 1]} : vector<2x512xf32> to vector<2x128xf32>
      %cst_46 = arith.constant 5.000000e-01 : f32
      %83 = vector.broadcast %cst_46 : f32 to vector<2x128xf32>
      %84 = arith.mulf %83, %82 : vector<2x128xf32>
      %85 = math.tanh %84 : vector<2x128xf32>
      %cst_47 = arith.constant 5.000000e-01 : f32
      %86 = vector.broadcast %cst_47 : f32 to vector<2x128xf32>
      %87 = arith.mulf %86, %85 : vector<2x128xf32>
      %cst_48 = arith.constant 5.000000e-01 : f32
      %88 = vector.broadcast %cst_48 : f32 to vector<2x128xf32>
      %89 = arith.addf %87, %88 : vector<2x128xf32>
      %90 = vector.extract_strided_slice %81 {offsets = [0, 128], sizes = [2, 128], strides = [1, 1]} : vector<2x512xf32> to vector<2x128xf32>
      %cst_49 = arith.constant 5.000000e-01 : f32
      %91 = vector.broadcast %cst_49 : f32 to vector<2x128xf32>
      %92 = arith.mulf %91, %90 : vector<2x128xf32>
      %93 = math.tanh %92 : vector<2x128xf32>
      %cst_50 = arith.constant 5.000000e-01 : f32
      %94 = vector.broadcast %cst_50 : f32 to vector<2x128xf32>
      %95 = arith.mulf %94, %93 : vector<2x128xf32>
      %cst_51 = arith.constant 5.000000e-01 : f32
      %96 = vector.broadcast %cst_51 : f32 to vector<2x128xf32>
      %97 = arith.addf %95, %96 : vector<2x128xf32>
      %98 = vector.extract_strided_slice %81 {offsets = [0, 256], sizes = [2, 128], strides = [1, 1]} : vector<2x512xf32> to vector<2x128xf32>
      %99 = math.tanh %98 : vector<2x128xf32>
      %100 = vector.extract_strided_slice %81 {offsets = [0, 384], sizes = [2, 128], strides = [1, 1]} : vector<2x512xf32> to vector<2x128xf32>
      %cst_52 = arith.constant 5.000000e-01 : f32
      %101 = vector.broadcast %cst_52 : f32 to vector<2x128xf32>
      %102 = arith.mulf %101, %100 : vector<2x128xf32>
      %103 = math.tanh %102 : vector<2x128xf32>
      %cst_53 = arith.constant 5.000000e-01 : f32
      %104 = vector.broadcast %cst_53 : f32 to vector<2x128xf32>
      %105 = arith.mulf %104, %103 : vector<2x128xf32>
      %cst_54 = arith.constant 5.000000e-01 : f32
      %106 = vector.broadcast %cst_54 : f32 to vector<2x128xf32>
      %107 = arith.addf %105, %106 : vector<2x128xf32>
      %108 = arith.mulf %97, %78 : vector<2x128xf32>
      %109 = arith.mulf %89, %99 : vector<2x128xf32>
      %110 = arith.addf %108, %109 : vector<2x128xf32>
      %111 = math.tanh %110 : vector<2x128xf32>
      %112 = arith.mulf %107, %111 : vector<2x128xf32>
      %113 = vector.shape_cast %18 : vector<2x1xi1> to vector<2x1xi1>
      %114 = vector.broadcast %113 : vector<2x1xi1> to vector<2x128xi1>
      %115 = arith.select %114, %112, %77 : vector<2x128xi1>, vector<2x128xf32>
      %c0_55 = arith.constant 0 : index
      %c0_56 = arith.constant 0 : index
      %116 = vector.load %arg11[%c0_55, %c0_56] : memref<2x128xf32, #tpu.memory_space<vmem>>, vector<2x128xf32>
      tpu.vector_store %arg11[%c0_55, %c0_56], %115 {strides = array<i32>} : memref<2x128xf32, #tpu.memory_space<vmem>>, vector<2x128xf32>,
      %117 = vector.shape_cast %18 : vector<2x1xi1> to vector<2x1xi1>
      %118 = vector.broadcast %117 : vector<2x1xi1> to vector<2x128xi1>
      %119 = arith.select %118, %110, %78 : vector<2x128xi1>, vector<2x128xf32>
      %c0_57 = arith.constant 0 : index
      %c0_58 = arith.constant 0 : index
      %120 = vector.load %arg12[%c0_57, %c0_58] : memref<2x128xf32, #tpu.memory_space<vmem>>, vector<2x128xf32>
      tpu.vector_store %arg12[%c0_57, %c0_58], %119 {strides = array<i32>} : memref<2x128xf32, #tpu.memory_space<vmem>>, vector<2x128xf32>,
      %c0_59 = arith.constant 0 : index
      %c0_60 = arith.constant 0 : index
      %121 = vector.load %arg13[%c0_59, %c0_60] : memref<2x128xf32, #tpu.memory_space<vmem>>, vector<2x128xf32>
      %122 = arith.maximumf %121, %112 : vector<2x128xf32>
      %c0_61 = arith.constant 0 : index
      %c0_62 = arith.constant 0 : index
      %123 = vector.load %arg13[%c0_61, %c0_62] : memref<2x128xf32, #tpu.memory_space<vmem>>, vector<2x128xf32>
      %124 = vector.shape_cast %18 : vector<2x1xi1> to vector<2x1xi1>
      %125 = vector.broadcast %124 : vector<2x1xi1> to vector<2x128xi1>
      %126 = arith.select %125, %122, %123 : vector<2x128xi1>, vector<2x128xf32>
      %c0_63 = arith.constant 0 : index
      %c0_64 = arith.constant 0 : index
      %127 = vector.load %arg13[%c0_63, %c0_64] : memref<2x128xf32, #tpu.memory_space<vmem>>, vector<2x128xf32>
      tpu.vector_store %arg13[%c0_63, %c0_64], %126 {strides = array<i32>} : memref<2x128xf32, #tpu.memory_space<vmem>>, vector<2x128xf32>,
    }
    %c8_i32_8 = arith.constant 8 : i32
    %c0_i32_9 = arith.constant 0 : i32
    %8 = arith.cmpi eq, %arg1, %c0_i32_9 : i32
    %9 = arith.extui %8 : i1 to i32
    %c0_i32_10 = arith.constant 0 : i32
    %10 = arith.cmpi ne, %9, %c0_i32_10 : i32
    scf.if %10 {
      %c0_i32_11 = arith.constant 0 : i32
      %11 = vector.broadcast %c0_i32_11 : i32 to vector<2x1xi32>
      %12 = arith.cmpi sgt, %3, %11 : vector<2x1xi32>
      %c0_12 = arith.constant 0 : index
      %c0_13 = arith.constant 0 : index
      %13 = vector.load %arg10[%c0_12, %c0_13] : memref<2x128xf32, #tpu.memory_space<vmem>>, vector<2x128xf32>
      %cst = arith.constant 0.000000e+00 : f32
      %14 = vector.shape_cast %12 : vector<2x1xi1> to vector<2x1xi1>
      %15 = vector.broadcast %14 : vector<2x1xi1> to vector<2x128xi1>
      %16 = vector.broadcast %cst : f32 to vector<2x128xf32>
      %17 = arith.select %15, %13, %16 : vector<2x128xi1>, vector<2x128xf32>
      %c0_14 = arith.constant 0 : index
      %c0_15 = arith.constant 0 : index
      %c0_16 = arith.constant 0 : index
      %18 = vector.load %arg7[%c0_14, %c0_15, %c0_16] : memref<2x2x128xf32, #tpu.memory_space<vmem>>, vector<1x2x128xf32>
      %19 = vector.shape_cast %18 : vector<1x2x128xf32> to vector<2x128xf32>
      %20 = vector.shape_cast %17 : vector<2x128xf32> to vector<1x2x128xf32>
      tpu.vector_store %arg7[%c0_14, %c0_15, %c0_16], %20 {strides = array<i32>} : memref<2x2x128xf32, #tpu.memory_space<vmem>>, vector<1x2x128xf32>,
      %c0_17 = arith.constant 0 : index
      %c0_18 = arith.constant 0 : index
      %21 = vector.load %arg13[%c0_17, %c0_18] : memref<2x128xf32, #tpu.memory_space<vmem>>, vector<2x128xf32>
      %cst_19 = arith.constant 0.000000e+00 : f32
      %22 = vector.shape_cast %12 : vector<2x1xi1> to vector<2x1xi1>
      %23 = vector.broadcast %22 : vector<2x1xi1> to vector<2x128xi1>
      %24 = vector.broadcast %cst_19 : f32 to vector<2x128xf32>
      %25 = arith.select %23, %21, %24 : vector<2x128xi1>, vector<2x128xf32>
      %c1 = arith.constant 1 : index
      %c0_20 = arith.constant 0 : index
      %c0_21 = arith.constant 0 : index
      %26 = vector.load %arg7[%c1, %c0_20, %c0_21] : memref<2x2x128xf32, #tpu.memory_space<vmem>>, vector<1x2x128xf32>
      %27 = vector.shape_cast %26 : vector<1x2x128xf32> to vector<2x128xf32>
      %28 = vector.shape_cast %25 : vector<2x128xf32> to vector<1x2x128xf32>
      tpu.vector_store %arg7[%c1, %c0_20, %c0_21], %28 {strides = array<i32>} : memref<2x2x128xf32, #tpu.memory_space<vmem>>, vector<1x2x128xf32>,
    } else {
    }
    return
  }
  func.func @transform_0(%arg0: i32, %arg1: i32) -> (i32, i32, i32) {
    %c0_i32 = arith.constant 0 : i32
    %c0_i32_0 = arith.constant 0 : i32
    return %arg1, %arg0, %c0_i32 : i32, i32, i32
  }
  func.func @transform_1(%arg0: i32, %arg1: i32) -> (i32, i32, i32) {
    %c0_i32 = arith.constant 0 : i32
    %0 = arith.subi %c0_i32, %arg1 : i32
    %c1_i32 = arith.constant 1 : i32
    %c0_i32_0 = arith.constant 0 : i32
    return %0, %arg0, %c1_i32 : i32, i32, i32
  }
  func.func @transform_2(%arg0: i32, %arg1: i32) -> (i32, i32) {
    %c0_i32 = arith.constant 0 : i32
    %c0_i32_0 = arith.constant 0 : i32
    return %arg0, %c0_i32 : i32, i32
  }
  func.func @transform_3(%arg0: i32, %arg1: i32) -> (i32, i32) {
    %c0_i32 = arith.constant 0 : i32
    %c0_i32_0 = arith.constant 0 : i32
    %c0_i32_1 = arith.constant 0 : i32
    return %c0_i32, %c0_i32_0 : i32, i32
  }
  func.func @transform_4(%arg0: i32, %arg1: i32) -> (i32, i32) {
    %c0_i32 = arith.constant 0 : i32
    %c0_i32_0 = arith.constant 0 : i32
    %c0_i32_1 = arith.constant 0 : i32
    return %c0_i32, %c0_i32_0 : i32, i32
  }
  func.func @transform_5(%arg0: i32, %arg1: i32) -> (i32, i32, i32) {
    %c0_i32 = arith.constant 0 : i32
    %c0_i32_0 = arith.constant 0 : i32
    %c0_i32_1 = arith.constant 0 : i32
    return %c0_i32, %arg0, %c0_i32_0 : i32, i32, i32
  }
}

</mosaic_0001>

<bundles_post_ra>
// kernel: tpu_custom_call.1
= control target key start
LH: loop header
LB: loop body
LE: loop exit
PB: predicated region body
PF: predicated region fallthrough
CT: control target
= control target key end

     0   :  { %10 = vsyncpa [#allocation9], 0  ;;  %s6781_s0 = inlined_call_operand.hbm [shape: bf16[8,2,1024], index: 0, kind: input, shape index: {}]   ;;  %s6782_s1 = inlined_call_operand.hbm [shape: bf16[8,2,1024], index: 1, kind: input, shape index: {}]   ;;  %s6783_s2 = inlined_call_operand.vmem [shape: s32[2,1], index: 2, kind: input, shape index: {}]   ;;  %s6784_s3 = inlined_call_operand.hbm [shape: f32[128,512], index: 3, kind: input, shape index: {}]   ;;  %s6785_s4 = inlined_call_operand.hbm [shape: f32[128,512], index: 4, kind: input, shape index: {}]   ;;  %s6786_s5 = inlined_call_operand.hbm [shape: f32[2,2,128], index: 5, kind: output, shape index: {}]  }
   0x1   :  { %11 = vsyncpa [#allocation12], 0 }
   0x2   :  { %12 = vsyncpa [#allocation15], 0 }
   0x3   :  { %13 = vsyncpa [#allocation10], 0  ;;  %s3829_s20 = scalar_lea.hbm %s6782_s1, 64  ;;  %s4009_s21 = smov [#allocation11]  }
   0x4   :  { %s37_s22 = sshll.u32 %s4009_s21, 4  ;;  %s4010_s23 = smov [#allocation8]   ;;  %s38_s22 = int_to_ptr.vmem [resolvable:$true] %s37_s22 }
   0x5   :  { %s19_s24 = sshll.u32 %s4010_s23, 4  ;;  %s3900_s25 = scalar_lea.vmem %s38_s22, 512  ;;  %s20_s24 = int_to_ptr.vmem [resolvable:$true] %s19_s24 }
   0x6   :  { %p3901_p0 = scmp.ne.s32.totalorder %s38_s22, %s3900_s25  ;;  %p3905_p1 = scmp.lt.s32.totalorder %s38_s22, %s38_s22 }
   0x7   :  { %p3906_p2 = scmp.lt.s32.totalorder %s3900_s25, %s3900_s25 }
   0x9   :  { %p3907_p3 = por %p3906_p2, %p3905_p1 }
   0xb   :  { %p3908_p4 = pnand %p3907_p3, %p3901_p0 }
   0xd   :  { %3911 = shalt.err (!%p3908_p4)
}
   0xe   :  { %s4011_s26 = smov 128   ;;  %s4012_s27 = smov 64  }
   0xf   :  { %s4013_s28 = smov 4   ;;  %s3921_s29 = scalar_lea.vmem %s20_s24, 512 }
  0x10   :  { %43 = dma.hbm_to_vmem [thread:$0]  %s3829_s20, 512, %s38_s22, [#allocation12], %s4011_s26, %s4012_s27, %s4013_s28  }
  0x11   :  { %p3922_p5 = scmp.ne.s32.totalorder %s20_s24, %s3921_s29  ;;  %p3926_p6 = scmp.lt.s32.totalorder %s20_s24, %s20_s24 }
  0x12   :  { %p3927_p7 = scmp.lt.s32.totalorder %s3921_s29, %s3921_s29 }
  0x14   :  { %p3928_p8 = por %p3927_p7, %p3926_p6 }
  0x16   :  { %p3929_p9 = pnand %p3928_p8, %p3922_p5 }
  0x18   :  { %3932 = shalt.err (!%p3929_p9)
}
  0x19   :  { %25 = dma.hbm_to_vmem [thread:$0]  %s6781_s0, 512, %s20_s24, [#allocation9], %s4011_s26, %s4012_s27, %s4013_s28  }
  0x1a   :  { %s4014_s6 = smov [#allocation13]  }
  0x1b   :  { %s51_s7 = sshll.u32 %s4014_s6, 4  ;;  %s52_s7 = int_to_ptr.vmem [resolvable:$true] %s51_s7 }
  0x1c   :  { %s3941_s8 = scalar_lea.vmem %s52_s7, 8192  ;;  %p3946_p11 = scmp.lt.s32.totalorder %s52_s7, %s52_s7 }
  0x1d   :  { %p3942_p10 = scmp.ne.s32.totalorder %s52_s7, %s3941_s8  ;;  %p3947_p12 = scmp.lt.s32.totalorder %s3941_s8, %s3941_s8 }
  0x1f   :  { %p3948_p13 = por %p3947_p12, %p3946_p11 }
  0x21   :  { %p3949_p0 = pnand %p3948_p13, %p3942_p10 }
  0x23   :  { %3952 = shalt.err (!%p3949_p0)
}
  0x24   :  { %s4015_s9 = smov 512   ;;  %s4016_s10 = smov 32  }
  0x25   :  { %57 = dma.hbm_to_vmem [thread:$0]  %s6784_s3, 8192, %s52_s7, [#allocation12], %s4015_s9, %s4015_s9, %s4016_s10  }
  0x26   :  { %s4017_s13 = smov [#allocation14]  }
  0x27   :  { %s63_s14 = sshll.u32 %s4017_s13, 4  ;;  %s64_s14 = int_to_ptr.vmem [resolvable:$true] %s63_s14 }
  0x28   :  { %s3961_s0 = scalar_lea.vmem %s64_s14, 8192  ;;  %p3966_p2 = scmp.lt.s32.totalorder %s64_s14, %s64_s14 }
  0x29   :  { %p3962_p1 = scmp.ne.s32.totalorder %s64_s14, %s3961_s0  ;;  %p3967_p3 = scmp.lt.s32.totalorder %s3961_s0, %s3961_s0 }
  0x2b   :  { %p3968_p4 = por %p3967_p3, %p3966_p2 }
  0x2d   :  { %p3969_p5 = pnand %p3968_p4, %p3962_p1 }
  0x2f   :  { %3972 = shalt.err (!%p3969_p5)
}
  0x30   :  { %69 = dma.hbm_to_vmem [thread:$0]  %s6785_s4, 8192, %s64_s14, [#allocation15], %s4015_s9, %s4015_s9, %s4016_s10  }
  0x31   :  { %3997 = dma.done.wait [#allocation9], 512  }
  0x32   :  { %3998 = vsyncadd [#allocation9], 4294966784 }
  0x33   :  { %3999 = dma.done.wait [#allocation12], 8704  }
  0x34   :  { %4000 = vsyncadd [#allocation12], 4294958592 }
  0x35   :  { %4001 = dma.done.wait [#allocation15], 8192  }
  0x36   :  { %4002 = vsyncadd [#allocation15], 4294959104  ;;  %v4018_v0 = vmov 0.0   ;;  %v4019_v1 = vmov -inf   ;;  %v4073_v2 = vld [vmem:[%s6783_s2] sm:$0x3] }
  0x37   :  { %88 = vst [vmem:[#allocation2] sm:$0x3] %v4018_v0  ;;  %89 = vst [vmem:[#allocation3] sm:$0x3] %v4018_v0  ;;  %v4075_v3 = vld [vmem:[#allocation13] sm:$0xff]  ;;  %v4077_v4 = vld [vmem:[#allocation13 + $0x8] sm:$0xff] }
  0x38   :  { %90 = vst [vmem:[#allocation5] sm:$0x3] %v4018_v0  ;;  %91 = vst [vmem:[#allocation6] sm:$0x3] %v4018_v0  ;;  %v4079_v5 = vld [vmem:[#allocation13 + $0x10] sm:$0xff]  ;;  %v4081_v6 = vld [vmem:[#allocation13 + $0x18] sm:$0xff] }
  0x39   :  { %92 = vst [vmem:[#allocation4] sm:$0x3] %v4019_v1  ;;  %93 = vst [vmem:[#allocation7] sm:$0x3] %v4019_v1  ;;  %v4083_v7 = vld [vmem:[#allocation13 + $0x20] sm:$0xff]  ;;  %v4085_v8 = vld [vmem:[#allocation13 + $0x28] sm:$0xff] }
  0x3a   :  { %7228 = vst [vmem:[#allocation21_spill] sm:$0xff] %v4073_v2  ;;  %7229 = vst [vmem:[#allocation22_spill] sm:$0xff] %v4075_v3  ;;  %v4087_v9 = vld [vmem:[#allocation13 + $0x30] sm:$0xff]  ;;  %v4089_v10 = vld [vmem:[#allocation13 + $0x38] sm:$0xff]  ;;  %s4331_s2 = smov 0  }
  0x3b   :  { %7230 = vst [vmem:[#allocation23_spill] sm:$0xff] %v4077_v4  ;;  %7231 = vst [vmem:[#allocation24_spill] sm:$0xff] %v4079_v5  ;;  %v4091_v11 = vld [vmem:[#allocation13 + $0x40] sm:$0xff]  ;;  %v4093_v12 = vld [vmem:[#allocation13 + $0x48] sm:$0xff] }
  0x3c   :  { %7232 = vst [vmem:[#allocation25_spill] sm:$0xff] %v4081_v6  ;;  %7233 = vst [vmem:[#allocation26_spill] sm:$0xff] %v4083_v7  ;;  %v4095_v13 = vld [vmem:[#allocation13 + $0x50] sm:$0xff]  ;;  %v4097_v14 = vld [vmem:[#allocation13 + $0x58] sm:$0xff] }
  0x3d   :  { %7234 = vst [vmem:[#allocation27_spill] sm:$0xff] %v4085_v8  ;;  %7235 = vst [vmem:[#allocation28_spill] sm:$0xff] %v4087_v9  ;;  %v4099_v15 = vld [vmem:[#allocation13 + $0x60] sm:$0xff]  ;;  %v4101_v16 = vld [vmem:[#allocation13 + $0x68] sm:$0xff] }
  0x3e   :  { %7236 = vst [vmem:[#allocation29_spill] sm:$0xff] %v4089_v10  ;;  %7237 = vst [vmem:[#allocation30_spill] sm:$0xff] %v4091_v11  ;;  %v4103_v17 = vld [vmem:[#allocation13 + $0x70] sm:$0xff]  ;;  %v4105_v18 = vld [vmem:[#allocation13 + $0x78] sm:$0xff] }
  0x3f   :  { %7238 = vst [vmem:[#allocation31_spill] sm:$0xff] %v4093_v12  ;;  %7239 = vst [vmem:[#allocation32_spill] sm:$0xff] %v4095_v13  ;;  %v4107_v19 = vld [vmem:[#allocation13 + $0x80] sm:$0xff]  ;;  %v4109_v20 = vld [vmem:[#allocation13 + $0x88] sm:$0xff] }
  0x40   :  { %7240 = vst [vmem:[#allocation33_spill] sm:$0xff] %v4097_v14  ;;  %7241 = vst [vmem:[#allocation34_spill] sm:$0xff] %v4099_v15  ;;  %v4111_v21 = vld [vmem:[#allocation13 + $0x90] sm:$0xff]  ;;  %v4113_v22 = vld [vmem:[#allocation13 + $0x98] sm:$0xff] }
  0x41   :  { %7242 = vst [vmem:[#allocation35_spill] sm:$0xff] %v4101_v16  ;;  %7243 = vst [vmem:[#allocation36_spill] sm:$0xff] %v4103_v17  ;;  %v4115_v23 = vld [vmem:[#allocation13 + $0xa0] sm:$0xff]  ;;  %v4117_v24 = vld [vmem:[#allocation13 + $0xa8] sm:$0xff] }
  0x42   :  { %7244 = vst [vmem:[#allocation37_spill] sm:$0xff] %v4105_v18  ;;  %7245 = vst [vmem:[#allocation38_spill] sm:$0xff] %v4107_v19  ;;  %v4119_v25 = vld [vmem:[#allocation13 + $0xb0] sm:$0xff]  ;;  %v4121_v26 = vld [vmem:[#allocation13 + $0xb8] sm:$0xff] }
  0x43   :  { %7246 = vst [vmem:[#allocation39_spill] sm:$0xff] %v4109_v20  ;;  %7247 = vst [vmem:[#allocation40_spill] sm:$0xff] %v4111_v21  ;;  %v4123_v27 = vld [vmem:[#allocation13 + $0xc0] sm:$0xff]  ;;  %v4125_v28 = vld [vmem:[#allocation13 + $0xc8] sm:$0xff] }
  0x44   :  { %7248 = vst [vmem:[#allocation41_spill] sm:$0xff] %v4113_v22  ;;  %7249 = vst [vmem:[#allocation42_spill] sm:$0xff] %v4115_v23  ;;  %v4127_v29 = vld [vmem:[#allocation13 + $0xd0] sm:$0xff]  ;;  %v4129_v30 = vld [vmem:[#allocation13 + $0xd8] sm:$0xff] }
  0x45   :  { %7250 = vst [vmem:[#allocation43_spill] sm:$0xff] %v4117_v24  ;;  %7251 = vst [vmem:[#allocation44_spill] sm:$0xff] %v4119_v25  ;;  %v4131_v31 = vld [vmem:[#allocation13 + $0xe0] sm:$0xff]  ;;  %v4133_v32 = vld [vmem:[#allocation13 + $0xe8] sm:$0xff] }
  0x46   :  { %7252 = vst [vmem:[#allocation45_spill] sm:$0xff] %v4121_v26  ;;  %7253 = vst [vmem:[#allocation46_spill] sm:$0xff] %v4123_v27  ;;  %v4135_v33 = vld [vmem:[#allocation13 + $0xf0] sm:$0xff]  ;;  %v4137_v34 = vld [vmem:[#allocation13 + $0xf8] sm:$0xff] }
  0x47   :  { %7254 = vst [vmem:[#allocation47_spill] sm:$0xff] %v4125_v28  ;;  %7255 = vst [vmem:[#allocation48_spill] sm:$0xff] %v4127_v29  ;;  %v4139_v35 = vld [vmem:[#allocation13 + $0x100] sm:$0xff]  ;;  %v4141_v36 = vld [vmem:[#allocation13 + $0x108] sm:$0xff] }
  0x48   :  { %7256 = vst [vmem:[#allocation49_spill] sm:$0xff] %v4129_v30  ;;  %7257 = vst [vmem:[#allocation50_spill] sm:$0xff] %v4131_v31  ;;  %v4143_v37 = vld [vmem:[#allocation13 + $0x110] sm:$0xff]  ;;  %v4145_v38 = vld [vmem:[#allocation13 + $0x118] sm:$0xff] }
  0x49   :  { %7258 = vst [vmem:[#allocation51_spill] sm:$0xff] %v4133_v32  ;;  %7259 = vst [vmem:[#allocation52_spill] sm:$0xff] %v4135_v33  ;;  %v4147_v39 = vld [vmem:[#allocation13 + $0x120] sm:$0xff]  ;;  %v4149_v40 = vld [vmem:[#allocation13 + $0x128] sm:$0xff] }
  0x4a   :  { %7260 = vst [vmem:[#allocation53_spill] sm:$0xff] %v4137_v34  ;;  %7261 = vst [vmem:[#allocation54_spill] sm:$0xff] %v4139_v35  ;;  %v4151_v41 = vld [vmem:[#allocation13 + $0x130] sm:$0xff]  ;;  %v4153_v42 = vld [vmem:[#allocation13 + $0x138] sm:$0xff] }
  0x4b   :  { %7262 = vst [vmem:[#allocation55_spill] sm:$0xff] %v4141_v36  ;;  %7263 = vst [vmem:[#allocation56_spill] sm:$0xff] %v4143_v37  ;;  %v4155_v43 = vld [vmem:[#allocation13 + $0x140] sm:$0xff]  ;;  %v4157_v44 = vld [vmem:[#allocation13 + $0x148] sm:$0xff] }
  0x4c   :  { %7264 = vst [vmem:[#allocation57_spill] sm:$0xff] %v4145_v38  ;;  %7265 = vst [vmem:[#allocation58_spill] sm:$0xff] %v4147_v39  ;;  %v4159_v45 = vld [vmem:[#allocation13 + $0x150] sm:$0xff]  ;;  %v4161_v46 = vld [vmem:[#allocation13 + $0x158] sm:$0xff] }
  0x4d   :  { %7266 = vst [vmem:[#allocation59_spill] sm:$0xff] %v4149_v40  ;;  %7267 = vst [vmem:[#allocation60_spill] sm:$0xff] %v4151_v41  ;;  %v4163_v47 = vld [vmem:[#allocation13 + $0x160] sm:$0xff]  ;;  %v4165_v48 = vld [vmem:[#allocation13 + $0x168] sm:$0xff] }
  0x4e   :  { %7268 = vst [vmem:[#allocation61_spill] sm:$0xff] %v4153_v42  ;;  %7269 = vst [vmem:[#allocation62_spill] sm:$0xff] %v4155_v43  ;;  %v4167_v49 = vld [vmem:[#allocation13 + $0x170] sm:$0xff]  ;;  %v4169_v50 = vld [vmem:[#allocation13 + $0x178] sm:$0xff] }
  0x4f   :  { %7270 = vst [vmem:[#allocation63_spill] sm:$0xff] %v4157_v44  ;;  %7271 = vst [vmem:[#allocation64_spill] sm:$0xff] %v4159_v45  ;;  %v4171_v51 = vld [vmem:[#allocation13 + $0x180] sm:$0xff]  ;;  %v4173_v52 = vld [vmem:[#allocation13 + $0x188] sm:$0xff] }
  0x50   :  { %7272 = vst [vmem:[#allocation65_spill] sm:$0xff] %v4161_v46  ;;  %7273 = vst [vmem:[#allocation66_spill] sm:$0xff] %v4163_v47  ;;  %v4175_v53 = vld [vmem:[#allocation13 + $0x190] sm:$0xff]  ;;  %v4177_v54 = vld [vmem:[#allocation13 + $0x198] sm:$0xff] }
  0x51   :  { %7274 = vst [vmem:[#allocation67_spill] sm:$0xff] %v4165_v48  ;;  %7275 = vst [vmem:[#allocation68_spill] sm:$0xff] %v4167_v49  ;;  %v4179_v55 = vld [vmem:[#allocation13 + $0x1a0] sm:$0xff]  ;;  %v4181_v56 = vld [vmem:[#allocation13 + $0x1a8] sm:$0xff] }
  0x52   :  { %7276 = vst [vmem:[#allocation69_spill] sm:$0xff] %v4169_v50  ;;  %7277 = vst [vmem:[#allocation70_spill] sm:$0xff] %v4171_v51  ;;  %v4183_v57 = vld [vmem:[#allocation13 + $0x1b0] sm:$0xff]  ;;  %v4185_v58 = vld [vmem:[#allocation13 + $0x1b8] sm:$0xff] }
  0x53   :  { %7278 = vst [vmem:[#allocation71_spill] sm:$0xff] %v4173_v52  ;;  %7279 = vst [vmem:[#allocation72_spill] sm:$0xff] %v4175_v53  ;;  %v4187_v59 = vld [vmem:[#allocation13 + $0x1c0] sm:$0xff]  ;;  %v4189_v60 = vld [vmem:[#allocation13 + $0x1c8] sm:$0xff] }
  0x54   :  { %7280 = vst [vmem:[#allocation73_spill] sm:$0xff] %v4177_v54  ;;  %7281 = vst [vmem:[#allocation74_spill] sm:$0xff] %v4179_v55  ;;  %v4191_v61 = vld [vmem:[#allocation13 + $0x1d0] sm:$0xff]  ;;  %v4193_v62 = vld [vmem:[#allocation13 + $0x1d8] sm:$0xff] }
  0x55   :  { %7282 = vst [vmem:[#allocation75_spill] sm:$0xff] %v4181_v56  ;;  %7283 = vst [vmem:[#allocation76_spill] sm:$0xff] %v4183_v57  ;;  %v4195_v63 = vld [vmem:[#allocation13 + $0x1e0] sm:$0xff]  ;;  %v4197_v0 = vld [vmem:[#allocation13 + $0x1e8] sm:$0xff] }
  0x56   :  { %7284 = vst [vmem:[#allocation77_spill] sm:$0xff] %v4185_v58  ;;  %7285 = vst [vmem:[#allocation78_spill] sm:$0xff] %v4187_v59  ;;  %v4199_v1 = vld [vmem:[#allocation13 + $0x1f0] sm:$0xff]  ;;  %v4201_v2 = vld [vmem:[#allocation13 + $0x1f8] sm:$0xff] }
  0x57   :  { %7286 = vst [vmem:[#allocation79_spill] sm:$0xff] %v4189_v60  ;;  %7287 = vst [vmem:[#allocation80_spill] sm:$0xff] %v4191_v61  ;;  %v4203_v5 = vld [vmem:[#allocation14] sm:$0xff]  ;;  %v4205_v6 = vld [vmem:[#allocation14 + $0x8] sm:$0xff] }
  0x58   :  { %7288 = vst [vmem:[#allocation81_spill] sm:$0xff] %v4193_v62  ;;  %7289 = vst [vmem:[#allocation82_spill] sm:$0xff] %v4195_v63  ;;  %v4207_v9 = vld [vmem:[#allocation14 + $0x10] sm:$0xff]  ;;  %v4209_v10 = vld [vmem:[#allocation14 + $0x18] sm:$0xff] }
  0x59   :  { %7290 = vst [vmem:[#allocation83_spill] sm:$0xff] %v4197_v0  ;;  %7291 = vst [vmem:[#allocation84_spill] sm:$0xff] %v4199_v1  ;;  %v4211_v13 = vld [vmem:[#allocation14 + $0x20] sm:$0xff]  ;;  %v4213_v14 = vld [vmem:[#allocation14 + $0x28] sm:$0xff] }
  0x5a   :  { %7292 = vst [vmem:[#allocation85_spill] sm:$0xff] %v4201_v2  ;;  %7293 = vst [vmem:[#allocation86_spill] sm:$0xff] %v4203_v5  ;;  %v4215_v17 = vld [vmem:[#allocation14 + $0x30] sm:$0xff]  ;;  %v4217_v18 = vld [vmem:[#allocation14 + $0x38] sm:$0xff] }
  0x5b   :  { %7294 = vst [vmem:[#allocation87_spill] sm:$0xff] %v4205_v6  ;;  %7295 = vst [vmem:[#allocation88_spill] sm:$0xff] %v4207_v9  ;;  %v4219_v21 = vld [vmem:[#allocation14 + $0x40] sm:$0xff]  ;;  %v4221_v22 = vld [vmem:[#allocation14 + $0x48] sm:$0xff] }
  0x5c   :  { %7296 = vst [vmem:[#allocation89_spill] sm:$0xff] %v4209_v10  ;;  %7297 = vst [vmem:[#allocation90_spill] sm:$0xff] %v4211_v13  ;;  %v4223_v25 = vld [vmem:[#allocation14 + $0x50] sm:$0xff]  ;;  %v4225_v5 = vld [vmem:[#allocation14 + $0x58] sm:$0xff] }
  0x5d   :  { %7298 = vst [vmem:[#allocation91_spill] sm:$0xff] %v4213_v14  ;;  %7299 = vst [vmem:[#allocation92_spill] sm:$0xff] %v4215_v17  ;;  %v4227_v6 = vld [vmem:[#allocation14 + $0x60] sm:$0xff]  ;;  %v4229_v9 = vld [vmem:[#allocation14 + $0x68] sm:$0xff] }
  0x5e   :  { %7300 = vst [vmem:[#allocation93_spill] sm:$0xff] %v4217_v18  ;;  %7301 = vst [vmem:[#allocation94_spill] sm:$0xff] %v4219_v21  ;;  %v4231_v10 = vld [vmem:[#allocation14 + $0x70] sm:$0xff]  ;;  %v4233_v13 = vld [vmem:[#allocation14 + $0x78] sm:$0xff] }
  0x5f   :  { %7302 = vst [vmem:[#allocation95_spill] sm:$0xff] %v4221_v22  ;;  %7303 = vst [vmem:[#allocation96_spill] sm:$0xff] %v4223_v25  ;;  %v4235_v14 = vld [vmem:[#allocation14 + $0x80] sm:$0xff]  ;;  %v4237_v17 = vld [vmem:[#allocation14 + $0x88] sm:$0xff] }
  0x60   :  { %7304 = vst [vmem:[#allocation97_spill] sm:$0xff] %v4225_v5  ;;  %7305 = vst [vmem:[#allocation98_spill] sm:$0xff] %v4227_v6  ;;  %v4239_v18 = vld [vmem:[#allocation14 + $0x90] sm:$0xff]  ;;  %v4241_v21 = vld [vmem:[#allocation14 + $0x98] sm:$0xff] }
  0x61   :  { %7306 = vst [vmem:[#allocation99_spill] sm:$0xff] %v4229_v9  ;;  %7307 = vst [vmem:[#allocation100_spill] sm:$0xff] %v4231_v10  ;;  %v4243_v22 = vld [vmem:[#allocation14 + $0xa0] sm:$0xff]  ;;  %v4245_v25 = vld [vmem:[#allocation14 + $0xa8] sm:$0xff] }
  0x62   :  { %7308 = vst [vmem:[#allocation101_spill] sm:$0xff] %v4233_v13  ;;  %7309 = vst [vmem:[#allocation102_spill] sm:$0xff] %v4235_v14  ;;  %v4247_v5 = vld [vmem:[#allocation14 + $0xb0] sm:$0xff]  ;;  %v4249_v6 = vld [vmem:[#allocation14 + $0xb8] sm:$0xff] }
  0x63   :  { %7310 = vst [vmem:[#allocation103_spill] sm:$0xff] %v4237_v17  ;;  %7311 = vst [vmem:[#allocation104_spill] sm:$0xff] %v4239_v18  ;;  %v4251_v9 = vld [vmem:[#allocation14 + $0xc0] sm:$0xff]  ;;  %v4253_v10 = vld [vmem:[#allocation14 + $0xc8] sm:$0xff] }
  0x64   :  { %7312 = vst [vmem:[#allocation105_spill] sm:$0xff] %v4241_v21  ;;  %7313 = vst [vmem:[#allocation106_spill] sm:$0xff] %v4243_v22  ;;  %v4255_v13 = vld [vmem:[#allocation14 + $0xd0] sm:$0xff]  ;;  %v4257_v14 = vld [vmem:[#allocation14 + $0xd8] sm:$0xff] }
  0x65   :  { %7314 = vst [vmem:[#allocation107_spill] sm:$0xff] %v4245_v25  ;;  %7315 = vst [vmem:[#allocation108_spill] sm:$0xff] %v4247_v5  ;;  %v4259_v17 = vld [vmem:[#allocation14 + $0xe0] sm:$0xff]  ;;  %v4261_v18 = vld [vmem:[#allocation14 + $0xe8] sm:$0xff] }
  0x66   :  { %7316 = vst [vmem:[#allocation109_spill] sm:$0xff] %v4249_v6  ;;  %7317 = vst [vmem:[#allocation110_spill] sm:$0xff] %v4251_v9  ;;  %v4263_v21 = vld [vmem:[#allocation14 + $0xf0] sm:$0xff]  ;;  %v4265_v22 = vld [vmem:[#allocation14 + $0xf8] sm:$0xff] }
  0x67   :  { %7318 = vst [vmem:[#allocation111_spill] sm:$0xff] %v4253_v10  ;;  %7319 = vst [vmem:[#allocation112_spill] sm:$0xff] %v4255_v13  ;;  %v4267_v25 = vld [vmem:[#allocation14 + $0x100] sm:$0xff]  ;;  %v4269_v5 = vld [vmem:[#allocation14 + $0x108] sm:$0xff] }
  0x68   :  { %7320 = vst [vmem:[#allocation113_spill] sm:$0xff] %v4257_v14  ;;  %7321 = vst [vmem:[#allocation114_spill] sm:$0xff] %v4259_v17  ;;  %v4271_v6 = vld [vmem:[#allocation14 + $0x110] sm:$0xff]  ;;  %v4273_v9 = vld [vmem:[#allocation14 + $0x118] sm:$0xff] }
  0x69   :  { %7322 = vst [vmem:[#allocation115_spill] sm:$0xff] %v4261_v18  ;;  %7323 = vst [vmem:[#allocation116_spill] sm:$0xff] %v4263_v21  ;;  %v4275_v10 = vld [vmem:[#allocation14 + $0x120] sm:$0xff]  ;;  %v4277_v13 = vld [vmem:[#allocation14 + $0x128] sm:$0xff] }
  0x6a   :  { %7324 = vst [vmem:[#allocation117_spill] sm:$0xff] %v4265_v22  ;;  %7325 = vst [vmem:[#allocation118_spill] sm:$0xff] %v4267_v25  ;;  %v4279_v14 = vld [vmem:[#allocation14 + $0x130] sm:$0xff]  ;;  %v4281_v17 = vld [vmem:[#allocation14 + $0x138] sm:$0xff] }
  0x6b   :  { %7326 = vst [vmem:[#allocation119_spill] sm:$0xff] %v4269_v5  ;;  %7327 = vst [vmem:[#allocation120_spill] sm:$0xff] %v4271_v6  ;;  %v4283_v18 = vld [vmem:[#allocation14 + $0x140] sm:$0xff]  ;;  %v4285_v21 = vld [vmem:[#allocation14 + $0x148] sm:$0xff] }
  0x6c   :  { %7328 = vst [vmem:[#allocation121_spill] sm:$0xff] %v4273_v9  ;;  %7329 = vst [vmem:[#allocation122_spill] sm:$0xff] %v4275_v10  ;;  %v4287_v22 = vld [vmem:[#allocation14 + $0x150] sm:$0xff]  ;;  %v4289_v25 = vld [vmem:[#allocation14 + $0x158] sm:$0xff] }
  0x6d   :  { %7330 = vst [vmem:[#allocation123_spill] sm:$0xff] %v4277_v13  ;;  %7331 = vst [vmem:[#allocation124_spill] sm:$0xff] %v4279_v14  ;;  %v4291_v5 = vld [vmem:[#allocation14 + $0x160] sm:$0xff]  ;;  %v4293_v6 = vld [vmem:[#allocation14 + $0x168] sm:$0xff] }
  0x6e   :  { %7332 = vst [vmem:[#allocation125_spill] sm:$0xff] %v4281_v17  ;;  %7333 = vst [vmem:[#allocation126_spill] sm:$0xff] %v4283_v18  ;;  %v4295_v9 = vld [vmem:[#allocation14 + $0x170] sm:$0xff]  ;;  %v4297_v10 = vld [vmem:[#allocation14 + $0x178] sm:$0xff] }
  0x6f   :  { %7334 = vst [vmem:[#allocation127_spill] sm:$0xff] %v4285_v21  ;;  %7335 = vst [vmem:[#allocation128_spill] sm:$0xff] %v4287_v22  ;;  %v4299_v13 = vld [vmem:[#allocation14 + $0x180] sm:$0xff]  ;;  %v4301_v14 = vld [vmem:[#allocation14 + $0x188] sm:$0xff] }
  0x70   :  { %7336 = vst [vmem:[#allocation129_spill] sm:$0xff] %v4289_v25  ;;  %7337 = vst [vmem:[#allocation130_spill] sm:$0xff] %v4291_v5  ;;  %v4303_v17 = vld [vmem:[#allocation14 + $0x190] sm:$0xff]  ;;  %v4305_v18 = vld [vmem:[#allocation14 + $0x198] sm:$0xff] }
  0x71   :  { %7338 = vst [vmem:[#allocation131_spill] sm:$0xff] %v4293_v6  ;;  %7339 = vst [vmem:[#allocation132_spill] sm:$0xff] %v4295_v9  ;;  %v4307_v21 = vld [vmem:[#allocation14 + $0x1a0] sm:$0xff]  ;;  %v4309_v22 = vld [vmem:[#allocation14 + $0x1a8] sm:$0xff] }
  0x72   :  { %7340 = vst [vmem:[#allocation133_spill] sm:$0xff] %v4297_v10  ;;  %7341 = vst [vmem:[#allocation134_spill] sm:$0xff] %v4299_v13  ;;  %v4311_v25 = vld [vmem:[#allocation14 + $0x1b0] sm:$0xff]  ;;  %v4313_v5 = vld [vmem:[#allocation14 + $0x1b8] sm:$0xff] }
  0x73   :  { %7342 = vst [vmem:[#allocation135_spill] sm:$0xff] %v4301_v14  ;;  %7343 = vst [vmem:[#allocation136_spill] sm:$0xff] %v4303_v17  ;;  %v4315_v6 = vld [vmem:[#allocation14 + $0x1c0] sm:$0xff]  ;;  %v4317_v9 = vld [vmem:[#allocation14 + $0x1c8] sm:$0xff] }
  0x74   :  { %7344 = vst [vmem:[#allocation137_spill] sm:$0xff] %v4305_v18  ;;  %7345 = vst [vmem:[#allocation138_spill] sm:$0xff] %v4307_v21  ;;  %v4319_v10 = vld [vmem:[#allocation14 + $0x1d0] sm:$0xff]  ;;  %v4321_v13 = vld [vmem:[#allocation14 + $0x1d8] sm:$0xff] }
  0x75   :  { %7346 = vst [vmem:[#allocation139_spill] sm:$0xff] %v4309_v22  ;;  %7347 = vst [vmem:[#allocation140_spill] sm:$0xff] %v4311_v25  ;;  %v4323_v14 = vld [vmem:[#allocation14 + $0x1e0] sm:$0xff]  ;;  %v4325_v17 = vld [vmem:[#allocation14 + $0x1e8] sm:$0xff] }
  0x76   :  { %7348 = vst [vmem:[#allocation141_spill] sm:$0xff] %v4313_v5  ;;  %7349 = vst [vmem:[#allocation142_spill] sm:$0xff] %v4315_v6  ;;  %v4327_v18 = vld [vmem:[#allocation14 + $0x1f0] sm:$0xff]  ;;  %v4329_v21 = vld [vmem:[#allocation14 + $0x1f8] sm:$0xff] }
  0x77   :  { %7350 = vst [vmem:[#allocation143_spill] sm:$0xff] %v4317_v9  ;;  %7351 = vst [vmem:[#allocation144_spill] sm:$0xff] %v4319_v10 }
  0x78   :  { %7352 = vst [vmem:[#allocation145_spill] sm:$0xff] %v4321_v13  ;;  %7353 = vst [vmem:[#allocation146_spill] sm:$0xff] %v4323_v14 }
  0x79   :  { %7354 = vst [vmem:[#allocation147_spill] sm:$0xff] %v4325_v17  ;;  %7355 = vst [vmem:[#allocation148_spill] sm:$0xff] %v4327_v18 }
  0x7a   :  { %7356 = vst [vmem:[#allocation149_spill] sm:$0xff] %v4329_v21 }
  0x7b LB: > { %v7357_v4 = vld [vmem:[#allocation23_spill] sm:$0xff]  ;;  %v7358_v3 = vld [vmem:[#allocation22_spill] sm:$0xff]  ;;  %s233_s4 = ssub.s32 7, %s4007_s2  ;;  %s3839_s18 = sshll.u32 %s4007_s2, 2  ;;  %s4007_s2 = sphi %s4331_s2, %s229_s2  }
  0x7c   : > { %v7359_v7 = vld [vmem:[#allocation26_spill] sm:$0xff]  ;;  %v7360_v8 = vld [vmem:[#allocation27_spill] sm:$0xff]  ;;  %s237_s19 = scalar_lea.vmem [#allocation8], %s3839_s18  ;;  %s3840_s20 = sshll.u32 %s233_s4, 2 }
  0x7d   : > { %v7361_v11 = vld [vmem:[#allocation30_spill] sm:$0xff]  ;;  %v7363_v12 = vld [vmem:[#allocation31_spill] sm:$0xff]  ;;  %s2015_s21 = scalar_lea.vmem [#allocation11], %s3840_s20 }
  0x7e   : > { %v7362_v15 = vld [vmem:[#allocation34_spill] sm:$0xff]  ;;  %v7364_v16 = vld [vmem:[#allocation35_spill] sm:$0xff] }
  0x7f   : > { %v7365_v19 = vld [vmem:[#allocation38_spill] sm:$0xff]  ;;  %v7366_v20 = vld [vmem:[#allocation39_spill] sm:$0xff] }
  0x80   : > { %v7367_v23 = vld [vmem:[#allocation42_spill] sm:$0xff]  ;;  %v7368_v24 = vld [vmem:[#allocation43_spill] sm:$0xff] }
  0x81   : > { %v7369_v27 = vld [vmem:[#allocation46_spill] sm:$0xff]  ;;  %v7370_v28 = vld [vmem:[#allocation47_spill] sm:$0xff] }
  0x82   : > { %v7371_v31 = vld [vmem:[#allocation50_spill] sm:$0xff]  ;;  %v7372_v32 = vld [vmem:[#allocation51_spill] sm:$0xff]  ;;  %v4481_v62 = vand.u32 4294901760, %v7369_v27 }
  0x83   : > { %v7373_v35 = vld [vmem:[#allocation54_spill] sm:$0xff]  ;;  %v7375_v36 = vld [vmem:[#allocation55_spill] sm:$0xff] }
  0x84   : > { %v7374_v39 = vld [vmem:[#allocation58_spill] sm:$0xff]  ;;  %v7376_v40 = vld [vmem:[#allocation59_spill] sm:$0xff]  ;;  %7403 = vst [vmem:[#allocation159_spill] sm:$0xff] %v4481_v62 }
  0x85   : > { %v7377_v43 = vld [vmem:[#allocation62_spill] sm:$0xff]  ;;  %v7378_v44 = vld [vmem:[#allocation63_spill] sm:$0xff]  ;;  %v4394_v37 = vand.u32 4294901760, %v7376_v40  ;;  %v4404_v41 = vand.u32 4294901760, %v7374_v39 }
  0x86   : > { %v7379_v47 = vld [vmem:[#allocation66_spill] sm:$0xff]  ;;  %v7381_v48 = vld [vmem:[#allocation67_spill] sm:$0xff]  ;;  %v4377_v29 = vand.u32 4294901760, %v7378_v44  ;;  %v4384_v33 = vand.u32 4294901760, %v7377_v43 }
  0x87   : > { %v7380_v51 = vld [vmem:[#allocation70_spill] sm:$0xff]  ;;  %v7382_v52 = vld [vmem:[#allocation71_spill] sm:$0xff]  ;;  %v4362_v9 = vand.u32 4294901760, %v7381_v48  ;;  %v4369_v17 = vand.u32 4294901760, %v7379_v47  ;;  %7392 = vst [vmem:[#allocation153_spill] sm:$0xff] %v4394_v37 }
  0x88   : > { %v7383_v55 = vld [vmem:[#allocation74_spill] sm:$0xff]  ;;  %v7384_v56 = vld [vmem:[#allocation75_spill] sm:$0xff]  ;;  %v4355_v22 = vand.u32 4294901760, %v7382_v52  ;;  %v4358_v6 = vand.u32 4294901760, %v7380_v51  ;;  %7390 = vst [vmem:[#allocation151_spill] sm:$0xff] %v4377_v29  ;;  %7391 = vst [vmem:[#allocation152_spill] sm:$0xff] %v4384_v33 }
  0x89   : > { %v7385_v59 = vld [vmem:[#allocation78_spill] sm:$0xff]  ;;  %v7386_v60 = vld [vmem:[#allocation79_spill] sm:$0xff]  ;;  %v4349_v18 = vand.u32 4294901760, %v7384_v56  ;;  %v4352_v21 = vand.u32 4294901760, %v7383_v55 }
  0x8a   : > { %v7387_v63 = vld [vmem:[#allocation82_spill] sm:$0xff]  ;;  %v7388_v0 = vld [vmem:[#allocation83_spill] sm:$0xff]  ;;  %v4343_v10 = vand.u32 4294901760, %v7386_v60  ;;  %v4346_v13 = vand.u32 4294901760, %v7385_v59 }
  0x8b   : > { %v4337_v25 = vand.u32 4294901760, %v7388_v0  ;;  %v4340_v5 = vand.u32 4294901760, %v7387_v63 }
  0x8c   : > { %v4381_v30 = vsub.f32 %v7386_v60, %v4343_v10  ;;  %v4398_v60 = vsub.f32 %v7384_v56, %v4349_v18 }
  0x8d   : > { %243 = vmatprep.subr.mxu0 %v4337_v25  ;;  %v4366_v14 = vsub.f32 %v7388_v0, %v4337_v25  ;;  %v4373_v26 = vsub.f32 %v7387_v63, %v4340_v5  ;;  %v4388_v0 = vsub.f32 %v7385_v59, %v4346_v13  ;;  %v4408_v63 = vsub.f32 %v7383_v55, %v4352_v21 }
  0x8e   : > { %245 = vmatpush1.msra.mxu0 %v4340_v5  ;;  %v4419_v59 = vand.u32 4294901760, %v7375_v36  ;;  %v7396_v55 = vand.u32 4294901760, %v4381_v30  ;;  %v7398_v54 = vand.u32 4294901760, %v4398_v60 }
  0x8f   : > { %7389 = vst [vmem:[#allocation150_spill] sm:$0xff] %v4366_v14  ;;  %247 = vmatprep.subr.mxu0 %v4343_v10  ;;  %v7393_v34 = vand.u32 4294901760, %v4366_v14  ;;  %v7394_v42 = vand.u32 4294901760, %v4373_v26  ;;  %v7397_v49 = vand.u32 4294901760, %v4388_v0 }
  0x90   : > { %249 = vmatpush1.msra.mxu0 %v4346_v13  ;;  %7395 = vst [vmem:[#allocation154_spill] sm:$0xff] %v4419_v59  ;;  %v365_v46 = vsub.f32 %v4381_v30, %v7396_v55  ;;  %v377_v57 = vsub.f32 %v4398_v60, %v7398_v54  ;;  %v4438_v55 = vand.u32 4294901760, %v7373_v35  ;;  %v4448_v54 = vsub.f32 %v7380_v51, %v4358_v6 }
  0x91   : > { %251 = vmatprep.subr.mxu0 %v4349_v18  ;;  %v353_v56 = vsub.f32 %v4366_v14, %v7393_v34  ;;  %v359_v45 = vsub.f32 %v4373_v26, %v7394_v42  ;;  %v371_v50 = vsub.f32 %v4388_v0, %v7397_v49  ;;  %v6888_v34 = vand.u32 4294901760, %v4408_v63 }
  0x92   : > { %253 = vmatpush1.msra.mxu0 %v4352_v21  ;;  %v4431_v42 = vsub.f32 %v7382_v52, %v4355_v22  ;;  %7399 = vst [vmem:[#allocation155_spill] sm:$0xff] %v4438_v55  ;;  %v366_v49 = vand.u32 4294901760, %v365_v46  ;;  %v4455_v46 = vsub.f32 %v7381_v48, %v4362_v9  ;;  %v6897_v48 = vand.u32 4294901760, %v4448_v54 }
  0x93   : > { %255 = vmatprep.subr.mxu0 %v4355_v22  ;;  %v354_v38 = vand.u32 4294901760, %v353_v56  ;;  %v360_v53 = vand.u32 4294901760, %v359_v45  ;;  %v372_v58 = vand.u32 4294901760, %v371_v50  ;;  %v383_v52 = vsub.f32 %v4408_v63, %v6888_v34 }
  0x94   : > { %257 = vmatpush1.msra.mxu0 %v4358_v6  ;;  %v6891_v61 = vand.u32 4294901760, %v4431_v42  ;;  %v378_v45 = vand.u32 4294901760, %v377_v57  ;;  %v4451_v56 = vand.u32 4294901760, %v7372_v32  ;;  %v4462_v57 = vand.u32 4294901760, %v7371_v31 }
  0x95   : > { %259 = vmatprep.subr.mxu0 %v4362_v9  ;;  %355 = vmatprep.subr.mxu1 %v354_v38  ;;  %v384_v50 = vand.u32 4294901760, %v383_v52  ;;  %v4466_v34 = vsub.f32 %v7379_v47, %v4369_v17  ;;  %v4472_v52 = vand.u32 4294901760, %v7370_v28  ;;  %v395_v51 = vsub.f32 %v4448_v54, %v6897_v48 }
  0x96   : > { %7400 = vst [vmem:[#allocation156_spill] sm:$0xff] %v4451_v56  ;;  %261 = vmatpush1.msra.mxu0 %v4369_v17  ;;  %361 = vmatpush1.msra.mxu1 %v360_v53  ;;  %v389_v38 = vsub.f32 %v4431_v42, %v6891_v61  ;;  %7401 = vst [vmem:[#allocation157_spill] sm:$0xff] %v4462_v57  ;;  %v4476_v53 = vsub.f32 %v7378_v44, %v4377_v29  ;;  %v7404_v44 = vand.u32 4294901760, %v4455_v46 }
  0x97   : > { %263 = vmatprep.subr.mxu0 %v4377_v29  ;;  %367 = vmatprep.subr.mxu1 %v366_v49  ;;  %7402 = vst [vmem:[#allocation158_spill] sm:$0xff] %v4472_v52  ;;  %v4485_v49 = vsub.f32 %v7377_v43, %v4384_v33  ;;  %v4496_v47 = vand.u32 4294901760, %v7368_v24  ;;  %v7406_v43 = vand.u32 4294901760, %v4466_v34  ;;  %v4505_v48 = vsub.f32 %v7376_v40, %v4394_v37 }
  0x98   : > { %265 = vmatpush1.msra.mxu0 %v4384_v33  ;;  %373 = vmatpush1.msra.mxu1 %v372_v58  ;;  %v390_v61 = vand.u32 4294901760, %v389_v38  ;;  %v401_v58 = vsub.f32 %v4455_v46, %v7404_v44  ;;  %v4508_v44 = vand.u32 4294901760, %v7367_v23  ;;  %v396_v38 = vand.u32 4294901760, %v395_v51 }
  0x99   : > { %267 = vmatprep.subr.mxu0 %v4394_v37  ;;  %379 = vmatprep.subr.mxu1 %v378_v45  ;;  %7405 = vst [vmem:[#allocation160_spill] sm:$0xff] %v4496_v47  ;;  %v407_v45 = vsub.f32 %v4466_v34, %v7406_v43  ;;  %v4516_v43 = vsub.f32 %v7374_v39, %v4404_v41  ;;  %v7409_v40 = vand.u32 4294901760, %v4485_v49  ;;  %v6908_v29 = vand.u32 4294901760, %v4505_v48 }
  0x9a   : > { %269 = vmatpush1.msra.mxu0 %v4404_v41  ;;  %385 = vmatpush1.msra.mxu1 %v384_v50  ;;  %7407 = vst [vmem:[#allocation161_spill] sm:$0xff] %v4508_v44  ;;  %v402_v2 = vand.u32 4294901760, %v401_v58  ;;  %v7408_v50 = vand.u32 4294901760, %v4476_v53  ;;  %v4524_v51 = vand.u32 4294901760, %v7366_v20  ;;  %v4544_v58 = vand.u32 4294901760, %v7364_v16 }
  0x9b   : > { %271 = vmatprep.subr.mxu0 %v4419_v59  ;;  %391 = vmatprep.subr.mxu1 %v390_v61  ;;  %v408_v1 = vand.u32 4294901760, %v407_v45  ;;  %v419_v37 = vsub.f32 %v4485_v49, %v7409_v40  ;;  %v4533_v45 = vand.u32 4294901760, %v7365_v19  ;;  %v4553_v39 = vsub.f32 %v7372_v32, %v4451_v56 }
  0x9c   : > { %v413_v33 = vsub.f32 %v4476_v53, %v7408_v50  ;;  %273 = vmatpush1.msra.mxu0 %v4438_v55  ;;  %7410 = vst [vmem:[#allocation162_spill] sm:$0xff] %v4524_v51  ;;  %397 = vmatpush1.msra.mxu1 %v396_v38  ;;  %v4530_v50 = vsub.f32 %v7375_v36, %v4419_v59  ;;  %7412 = vst [vmem:[#allocation164_spill] sm:$0xff] %v4544_v58  ;;  %v7413_v36 = vand.u32 4294901760, %v4516_v43 }
  0x9d   : > { %275 = vmatprep.subr.mxu0 %v4451_v56  ;;  %7411 = vst [vmem:[#allocation163_spill] sm:$0xff] %v4533_v45  ;;  %403 = vmatprep.subr.mxu1 %v402_v2  ;;  %v420_v40 = vand.u32 4294901760, %v419_v37  ;;  %v425_v38 = vsub.f32 %v4505_v48, %v6908_v29  ;;  %v4556_v29 = vand.u32 4294901760, %v7362_v15 }
  0x9e   : > { %v414_v61 = vand.u32 4294901760, %v413_v33  ;;  %277 = vmatpush1.msra.mxu0 %v4462_v57  ;;  %v4541_v33 = vsub.f32 %v7373_v35, %v4438_v55  ;;  %409 = vmatpush1.msra.mxu1 %v408_v1  ;;  %v431_v2 = vsub.f32 %v4516_v43, %v7413_v36  ;;  %v4562_v55 = vsub.f32 %v7371_v31, %v4462_v57 }
  0x9f   : > { %279 = vmatprep.subr.mxu0 %v4472_v52  ;;  %7414 = vst [vmem:[#allocation165_spill] sm:$0xff] %v4556_v29  ;;  %v426_v35 = vand.u32 4294901760, %v425_v38  ;;  %v4565_v36 = vand.u32 4294901760, %v7363_v12  ;;  %v7416_v32 = vand.u32 4294901760, %v4530_v50  ;;  %v4574_v38 = vsub.f32 %v7370_v28, %v4472_v52 }
  0xa0   : > { %415 = vmatprep.subr.mxu1 %v414_v61  ;;  %281 = vmatpush1.msra.mxu0 %v4481_v62  ;;  %v6919_v1 = vand.u32 4294901760, %v4541_v33  ;;  %v432_v37 = vand.u32 4294901760, %v431_v2  ;;  %v4582_v2 = vand.u32 4294901760, %v7361_v11  ;;  %v7420_v57 = vand.u32 4294901760, %v4562_v55 }
  0xa1   : > { %7415 = vst [vmem:[#allocation166_spill] sm:$0xff] %v4565_v36  ;;  %421 = vmatpush1.msra.mxu1 %v420_v40  ;;  %283 = vmatprep.subr.mxu0 %v4496_v47  ;;  %v437_v61 = vsub.f32 %v4530_v50, %v7416_v32  ;;  %v4586_v32 = vsub.f32 %v7369_v27, %v4481_v62  ;;  %v6928_v52 = vand.u32 4294901760, %v4574_v38 }
  0xa2   : > { %427 = vmatprep.subr.mxu1 %v426_v35  ;;  %285 = vmatpush1.msra.mxu0 %v4508_v44  ;;  %v443_v40 = vsub.f32 %v4541_v33, %v6919_v1  ;;  %7417 = vst [vmem:[#allocation167_spill] sm:$0xff] %v4582_v2  ;;  %v7418_v35 = vand.u32 4294901760, %v4553_v39  ;;  %v4594_v1 = vand.u32 4294901760, %v7360_v8  ;;  %v455_v27 = vsub.f32 %v4562_v55, %v7420_v57 }
  0xa3   : > { %433 = vmatpush1.msra.mxu1 %v432_v37  ;;  %287 = vmatprep.subr.mxu0 %v4524_v51  ;;  %v438_v56 = vand.u32 4294901760, %v437_v61  ;;  %v4603_v61 = vsub.f32 %v7368_v24, %v4496_v47  ;;  %v461_v62 = vsub.f32 %v4574_v38, %v6928_v52  ;;  %v4614_v57 = vsub.f32 %v7367_v23, %v4508_v44  ;;  %v239_v52 = vld [vmem:[#allocation2] sm:$0x3] }
  0xa4   : > { %v449_v28 = vsub.f32 %v4553_v39, %v7418_v35  ;;  %7419 = vst [vmem:[#allocation168_spill] sm:$0xff] %v4594_v1  ;;  %289 = vmatpush1.msra.mxu0 %v4533_v45  ;;  %v444_v31 = vand.u32 4294901760, %v443_v40  ;;  %v4610_v40 = vand.u32 4294901760, %v7359_v7  ;;  %v456_v37 = vand.u32 4294901760, %v455_v27 }
  0xa5   : > { %439 = vmatprep.subr.mxu1 %v438_v56  ;;  %291 = vmatprep.subr.mxu0 %v4544_v58  ;;  %v7421_v56 = vand.u32 4294901760, %v4586_v32  ;;  %v4622_v47 = vand.u32 4294901760, %v7357_v4  ;;  %v462_v59 = vand.u32 4294901760, %v461_v62  ;;  %v6937_v23 = vand.u32 4294901760, %v4614_v57 }
  0xa6   : > { %v450_v35 = vand.u32 4294901760, %v449_v28  ;;  %445 = vmatpush1.msra.mxu1 %v444_v31  ;;  %293 = vmatpush1.msra.mxu0 %v4556_v29  ;;  %v6935_v28 = vand.u32 4294901760, %v4603_v61  ;;  %v4628_v31 = vsub.f32 %v7366_v20, %v4524_v51  ;;  %v4631_v27 = vand.u32 4294901760, %v7358_v3 }
  0xa7   : > { %v467_v24 = vsub.f32 %v4586_v32, %v7421_v56  ;;  %295 = vmatprep.subr.mxu0 %v4565_v36  ;;  %v4639_v62 = vsub.f32 %v7365_v19, %v4533_v45  ;;  %v479_v20 = vsub.f32 %v4614_v57, %v6937_v23  ;;  %v4650_v51 = vand.u32 4294901760, %v239_v52 }
  0xa8   : > { %451 = vmatprep.subr.mxu1 %v450_v35  ;;  %297 = vmatpush1.msra.mxu0 %v4582_v2  ;;  %v473_v35 = vsub.f32 %v4603_v61, %v6935_v28  ;;  %v4656_v19 = vsub.f32 %v7362_v15, %v4556_v29  ;;  %v4660_v23 = vsub.f32 %v7363_v12, %v4565_v36 }
  0xa9   : > { %457 = vmatpush1.msra.mxu1 %v456_v37  ;;  %v468_v56 = vand.u32 4294901760, %v467_v24  ;;  %299 = vmatprep.subr.mxu0 %v4594_v1  ;;  %v4648_v24 = vsub.f32 %v7364_v16, %v4544_v58  ;;  %7422 = vst [vmem:[#allocation169_spill] sm:$0xff] %v4650_v51  ;;  %v480_v37 = vand.u32 4294901760, %v479_v20  ;;  %v7423_v16 = vand.u32 4294901760, %v4628_v31 }
  0xaa   : > { %463 = vmatprep.subr.mxu1 %v462_v59  ;;  %v474_v28 = vand.u32 4294901760, %v473_v35  ;;  %301 = vmatpush1.msra.mxu0 %v4610_v40  ;;  %v6945_v35 = vmov 0.0   ;;  %v4669_v58 = vsub.f32 %v239_v52, %v4650_v51  ;;  %v7425_v12 = vand.u32 4294901760, %v4639_v62 }
  0xab   : > { %469 = vmatpush1.msra.mxu1 %v468_v56  ;;  %303 = vmatprep.subr.mxu0 %v4622_v47  ;;  %v485_v56 = vsub.f32 %v4628_v31, %v7423_v16  ;;  %v6948_v59 = vand.u32 4294901760, %v4648_v24  ;;  %v6955_v15 = vand.u32 4294901760, %v4656_v19  ;;  %v4679_v16 = vsub.f32 %v7361_v11, %v4582_v2 }
  0xac   : > { %338 = vmatprep.mubr.f32.mxu0 %v6945_v35  ;;  %7424 = vst [vmem:[#allocation170_spill] sm:$0xff] %v4669_v58  ;;  %475 = vmatprep.subr.mxu1 %v474_v28  ;;  %v491_v20 = vsub.f32 %v4639_v62, %v7425_v12  ;;  %v4686_v28 = vand.u32 4294901760, %v4669_v58  ;;  %v4690_v12 = vsub.f32 %v7360_v8, %v4594_v1  ;;  %v7428_v2 = vmov 0.0  }
  0xad   : > { %305 = vmatpush1.msra.mxu0 %v4631_v27  ;;  %481 = vmatpush1.msra.mxu1 %v480_v37  ;;  %v486_v35 = vand.u32 4294901760, %v485_v56  ;;  %v497_v52 = vsub.f32 %v4648_v24, %v6948_v59  ;;  %v503_v11 = vsub.f32 %v4656_v19, %v6955_v15  ;;  %v7427_v37 = vand.u32 4294901760, %v4660_v23 }
  0xae   : > { %584 = vmatprep.subr.mxu0 %v4366_v14  ;;  %7426 = vst [vmem:[#allocation171_spill] sm:$0xff] %v4686_v28  ;;  %v492_v36 = vand.u32 4294901760, %v491_v20  ;;  %v6965_v59 = vand.u32 4294901760, %v4679_v16  ;;  %574 = vmatprep.mubr.f32.mxu1 %v7428_v2  ;;  %v342_v14 = vsub.f32 %v4669_v58, %v4686_v28  ;;  %v6961_v8 = vand.u32 4294901760, %v4690_v12 }
  0xaf   : > { %v509_v56 = vsub.f32 %v4660_v23, %v7427_v37  ;;  %487 = vmatprep.subr.mxu1 %v486_v35  ;;  %v498_v29 = vand.u32 4294901760, %v497_v52  ;;  %v4705_v20 = vsub.f32 %v7359_v7, %v4610_v40  ;;  %v504_v15 = vand.u32 4294901760, %v503_v11 }
  0xb0   : > { %493 = vmatpush1.msra.mxu1 %v492_v36  ;;  %v515_v37 = vsub.f32 %v4679_v16, %v6965_v59  ;;  %v4712_v35 = vsub.f32 %v7357_v4, %v4622_v47  ;;  %v4714_v52 = vand.u32 4294901760, %v342_v14  ;;  %v521_v28 = vsub.f32 %v4690_v12, %v6961_v8  ;;  %v7442_v59 = vld [vmem:[#allocation162_spill] sm:$0xff] }
  0xb1   : > { %7429 = vst [vmem:[#allocation172_spill] sm:$0xff] %v4705_v20  ;;  %v510_v1 = vand.u32 4294901760, %v509_v56  ;;  %499 = vmatprep.subr.mxu1 %v498_v29  ;;  %v6964_v7 = vand.u32 4294901760, %v4705_v20  ;;  %v4722_v11 = vsub.f32 %v7358_v3, %v4631_v27  ;;  %v7443_v3 = vld [vmem:[#allocation164_spill] sm:$0xff]  ;;  %v7444_v4 = vld [vmem:[#allocation150_spill] sm:$0xff] }
  0xb2   : > { %7430 = vst [vmem:[#allocation173_spill] sm:$0xff] %v4714_v52  ;;  %505 = vmatpush1.msra.mxu1 %v504_v15  ;;  %v516_v36 = vand.u32 4294901760, %v515_v37  ;;  %v6963_v56 = vand.u32 4294901760, %v4712_v35  ;;  %344 = vmatmul.mubr.f32.vlgmr.msra.gmra.mxu0 %v4714_v52  ;;  %v522_v29 = vand.u32 4294901760, %v521_v28  ;;  %v7445_v52 = vand.u32 4294901760, %v7444_v4 }
  0xb3   : > { %7431 = vst [vmem:[#allocation174_spill] sm:$0xff] %v4722_v11  ;;  %511 = vmatprep.subr.mxu1 %v510_v1  ;;  %v527_v14 = vsub.f32 %v4705_v20, %v6964_v7  ;;  %v6962_v8 = vand.u32 4294901760, %v4722_v11  ;;  %587 = vmatpush1.msra.mxu0 %v4373_v26  ;;  %v7441_v7 = vld [vmem:[#allocation160_spill] sm:$0xff]  ;;  %v7453_v4 = vand.u32 4294901760, %v4398_v60 }
  0xb4   : > { %517 = vmatpush1.msra.mxu1 %v516_v36  ;;  %v533_v15 = vsub.f32 %v4712_v35, %v6963_v56  ;;  %590 = vmatprep.subr.mxu0 %v4381_v30  ;;  %v7440_v56 = vld [vmem:[#allocation159_spill] sm:$0xff] }
  0xb5   : > { %523 = vmatprep.subr.mxu1 %v522_v29  ;;  %v528_v37 = vand.u32 4294901760, %v527_v14  ;;  %v539_v1 = vsub.f32 %v4722_v11, %v6962_v8  ;;  %593 = vmatpush1.msra.mxu0 %v4388_v0  ;;  %v7432_v29 = vld [vmem:[#allocation151_spill] sm:$0xff]  ;;  %v7433_v14 = vld [vmem:[#allocation152_spill] sm:$0xff]  ;;  %v7439_v8 = vld [vmem:[#allocation158_spill] sm:$0xff] }
  0xb6   : > { %v534_v28 = vand.u32 4294901760, %v533_v15  ;;  %710 = vmatprep.mubr.f32.mxu0 %v7428_v2  ;;  %596 = vmatprep.subr.mxu0 %v4398_v60  ;;  %v7434_v15 = vld [vmem:[#allocation153_spill] sm:$0xff]  ;;  %v7458_v60 = vand.u32 4294901760, %v4455_v46 }
  0xb7   : > { %529 = vmatpush1.msra.mxu1 %v528_v37  ;;  %v540_v36 = vand.u32 4294901760, %v539_v1  ;;  %599 = vmatpush1.msra.mxu0 %v4408_v63  ;;  %v7435_v37 = vld [vmem:[#allocation154_spill] sm:$0xff]  ;;  %v7436_v1 = vld [vmem:[#allocation155_spill] sm:$0xff] }
  0xb8   : > { %535 = vmatprep.subr.mxu1 %v534_v28  ;;  %602 = vmatprep.subr.mxu0 %v4431_v42  ;;  %v7437_v28 = vld [vmem:[#allocation156_spill] sm:$0xff] }
  0xb9   : > { %541 = vmatpush1.msra.mxu1 %v540_v36  ;;  %605 = vmatpush1.msra.mxu0 %v4448_v54  ;;  %v7438_v36 = vld [vmem:[#allocation157_spill] sm:$0xff] }
  0xba   : > { %576 = vmatmul.mubr.f32.vlgmr.msra.gmra.mxu1 %v4650_v51  ;;  %608 = vmatprep.subr.mxu0 %v4455_v46  ;;  %v7446_v51 = vld [vmem:[#allocation165_spill] sm:$0xff]  ;;  %v7462_v46 = vand.u32 4294901760, %v4505_v48 }
  0xbb   : > { %720 = vmatprep.subr.mxu1 %v4337_v25  ;;  %611 = vmatpush1.msra.mxu0 %v4466_v34 }
  0xbc   : > { %722 = vmatpush1.msra.mxu1 %v4340_v5  ;;  %614 = vmatprep.subr.mxu0 %v4476_v53 }
  0xbd   : > { %724 = vmatprep.subr.mxu1 %v4343_v10  ;;  %617 = vmatpush1.msra.mxu0 %v4485_v49 }
  0xbe   : > { %726 = vmatpush1.msra.mxu1 %v4346_v13  ;;  %620 = vmatprep.subr.mxu0 %v4505_v48  ;;  %v7469_v48 = vld [vmem:[#allocation85_spill] sm:$0xff] }
  0xbf   : > { %728 = vmatprep.subr.mxu1 %v4349_v18  ;;  %623 = vmatpush1.msra.mxu0 %v4516_v43 }
  0xc0   : > { %730 = vmatpush1.msra.mxu1 %v4352_v21  ;;  %626 = vmatprep.subr.mxu0 %v4530_v50 }
  0xc1   : > { %732 = vmatprep.subr.mxu1 %v4355_v22  ;;  %629 = vmatpush1.msra.mxu0 %v4541_v33 }
  0xc2   : > { %734 = vmatpush1.msra.mxu1 %v4358_v6  ;;  %632 = vmatprep.subr.mxu0 %v4553_v39 }
  0xc3   : > { %736 = vmatprep.subr.mxu1 %v4362_v9  ;;  %635 = vmatpush1.msra.mxu0 %v4562_v55 }
  0xc4   : > { %738 = vmatpush1.msra.mxu1 %v4369_v17  ;;  %638 = vmatprep.subr.mxu0 %v4574_v38 }
  0xc5   : > { %740 = vmatprep.subr.mxu1 %v7432_v29  ;;  %641 = vmatpush1.msra.mxu0 %v4586_v32 }
  0xc6   : > { %742 = vmatpush1.msra.mxu1 %v7433_v14  ;;  %644 = vmatprep.subr.mxu0 %v4603_v61 }
  0xc7   : > { %744 = vmatprep.subr.mxu1 %v7434_v15  ;;  %647 = vmatpush1.msra.mxu0 %v4614_v57 }
  0xc8   : > { %746 = vmatpush1.msra.mxu1 %v4404_v41  ;;  %650 = vmatprep.subr.mxu0 %v4628_v31 }
  0xc9   : > { %748 = vmatprep.subr.mxu1 %v7435_v37  ;;  %653 = vmatpush1.msra.mxu0 %v4639_v62 }
  0xca   : > { %750 = vmatpush1.msra.mxu1 %v7436_v1  ;;  %656 = vmatprep.subr.mxu0 %v4648_v24 }
  0xcb   : > { %752 = vmatprep.subr.mxu1 %v7437_v28  ;;  %659 = vmatpush1.msra.mxu0 %v4656_v19 }
  0xcc   : > { %754 = vmatpush1.msra.mxu1 %v7438_v36  ;;  %662 = vmatprep.subr.mxu0 %v4660_v23 }
  0xcd   : > { %756 = vmatprep.subr.mxu1 %v7439_v8  ;;  %665 = vmatpush1.msra.mxu0 %v4679_v16 }
  0xce   : > { %758 = vmatpush1.msra.mxu1 %v7440_v56  ;;  %668 = vmatprep.subr.mxu0 %v4690_v12 }
  0xcf   : > { %760 = vmatprep.subr.mxu1 %v7441_v7  ;;  %671 = vmatpush1.msra.mxu0 %v4705_v20  ;;  %v7447_v20 = vand.u32 4294901760, %v4373_v26  ;;  %v7454_v26 = vand.u32 4294901760, %v4408_v63  ;;  %v7459_v63 = vand.u32 4294901760, %v4466_v34 }
  0xd0   : > { %762 = vmatpush1.msra.mxu1 %v4508_v44  ;;  %674 = vmatprep.subr.mxu0 %v4712_v35  ;;  %v7448_v44 = vld [vmem:[#allocation166_spill] sm:$0xff] }
  0xd1   : > { %764 = vmatprep.subr.mxu1 %v7442_v59  ;;  %677 = vmatpush1.msra.mxu0 %v4722_v11  ;;  %v7449_v59 = vand.u32 4294901760, %v4381_v30  ;;  %v7450_v11 = vld [vmem:[#allocation167_spill] sm:$0xff]  ;;  %v7455_v30 = vand.u32 4294901760, %v4431_v42  ;;  %v7460_v42 = vand.u32 4294901760, %v4476_v53  ;;  %v7474_v53 = vand.u32 4294901760, %v4614_v57 }
  0xd2   : > { %766 = vmatpush1.msra.mxu1 %v4533_v45  ;;  %713 = vmatmul.mubr.f32.vlgmr.msra.gmra.mxu0 %v4669_v58  ;;  %v7451_v45 = vand.u32 4294901760, %v4388_v0  ;;  %v7452_v58 = vld [vmem:[#allocation168_spill] sm:$0xff]  ;;  %v7456_v0 = vand.u32 4294901760, %v4448_v54  ;;  %v7461_v54 = vand.u32 4294901760, %v4485_v49 }
  0xd3   : > { %768 = vmatprep.subr.mxu1 %v7443_v3  ;;  %828 = vmatprep.subr.mxu0 %v7445_v52  ;;  %v7475_v49 = vld [vmem:[#allocation80_spill] sm:$0xff]  ;;  %v7482_v52 = vld [vmem:[#allocation73_spill] sm:$0xff] }
  0xd4   : > { %770 = vmatpush1.msra.mxu1 %v7446_v51  ;;  %832 = vmatpush1.msra.mxu0 %v7447_v20 }
  0xd5   : > { %772 = vmatprep.subr.mxu1 %v7448_v44  ;;  %836 = vmatprep.subr.mxu0 %v7449_v59 }
  0xd6   : > { %774 = vmatpush1.msra.mxu1 %v7450_v11  ;;  %840 = vmatpush1.msra.mxu0 %v7451_v45  ;;  %v7457_v45 = vld [vmem:[#allocation171_spill] sm:$0xff] }
  0xd7   : > { %776 = vmatprep.subr.mxu1 %v7452_v58  ;;  %844 = vmatprep.subr.mxu0 %v7453_v4 }
  0xd8   : > { %778 = vmatpush1.msra.mxu1 %v4610_v40  ;;  %848 = vmatpush1.msra.mxu0 %v7454_v26 }
  0xd9   : > { %780 = vmatprep.subr.mxu1 %v4622_v47  ;;  %852 = vmatprep.subr.mxu0 %v7455_v30 }
  0xda   : > { %782 = vmatpush1.msra.mxu1 %v4631_v27  ;;  %815 = vmatprep.mubr.f32.mxu1 %v7428_v2 }
  0xdb   : > { %856 = vmatpush1.msra.mxu0 %v7456_v0  ;;  %819 = vmatmul.mubr.f32.vlgmr.msra.gmra.mxu1 %v7457_v45 }
  0xdc   : > { %860 = vmatprep.subr.mxu0 %v7458_v60  ;;  %994 = vmatprep.subr.mxu1 %v4337_v25  ;;  %v7463_v25 = vand.u32 4294901760, %v4516_v43  ;;  %v4871_v43 = vand.u32 4294901760, %v7475_v49  ;;  %v7492_v60 = vld [vmem:[#allocation68_spill] sm:$0xff] }
  0xdd   : > { %864 = vmatpush1.msra.mxu0 %v7459_v63  ;;  %996 = vmatpush1.msra.mxu1 %v4340_v5  ;;  %v7464_v5 = vand.u32 4294901760, %v4530_v50  ;;  %v7476_v50 = vand.u32 4294901760, %v4628_v31  ;;  %v7480_v31 = vld [vmem:[#allocation76_spill] sm:$0xff]  ;;  %v4940_v63 = vand.u32 4294901760, %v7492_v60 }
  0xde   : > { %868 = vmatprep.subr.mxu0 %v7460_v42  ;;  %998 = vmatprep.subr.mxu1 %v4343_v10  ;;  %v7465_v10 = vand.u32 4294901760, %v4541_v33  ;;  %v7477_v33 = vld [vmem:[#allocation77_spill] sm:$0xff]  ;;  %v4894_v59 = vand.u32 4294901760, %v7480_v31 }
  0xdf   : > { %872 = vmatpush1.msra.mxu0 %v7461_v54  ;;  %1000 = vmatpush1.msra.mxu1 %v4346_v13  ;;  %v7466_v13 = vand.u32 4294901760, %v4553_v39  ;;  %v7471_v39 = vld [vmem:[#allocation84_spill] sm:$0xff]  ;;  %7493 = vst [vmem:[#allocation153_spill] sm:$0xff] %v4940_v63 }
  0xe0   : > { %876 = vmatprep.subr.mxu0 %v7462_v46  ;;  %1002 = vmatprep.subr.mxu1 %v4349_v18  ;;  %v7467_v18 = vand.u32 4294901760, %v4562_v55  ;;  %v4859_v34 = vand.u32 4294901760, %v7471_v39  ;;  %v7496_v46 = vld [vmem:[#allocation161_spill] sm:$0xff] }
  0xe1   : > { %880 = vmatpush1.msra.mxu0 %v7463_v25  ;;  %1004 = vmatpush1.msra.mxu1 %v4352_v21  ;;  %v7468_v21 = vand.u32 4294901760, %v4574_v38  ;;  %v4877_v38 = vand.u32 4294901760, %v7477_v33  ;;  %v7497_v25 = vand.u32 4294901760, %v4712_v35 }
  0xe2   : > { %884 = vmatprep.subr.mxu0 %v7464_v5  ;;  %1006 = vmatprep.subr.mxu1 %v4355_v22  ;;  %v4853_v22 = vand.u32 4294901760, %v7469_v48  ;;  %v4888_v57 = vsub.f32 %v7471_v39, %v4859_v34  ;;  %v7498_v5 = vld [vmem:[#allocation64_spill] sm:$0xff] }
  0xe3   : > { %888 = vmatpush1.msra.mxu0 %v7465_v10  ;;  %1008 = vmatpush1.msra.mxu1 %v4358_v6  ;;  %v7470_v6 = vand.u32 4294901760, %v4586_v32  ;;  %v4959_v10 = vand.u32 4294901760, %v7498_v5 }
  0xe4   : > { %892 = vmatprep.subr.mxu0 %v7466_v13  ;;  %1010 = vmatprep.subr.mxu1 %v4362_v9  ;;  %v7472_v9 = vand.u32 4294901760, %v4603_v61  ;;  %v4881_v32 = vsub.f32 %v7469_v48, %v4853_v22  ;;  %v7478_v61 = vand.u32 4294901760, %v4639_v62  ;;  %v7481_v62 = vand.u32 4294901760, %v4656_v19  ;;  %v7528_v48 = vld [vmem:[#allocation45_spill] sm:$0xff] }
  0xe5   : > { %896 = vmatpush1.msra.mxu0 %v7467_v18  ;;  %1012 = vmatpush1.msra.mxu1 %v4369_v17  ;;  %v7473_v17 = vld [vmem:[#allocation81_spill] sm:$0xff]  ;;  %v7484_v19 = vand.u32 4294901760, %v4679_v16  ;;  %v6978_v4 = vand.u32 4294901760, %v4888_v57  ;;  %v7490_v16 = vld [vmem:[#allocation172_spill] sm:$0xff]  ;;  %7499 = vst [vmem:[#allocation155_spill] sm:$0xff] %v4959_v10  ;;  %v7500_v18 = vld [vmem:[#allocation162_spill] sm:$0xff] }
  0xe6   : > { %900 = vmatprep.subr.mxu0 %v7468_v21  ;;  %1014 = vmatprep.subr.mxu1 %v7432_v29  ;;  %v4865_v55 = vand.u32 4294901760, %v7473_v17  ;;  %v4904_v29 = vand.u32 4294901760, %v7482_v52  ;;  %v7491_v0 = vand.u32 4294901760, %v7490_v16  ;;  %v7501_v21 = vld [vmem:[#allocation174_spill] sm:$0xff]  ;;  %v7508_v16 = vld [vmem:[#allocation169_spill] sm:$0xff] }
  0xe7   : > { %904 = vmatpush1.msra.mxu0 %v7470_v6  ;;  %1016 = vmatpush1.msra.mxu1 %v7433_v14  ;;  %v4908_v14 = vsub.f32 %v7475_v49, %v4871_v43  ;;  %v7502_v6 = vand.u32 4294901760, %v7501_v21  ;;  %v4968_v35 = vsub.f32 %v4888_v57, %v6978_v4  ;;  %v7530_v49 = vld [vmem:[#allocation44_spill] sm:$0xff] }
  0xe8   : > { %908 = vmatprep.subr.mxu0 %v7472_v9  ;;  %1018 = vmatprep.subr.mxu1 %v7434_v15  ;;  %v4898_v20 = vsub.f32 %v7473_v17, %v4865_v55  ;;  %v6980_v15 = vand.u32 4294901760, %v4881_v32  ;;  %v4948_v54 = vsub.f32 %v7482_v52, %v4904_v29  ;;  %v7503_v9 = vld [vmem:[#allocation61_spill] sm:$0xff]  ;;  %v5122_v52 = vand.u32 4294901760, %v7530_v49 }
  0xe9   : > { %912 = vmatpush1.msra.mxu0 %v7474_v53  ;;  %1020 = vmatpush1.msra.mxu1 %v4404_v41  ;;  %v7479_v41 = vand.u32 4294901760, %v4648_v24  ;;  %v7483_v24 = vand.u32 4294901760, %v4660_v23  ;;  %v7487_v23 = vand.u32 4294901760, %v4690_v12  ;;  %v6976_v42 = vand.u32 4294901760, %v4908_v14  ;;  %v7521_v17 = vld [vmem:[#allocation49_spill] sm:$0xff] }
  0xea   : > { %916 = vmatprep.subr.mxu0 %v7476_v50  ;;  %1022 = vmatprep.subr.mxu1 %v7435_v37  ;;  %v4916_v37 = vsub.f32 %v7477_v33, %v4877_v38  ;;  %v6977_v30 = vand.u32 4294901760, %v4898_v20  ;;  %v4971_v53 = vand.u32 4294901760, %v7503_v9  ;;  %7531 = vst [vmem:[#allocation168_spill] sm:$0xff] %v5122_v52 }
  0xeb   : > { %920 = vmatpush1.msra.mxu0 %v7478_v61  ;;  %1024 = vmatpush1.msra.mxu1 %v7436_v1  ;;  %v7485_v1 = vld [vmem:[#allocation72_spill] sm:$0xff]  ;;  %v7505_v61 = vld [vmem:[#allocation163_spill] sm:$0xff] }
  0xec   : > { %924 = vmatprep.subr.mxu0 %v7479_v41  ;;  %1026 = vmatprep.subr.mxu1 %v7437_v28  ;;  %v4922_v28 = vand.u32 4294901760, %v7485_v1  ;;  %v6979_v13 = vand.u32 4294901760, %v4916_v37  ;;  %7504 = vst [vmem:[#allocation156_spill] sm:$0xff] %v4971_v53  ;;  %v4982_v41 = vsub.f32 %v4898_v20, %v6977_v30  ;;  %v7511_v30 = vld [vmem:[#allocation56_spill] sm:$0xff] }
  0xed   : > { %928 = vmatpush1.msra.mxu0 %v7481_v62  ;;  %1028 = vmatpush1.msra.mxu1 %v7438_v36  ;;  %v7488_v36 = vld [vmem:[#allocation69_spill] sm:$0xff]  ;;  %v7506_v62 = vld [vmem:[#allocation60_spill] sm:$0xff] }
  0xee   : > { %932 = vmatprep.subr.mxu0 %v7483_v24  ;;  %1030 = vmatprep.subr.mxu1 %v7439_v8  ;;  %7486 = vst [vmem:[#allocation151_spill] sm:$0xff] %v4922_v28  ;;  %v4929_v26 = vand.u32 4294901760, %v7488_v36  ;;  %v4934_v8 = vsub.f32 %v7480_v31, %v4894_v59  ;;  %v4975_v50 = vsub.f32 %v7485_v1, %v4922_v28  ;;  %v4985_v24 = vand.u32 4294901760, %v7506_v62 }
  0xef   : > { %936 = vmatpush1.msra.mxu0 %v7484_v19  ;;  %1032 = vmatpush1.msra.mxu1 %v7440_v56  ;;  %v7494_v56 = vld [vmem:[#allocation65_spill] sm:$0xff]  ;;  %v5014_v21 = vsub.f32 %v4916_v37, %v6979_v13  ;;  %v5032_v13 = vsub.f32 %v7503_v9, %v4971_v53  ;;  %v5092_v31 = vand.u32 4294901760, %v7521_v17 }
  0xf0   : > { %940 = vmatprep.subr.mxu0 %v7487_v23  ;;  %7489 = vst [vmem:[#allocation152_spill] sm:$0xff] %v4929_v26  ;;  %1034 = vmatprep.subr.mxu1 %v7441_v7  ;;  %v4943_v12 = vand.u32 4294901760, %v7494_v56  ;;  %v4956_v7 = vsub.f32 %v4881_v32, %v6980_v15  ;;  %7507 = vst [vmem:[#allocation157_spill] sm:$0xff] %v4985_v24  ;;  %v6981_v19 = vand.u32 4294901760, %v4934_v8  ;;  %v1221_v15 = vand.u32 4294901760, %v4982_v41 }
  0xf1   : > { %944 = vmatpush1.msra.mxu0 %v7491_v0  ;;  %1036 = vmatpush1.msra.mxu1 %v7496_v46  ;;  %v4990_v23 = vsub.f32 %v7488_v36, %v4929_v26  ;;  %v4997_v0 = vsub.f32 %v4908_v14, %v6976_v42  ;;  %v5021_v42 = vsub.f32 %v7498_v5, %v4959_v10  ;;  %v7514_v5 = vld [vmem:[#allocation53_spill] sm:$0xff]  ;;  %v7525_v36 = vld [vmem:[#allocation48_spill] sm:$0xff] }
  0xf2   : > { %7495 = vst [vmem:[#allocation154_spill] sm:$0xff] %v4943_v12  ;;  %948 = vmatprep.subr.mxu0 %v7497_v25  ;;  %1038 = vmatprep.subr.mxu1 %v7500_v18  ;;  %v5002_v25 = vsub.f32 %v7492_v60, %v4940_v63  ;;  %v5006_v18 = vsub.f32 %v7494_v56, %v4943_v12  ;;  %v5061_v9 = vand.u32 4294901760, %v7514_v5  ;;  %7522 = vst [vmem:[#allocation165_spill] sm:$0xff] %v5092_v31 }
  0xf3   : > { %952 = vmatpush1.msra.mxu0 %v7502_v6  ;;  %985 = vmatprep.mubr.f32.mxu0 %v7428_v2  ;;  %v7509_v6 = vld [vmem:[#allocation57_spill] sm:$0xff]  ;;  %v5045_v4 = vsub.f32 %v7506_v62, %v4985_v24  ;;  %v1227_v46 = vand.u32 4294901760, %v4997_v0  ;;  %v5109_v39 = vand.u32 4294901760, %v7525_v36  ;;  %v7532_v60 = vand.u32 4294901760, %v5032_v13 }
  0xf4   : > { %1040 = vmatpush1.msra.mxu1 %v7505_v61  ;;  %987 = vmatmul.mubr.f32.vlgmr.msra.gmra.mxu0 %v7508_v16  ;;  %v5017_v61 = vand.u32 4294901760, %v7509_v6  ;;  %7515 = vst [vmem:[#allocation160_spill] sm:$0xff] %v5061_v9  ;;  %v7524_v33 = vand.u32 4294901760, %v5006_v18  ;;  %v5135_v45 = vsub.f32 %v7514_v5, %v5061_v9 }
  0xf5   : > { %1042 = vmatprep.subr.mxu1 %v7443_v3  ;;  %1098 = vmatprep.subr.mxu0 %v4853_v22  ;;  %v1209_v3 = vand.u32 4294901760, %v4956_v7  ;;  %v5027_v7 = vand.u32 4294901760, %v7511_v30  ;;  %7526 = vst [vmem:[#allocation166_spill] sm:$0xff] %v5109_v39  ;;  %v5130_v62 = vsub.f32 %v5032_v13, %v7532_v60 }
  0xf6   : > { %1044 = vmatpush1.msra.mxu1 %v7446_v51  ;;  %7510 = vst [vmem:[#allocation158_spill] sm:$0xff] %v5017_v61  ;;  %1100 = vmatpush1.msra.mxu0 %v4859_v34  ;;  %v1215_v51 = vand.u32 4294901760, %v4968_v35  ;;  %v1233_v35 = vand.u32 4294901760, %v5014_v21  ;;  %v5066_v0 = vsub.f32 %v7509_v6, %v5017_v61  ;;  %v7520_v6 = vand.u32 4294901760, %v4990_v23 }
  0xf7   : > { %1046 = vmatprep.subr.mxu1 %v7448_v44  ;;  %7512 = vst [vmem:[#allocation159_spill] sm:$0xff] %v5027_v7  ;;  %1102 = vmatprep.subr.mxu0 %v4865_v55  ;;  %v5040_v44 = vsub.f32 %v4934_v8, %v6981_v19  ;;  %v7527_v19 = vand.u32 4294901760, %v5021_v42 }
  0xf8   : > { %1048 = vmatpush1.msra.mxu1 %v7450_v11  ;;  %1104 = vmatpush1.msra.mxu0 %v4871_v43  ;;  %v7513_v11 = vand.u32 4294901760, %v4948_v54 }
  0xf9   : > { %1050 = vmatprep.subr.mxu1 %v7452_v58  ;;  %1106 = vmatprep.subr.mxu0 %v4877_v38  ;;  %v5081_v58 = vsub.f32 %v7511_v30, %v5027_v7 }
  0xfa   : > { %v5053_v41 = vsub.f32 %v4948_v54, %v7513_v11  ;;  %1052 = vmatpush1.msra.mxu1 %v4610_v40  ;;  %1108 = vmatpush1.msra.mxu0 %v4894_v59  ;;  %v7516_v11 = vand.u32 4294901760, %v4975_v50  ;;  %v7517_v40 = vld [vmem:[#allocation52_spill] sm:$0xff] }
  0xfb   : > { %1054 = vmatprep.subr.mxu1 %v4622_v47  ;;  %v5076_v21 = vand.u32 4294901760, %v7517_v40  ;;  %7519 = vst [vmem:[#allocation150_spill] sm:$0xff] %v5081_v58  ;;  %1110 = vmatprep.subr.mxu0 %v4904_v29  ;;  %v1239_v47 = vand.u32 4294901760, %v5040_v44 }
  0xfc   : > { %v5073_v1 = vsub.f32 %v4975_v50, %v7516_v11  ;;  %1056 = vmatpush1.msra.mxu1 %v4631_v27  ;;  %v5089_v11 = vsub.f32 %v4990_v23, %v7520_v6  ;;  %1089 = vmatprep.mubr.f32.mxu1 %v7428_v2  ;;  %v1245_v30 = vand.u32 4294901760, %v5053_v41  ;;  %v7523_v27 = vand.u32 4294901760, %v5002_v25 }
  0xfd   : > { %7518 = vst [vmem:[#allocation164_spill] sm:$0xff] %v5076_v21  ;;  %1112 = vmatpush1.msra.mxu0 %v4922_v28  ;;  %v5106_v6 = vsub.f32 %v5006_v18, %v7524_v33  ;;  %1091 = vmatmul.mubr.f32.vlgmr.msra.gmra.mxu1 %v7508_v16  ;;  %v5116_v41 = vsub.f32 %v5021_v42, %v7527_v19  ;;  %v7533_v33 = vand.u32 4294901760, %v5045_v4 }
  0xfe   : > { %v5101_v44 = vsub.f32 %v5002_v25, %v7523_v27  ;;  %1114 = vmatprep.subr.mxu0 %v4929_v26  ;;  %v5119_v27 = vand.u32 4294901760, %v7528_v48  ;;  %1210 = vmatprep.subr.mxu1 %v1209_v3  ;;  %v1251_v56 = vand.u32 4294901760, %v5073_v1  ;;  %v1257_v3 = vand.u32 4294901760, %v5089_v11  ;;  %v7536_v11 = vld [vmem:[#allocation40_spill] sm:$0xff] }
  0xff   : > { %1116 = vmatpush1.msra.mxu0 %v4940_v63  ;;  %1216 = vmatpush1.msra.mxu1 %v1215_v51  ;;  %v5142_v1 = vsub.f32 %v5045_v4, %v7533_v33  ;;  %v7534_v63 = vld [vmem:[#allocation41_spill] sm:$0xff]  ;;  %v5149_v60 = vsub.f32 %v7517_v40, %v5076_v21  ;;  %v1269_v19 = vand.u32 4294901760, %v5106_v6  ;;  %v5155_v5 = vand.u32 4294901760, %v7536_v11 }
 0x100   : > { %7529 = vst [vmem:[#allocation167_spill] sm:$0xff] %v5119_v27  ;;  %1118 = vmatprep.subr.mxu0 %v4943_v12  ;;  %v5145_v26 = vand.u32 4294901760, %v7534_v63  ;;  %1222 = vmatprep.subr.mxu1 %v1221_v15  ;;  %v1263_v51 = vand.u32 4294901760, %v5101_v44  ;;  %v5159_v33 = vsub.f32 %v7521_v17, %v5092_v31  ;;  %v1275_v40 = vand.u32 4294901760, %v5116_v41  ;;  %v7540_v44 = vld [vmem:[#allocation37_spill] sm:$0xff] }
 0x101   : > { %7535 = vst [vmem:[#allocation172_spill] sm:$0xff] %v5149_v60  ;;  %1120 = vmatpush1.msra.mxu0 %v4959_v10  ;;  %7537 = vst [vmem:[#allocation161_spill] sm:$0xff] %v5155_v5  ;;  %1228 = vmatpush1.msra.mxu1 %v1227_v46  ;;  %v7539_v15 = vand.u32 4294901760, %v5066_v0  ;;  %v5169_v12 = vand.u32 4294901760, %v7540_v44  ;;  %v5173_v6 = vsub.f32 %v7525_v36, %v5109_v39  ;;  %v1281_v46 = vand.u32 4294901760, %v5130_v62  ;;  %v7542_v36 = vld [vmem:[#allocation36_spill] sm:$0xff] }
 0x102   : > { %7538 = vst [vmem:[#allocation162_spill] sm:$0xff] %v5159_v33  ;;  %1122 = vmatprep.subr.mxu0 %v4971_v53  ;;  %1234 = vmatprep.subr.mxu1 %v1233_v35  ;;  %v7541_v17 = vand.u32 4294901760, %v5081_v58  ;;  %v5185_v53 = vsub.f32 %v7528_v48, %v5119_v27  ;;  %v1287_v35 = vand.u32 4294901760, %v5142_v1  ;;  %v5207_v1 = vsub.f32 %v7534_v63, %v5145_v26 }
 0x103   : > { %v5166_v10 = vsub.f32 %v5066_v0, %v7539_v15  ;;  %1124 = vmatpush1.msra.mxu0 %v4985_v24  ;;  %1240 = vmatpush1.msra.mxu1 %v1239_v47  ;;  %v5190_v24 = vand.u32 4294901760, %v7542_v36  ;;  %v7543_v15 = vld [vmem:[#allocation33_spill] sm:$0xff]  ;;  %v5217_v47 = vsub.f32 %v7536_v11, %v5155_v5  ;;  %v7548_v11 = vand.u32 4294901760, %v5149_v60 }
 0x104   : > { %v5180_v41 = vsub.f32 %v5081_v58, %v7541_v17  ;;  %1126 = vmatprep.subr.mxu0 %v5017_v61  ;;  %v5195_v17 = vsub.f32 %v7530_v49, %v5122_v52  ;;  %1246 = vmatprep.subr.mxu1 %v1245_v30  ;;  %v5199_v48 = vand.u32 4294901760, %v7543_v15  ;;  %v7544_v61 = vld [vmem:[#allocation32_spill] sm:$0xff]  ;;  %v7545_v49 = vld [vmem:[#allocation29_spill] sm:$0xff]  ;;  %v5227_v30 = vsub.f32 %v7540_v44, %v5169_v12 }
 0x105   : > { %1128 = vmatpush1.msra.mxu0 %v5027_v7  ;;  %v5203_v28 = vand.u32 4294901760, %v7544_v61  ;;  %1252 = vmatpush1.msra.mxu1 %v1251_v56  ;;  %v1293_v62 = vand.u32 4294901760, %v5166_v10  ;;  %v5213_v7 = vand.u32 4294901760, %v7545_v49  ;;  %v7546_v56 = vand.u32 4294901760, %v5135_v45  ;;  %v7551_v44 = vld [vmem:[#allocation25_spill] sm:$0xff] }
 0x106   : > { %1130 = vmatprep.subr.mxu0 %v5061_v9  ;;  %1258 = vmatprep.subr.mxu1 %v1257_v3  ;;  %v1299_v63 = vand.u32 4294901760, %v5180_v41  ;;  %7547 = vst [vmem:[#allocation174_spill] sm:$0xff] %v5227_v30  ;;  %v1310_v3 = vsub.f32 %v5149_v60, %v7548_v11  ;;  %v5251_v60 = vsub.f32 %v7543_v15, %v5199_v48 }
 0x107   : > { %1132 = vmatpush1.msra.mxu0 %v5076_v21  ;;  %v1304_v9 = vsub.f32 %v5135_v45, %v7546_v56  ;;  %1264 = vmatpush1.msra.mxu1 %v1263_v51  ;;  %v7549_v21 = vld [vmem:[#allocation28_spill] sm:$0xff]  ;;  %v5239_v56 = vsub.f32 %v7542_v36, %v5190_v24  ;;  %v7550_v51 = vand.u32 4294901760, %v5159_v33 }
 0x108   : > { %1134 = vmatprep.subr.mxu0 %v5092_v31  ;;  %v5234_v58 = vand.u32 4294901760, %v7549_v21  ;;  %1270 = vmatprep.subr.mxu1 %v1269_v19  ;;  %v5246_v31 = vand.u32 4294901760, %v7551_v44  ;;  %v7552_v19 = vand.u32 4294901760, %v5173_v6  ;;  %v7553_v36 = vld [vmem:[#allocation24_spill] sm:$0xff] }
 0x109   : > { %1136 = vmatpush1.msra.mxu0 %v5109_v39  ;;  %v1316_v10 = vsub.f32 %v5159_v33, %v7550_v51  ;;  %1276 = vmatpush1.msra.mxu1 %v1275_v40  ;;  %v5258_v39 = vand.u32 4294901760, %v7553_v36  ;;  %v5263_v33 = vsub.f32 %v7544_v61, %v5203_v28  ;;  %v1305_v11 = vand.u32 4294901760, %v1304_v9 }
 0x10a   : > { %1138 = vmatprep.subr.mxu0 %v5119_v27  ;;  %v1322_v41 = vsub.f32 %v5173_v6, %v7552_v19  ;;  %1282 = vmatprep.subr.mxu1 %v1281_v46  ;;  %v7555_v40 = vand.u32 4294901760, %v5185_v53  ;;  %v5272_v19 = vsub.f32 %v7545_v49, %v5213_v7  ;;  %v1311_v51 = vand.u32 4294901760, %v1310_v3 }
 0x10b   : > { %7554 = vst [vmem:[#allocation163_spill] sm:$0xff] %v5263_v33  ;;  %1140 = vmatpush1.msra.mxu0 %v5122_v52  ;;  %1288 = vmatpush1.msra.mxu1 %v1287_v35  ;;  %v7556_v61 = vand.u32 4294901760, %v5195_v17  ;;  %v5281_v52 = vsub.f32 %v7549_v21, %v5234_v58  ;;  %v7557_v27 = vand.u32 4294901760, %v5207_v1  ;;  %v5290_v49 = vsub.f32 %v7551_v44, %v5246_v31 }
 0x10c   : > { %v1328_v15 = vsub.f32 %v5185_v53, %v7555_v40  ;;  %1142 = vmatprep.subr.mxu0 %v5145_v26  ;;  %1294 = vmatprep.subr.mxu1 %v1293_v62  ;;  %v1317_v40 = vand.u32 4294901760, %v1316_v10  ;;  %v7558_v9 = vand.u32 4294901760, %v5217_v47  ;;  %v5299_v21 = vsub.f32 %v7553_v36, %v5258_v39 }
 0x10d   : > { %v1334_v46 = vsub.f32 %v5195_v17, %v7556_v61  ;;  %1144 = vmatpush1.msra.mxu0 %v5155_v5  ;;  %v1340_v35 = vsub.f32 %v5207_v1, %v7557_v27  ;;  %1300 = vmatpush1.msra.mxu1 %v1299_v63  ;;  %v1323_v61 = vand.u32 4294901760, %v1322_v41  ;;  %v7560_v3 = vand.u32 4294901760, %v5227_v30 }
 0x10e   : > { %1146 = vmatprep.subr.mxu0 %v5169_v12  ;;  %v1346_v62 = vsub.f32 %v5217_v47, %v7558_v9  ;;  %7559 = vst [vmem:[#allocation175_spill] sm:$0xff] %v5299_v21  ;;  %1306 = vmatprep.subr.mxu1 %v1305_v11  ;;  %v1329_v27 = vand.u32 4294901760, %v1328_v15  ;;  %v7561_v10 = vand.u32 4294901760, %v5239_v56  ;;  %v7562_v11 = vand.u32 4294901760, %v5251_v60 }
 0x10f   : > { %1148 = vmatpush1.msra.mxu0 %v5190_v24  ;;  %v1352_v63 = vsub.f32 %v5227_v30, %v7560_v3  ;;  %1312 = vmatpush1.msra.mxu1 %v1311_v51  ;;  %v1335_v9 = vand.u32 4294901760, %v1334_v46  ;;  %v1341_v15 = vand.u32 4294901760, %v1340_v35  ;;  %v7563_v46 = vand.u32 4294901760, %v5263_v33 }
 0x110   : > { %1150 = vmatprep.subr.mxu0 %v5199_v48  ;;  %v1358_v44 = vsub.f32 %v5239_v56, %v7561_v10  ;;  %1318 = vmatprep.subr.mxu1 %v1317_v40  ;;  %v1364_v3 = vsub.f32 %v5251_v60, %v7562_v11  ;;  %v1347_v51 = vand.u32 4294901760, %v1346_v62  ;;  %v7050_v36 = vand.u32 4294901760, %v5299_v21 }
 0x111   : > { %1152 = vmatpush1.msra.mxu0 %v5203_v28  ;;  %1324 = vmatpush1.msra.mxu1 %v1323_v61  ;;  %v1370_v10 = vsub.f32 %v5263_v33, %v7563_v46  ;;  %v1353_v40 = vand.u32 4294901760, %v1352_v63  ;;  %v7564_v35 = vand.u32 4294901760, %v5272_v19  ;;  %v7565_v62 = vand.u32 4294901760, %v5281_v52 }
 0x112   : > { %1154 = vmatprep.subr.mxu0 %v5213_v7  ;;  %1330 = vmatprep.subr.mxu1 %v1329_v27  ;;  %v1359_v61 = vand.u32 4294901760, %v1358_v44  ;;  %v1365_v46 = vand.u32 4294901760, %v1364_v3  ;;  %v7566_v27 = vand.u32 4294901760, %v5290_v49  ;;  %v1394_v44 = vsub.f32 %v5299_v21, %v7050_v36  ;;  %v7583_v36 = vld [vmem:[#allocation166_spill] sm:$0xff] }
 0x113   : > { %1156 = vmatpush1.msra.mxu0 %v5234_v58  ;;  %v1376_v11 = vsub.f32 %v5272_v19, %v7564_v35  ;;  %1336 = vmatpush1.msra.mxu1 %v1335_v9  ;;  %v1382_v41 = vsub.f32 %v5281_v52, %v7565_v62  ;;  %v1371_v35 = vand.u32 4294901760, %v1370_v10  ;;  %v7569_v10 = vld [vmem:[#allocation151_spill] sm:$0xff] }
 0x114   : > { %1158 = vmatprep.subr.mxu0 %v5246_v31  ;;  %1342 = vmatprep.subr.mxu1 %v1341_v15  ;;  %v1388_v63 = vsub.f32 %v5290_v49, %v7566_v27  ;;  %v7567_v15 = vld [vmem:[#allocation173_spill] sm:$0xff]  ;;  %v7574_v27 = vld [vmem:[#allocation154_spill] sm:$0xff] }
 0x115   : > { %1160 = vmatpush1.msra.mxu0 %v5258_v39  ;;  %1348 = vmatpush1.msra.mxu1 %v1347_v51  ;;  %v1377_v9 = vand.u32 4294901760, %v1376_v11  ;;  %v1383_v3 = vand.u32 4294901760, %v1382_v41  ;;  %v1395_v51 = vand.u32 4294901760, %v1394_v44  ;;  %v7568_v41 = vld [vmem:[#allocation150_spill] sm:$0xff]  ;;  %v7571_v11 = vld [vmem:[#allocation172_spill] sm:$0xff]  ;;  %v7577_v44 = vld [vmem:[#allocation157_spill] sm:$0xff] }
 0x116   : > { %1193 = vmatprep.mubr.f32.mxu0 %v7428_v2  ;;  %1354 = vmatprep.subr.mxu1 %v1353_v40  ;;  %v1389_v62 = vand.u32 4294901760, %v1388_v63  ;;  %v7570_v40 = vld [vmem:[#allocation152_spill] sm:$0xff]  ;;  %v7575_v63 = vld [vmem:[#allocation155_spill] sm:$0xff] }
 0x117   : > { %1439 = vmatprep.subr.mxu0 %v4881_v32  ;;  %1199 = vmatmul.mubr.f32.vlgmr.msra.gmra.mxu0 %v7567_v15  ;;  %v7579_v15 = vld [vmem:[#allocation159_spill] sm:$0xff] }
 0x118   : > { %1360 = vmatpush1.msra.mxu1 %v1359_v61  ;;  %1442 = vmatpush1.msra.mxu0 %v4888_v57  ;;  %v7572_v61 = vld [vmem:[#allocation153_spill] sm:$0xff] }
 0x119   : > { %1366 = vmatprep.subr.mxu1 %v1365_v46  ;;  %1445 = vmatprep.subr.mxu0 %v4898_v20  ;;  %v7573_v46 = vld [vmem:[#allocation162_spill] sm:$0xff] }
 0x11a   : > { %1372 = vmatpush1.msra.mxu1 %v1371_v35  ;;  %1448 = vmatpush1.msra.mxu0 %v4908_v14  ;;  %v7576_v35 = vld [vmem:[#allocation156_spill] sm:$0xff] }
 0x11b   : > { %1378 = vmatprep.subr.mxu1 %v1377_v9  ;;  %1451 = vmatprep.subr.mxu0 %v4916_v37  ;;  %v7578_v9 = vld [vmem:[#allocation158_spill] sm:$0xff] }
 0x11c   : > { %1384 = vmatpush1.msra.mxu1 %v1383_v3  ;;  %1454 = vmatpush1.msra.mxu0 %v4934_v8  ;;  %v7580_v3 = vld [vmem:[#allocation160_spill] sm:$0xff] }
 0x11d   : > { %1390 = vmatprep.subr.mxu1 %v1389_v62  ;;  %1457 = vmatprep.subr.mxu0 %v4948_v54  ;;  %v7581_v62 = vld [vmem:[#allocation164_spill] sm:$0xff] }
 0x11e   : > { %1396 = vmatpush1.msra.mxu1 %v1395_v51  ;;  %1429 = vmatprep.mubr.f32.mxu1 %v7428_v2  ;;  %v7582_v51 = vld [vmem:[#allocation165_spill] sm:$0xff] }
 0x11f   : > { %1460 = vmatpush1.msra.mxu0 %v4975_v50  ;;  %1431 = vmatmul.mubr.f32.vlgmr.msra.gmra.mxu1 %v7508_v16  ;;  %v7584_v16 = vld [vmem:[#allocation167_spill] sm:$0xff] }
 0x120   : > { %1463 = vmatprep.subr.mxu0 %v4990_v23  ;;  %1575 = vmatprep.subr.mxu1 %v4853_v22 }
 0x121   : > { %1466 = vmatpush1.msra.mxu0 %v5002_v25  ;;  %1577 = vmatpush1.msra.mxu1 %v4859_v34 }
 0x122   : > { %1469 = vmatprep.subr.mxu0 %v5006_v18  ;;  %1579 = vmatprep.subr.mxu1 %v4865_v55 }
 0x123   : > { %1472 = vmatpush1.msra.mxu0 %v5021_v42  ;;  %1581 = vmatpush1.msra.mxu1 %v4871_v43 }
 0x124   : > { %1475 = vmatprep.subr.mxu0 %v5032_v13  ;;  %1583 = vmatprep.subr.mxu1 %v4877_v38 }
 0x125   : > { %1478 = vmatpush1.msra.mxu0 %v5045_v4  ;;  %1585 = vmatpush1.msra.mxu1 %v4894_v59 }
 0x126   : > { %1481 = vmatprep.subr.mxu0 %v5066_v0  ;;  %1587 = vmatprep.subr.mxu1 %v4904_v29 }
 0x127   : > { %1484 = vmatpush1.msra.mxu0 %v7568_v41  ;;  %1589 = vmatpush1.msra.mxu1 %v7569_v10 }
 0x128   : > { %1487 = vmatprep.subr.mxu0 %v5135_v45  ;;  %1591 = vmatprep.subr.mxu1 %v7570_v40 }
 0x129   : > { %1490 = vmatpush1.msra.mxu0 %v7571_v11  ;;  %1593 = vmatpush1.msra.mxu1 %v7572_v61 }
 0x12a   : > { %1493 = vmatprep.subr.mxu0 %v7573_v46  ;;  %1595 = vmatprep.subr.mxu1 %v7574_v27 }
 0x12b   : > { %1496 = vmatpush1.msra.mxu0 %v5173_v6  ;;  %1597 = vmatpush1.msra.mxu1 %v7575_v63 }
 0x12c   : > { %1499 = vmatprep.subr.mxu0 %v5185_v53  ;;  %1599 = vmatprep.subr.mxu1 %v7576_v35 }
 0x12d   : > { %1502 = vmatpush1.msra.mxu0 %v5195_v17  ;;  %1601 = vmatpush1.msra.mxu1 %v7577_v44 }
 0x12e   : > { %1505 = vmatprep.subr.mxu0 %v5207_v1  ;;  %1603 = vmatprep.subr.mxu1 %v7578_v9 }
 0x12f   : > { %1508 = vmatpush1.msra.mxu0 %v5217_v47  ;;  %1605 = vmatpush1.msra.mxu1 %v7579_v15 }
 0x130   : > { %1511 = vmatprep.subr.mxu0 %v5227_v30  ;;  %1607 = vmatprep.subr.mxu1 %v7580_v3  ;;  %v7585_v30 = vld [vmem:[#allocation168_spill] sm:$0xff] }
 0x131   : > { %1514 = vmatpush1.msra.mxu0 %v5239_v56  ;;  %1609 = vmatpush1.msra.mxu1 %v7581_v62 }
 0x132   : > { %1517 = vmatprep.subr.mxu0 %v5251_v60  ;;  %1611 = vmatprep.subr.mxu1 %v7582_v51 }
 0x133   : > { %1520 = vmatpush1.msra.mxu0 %v5263_v33  ;;  %1613 = vmatpush1.msra.mxu1 %v7583_v36  ;;  %v7586_v33 = vld [vmem:[#allocation170_spill] sm:$0xff] }
 0x134   : > { %1523 = vmatprep.subr.mxu0 %v5272_v19  ;;  %1615 = vmatprep.subr.mxu1 %v7584_v16  ;;  %v7587_v16 = vand.u32 4294901760, %v4881_v32  ;;  %v7591_v32 = vand.u32 4294901760, %v4916_v37  ;;  %v7596_v37 = vand.u32 4294901760, %v4990_v23  ;;  %v7600_v23 = vand.u32 4294901760, %v5032_v13 }
 0x135   : > { %1526 = vmatpush1.msra.mxu0 %v5281_v52  ;;  %1617 = vmatpush1.msra.mxu1 %v7585_v30  ;;  %v7588_v30 = vand.u32 4294901760, %v4888_v57  ;;  %v7592_v57 = vand.u32 4294901760, %v4934_v8  ;;  %v7597_v8 = vand.u32 4294901760, %v5002_v25  ;;  %v7610_v25 = vand.u32 4294901760, %v5185_v53 }
 0x136   : > { %1529 = vmatprep.subr.mxu0 %v5290_v49  ;;  %1619 = vmatprep.subr.mxu1 %v5145_v26  ;;  %v7615_v53 = vand.u32 4294901760, %v5217_v47  ;;  %v7620_v47 = vand.u32 4294901760, %v5239_v56 }
 0x137   : > { %1532 = vmatpush1.msra.mxu0 %v5299_v21  ;;  %1565 = vmatprep.mubr.f32.mxu0 %v7428_v2  ;;  %v7589_v21 = vand.u32 4294901760, %v4898_v20  ;;  %v7593_v20 = vand.u32 4294901760, %v4948_v54  ;;  %v7598_v54 = vand.u32 4294901760, %v5006_v18  ;;  %v7611_v18 = vand.u32 4294901760, %v5195_v17  ;;  %v7616_v17 = vld [vmem:[#allocation139_spill] sm:$0xff] }
 0x138   : > { %1621 = vmatpush1.msra.mxu1 %v5155_v5  ;;  %1568 = vmatmul.mubr.f32.vlgmr.msra.gmra.mxu0 %v7586_v33  ;;  %v7590_v5 = vand.u32 4294901760, %v4908_v14  ;;  %v7594_v14 = vand.u32 4294901760, %v4975_v50  ;;  %v7599_v50 = vand.u32 4294901760, %v5021_v42  ;;  %v7608_v42 = vand.u32 4294901760, %v5173_v6  ;;  %v7614_v6 = vld [vmem:[#allocation142_spill] sm:$0xff] }
 0x139   : > { %1623 = vmatprep.subr.mxu1 %v5169_v12  ;;  %1683 = vmatprep.subr.mxu0 %v7587_v16  ;;  %v7603_v16 = vld [vmem:[#allocation147_spill] sm:$0xff]  ;;  %v7613_v33 = vand.u32 4294901760, %v5207_v1  ;;  %v7617_v1 = vld [vmem:[#allocation174_spill] sm:$0xff] }
 0x13a   : > { %1625 = vmatpush1.msra.mxu1 %v5190_v24  ;;  %1687 = vmatpush1.msra.mxu0 %v7588_v30  ;;  %v5482_v30 = vand.u32 4294901760, %v7614_v6 }
 0x13b   : > { %1627 = vmatprep.subr.mxu1 %v5199_v48  ;;  %1691 = vmatprep.subr.mxu0 %v7589_v21 }
 0x13c   : > { %1629 = vmatpush1.msra.mxu1 %v5203_v28  ;;  %1695 = vmatpush1.msra.mxu0 %v7590_v5  ;;  %v7595_v5 = vld [vmem:[#allocation171_spill] sm:$0xff] }
 0x13d   : > { %1631 = vmatprep.subr.mxu1 %v5213_v7  ;;  %1699 = vmatprep.subr.mxu0 %v7591_v32  ;;  %v7625_v32 = vld [vmem:[#allocation163_spill] sm:$0xff] }
 0x13e   : > { %1633 = vmatpush1.msra.mxu1 %v5234_v58  ;;  %1703 = vmatpush1.msra.mxu0 %v7592_v57  ;;  %v7626_v57 = vand.u32 4294901760, %v7625_v32 }
 0x13f   : > { %1635 = vmatprep.subr.mxu1 %v5246_v31  ;;  %1707 = vmatprep.subr.mxu0 %v7593_v20 }
 0x140   : > { %1637 = vmatpush1.msra.mxu1 %v5258_v39  ;;  %1670 = vmatprep.mubr.f32.mxu1 %v7428_v2 }
 0x141   : > { %1711 = vmatpush1.msra.mxu0 %v7594_v14  ;;  %1674 = vmatmul.mubr.f32.vlgmr.msra.gmra.mxu1 %v7595_v5  ;;  %v7629_v5 = vand.u32 4294901760, %v5272_v19 }
 0x142   : > { %1715 = vmatprep.subr.mxu0 %v7596_v37  ;;  %1849 = vmatprep.subr.mxu1 %v4853_v22  ;;  %v7601_v22 = vand.u32 4294901760, %v5045_v4  ;;  %v7607_v4 = vand.u32 4294901760, %v7573_v46  ;;  %v7630_v37 = vld [vmem:[#allocation130_spill] sm:$0xff] }
 0x143   : > { %1719 = vmatpush1.msra.mxu0 %v7597_v8  ;;  %1851 = vmatpush1.msra.mxu1 %v4859_v34  ;;  %v7602_v34 = vand.u32 4294901760, %v5066_v0  ;;  %v7612_v0 = vld [vmem:[#allocation143_spill] sm:$0xff]  ;;  %v5541_v8 = vand.u32 4294901760, %v7630_v37 }
 0x144   : > { %1723 = vmatprep.subr.mxu0 %v7598_v54  ;;  %1853 = vmatprep.subr.mxu1 %v4865_v55  ;;  %v5445_v55 = vand.u32 4294901760, %v7603_v16  ;;  %v5476_v21 = vand.u32 4294901760, %v7612_v0 }
 0x145   : > { %1727 = vmatpush1.msra.mxu0 %v7599_v50  ;;  %1855 = vmatpush1.msra.mxu1 %v4871_v43  ;;  %v7604_v43 = vand.u32 4294901760, %v7568_v41  ;;  %7631 = vst [vmem:[#allocation151_spill] sm:$0xff] %v5541_v8 }
 0x146   : > { %1731 = vmatprep.subr.mxu0 %v7600_v23  ;;  %1857 = vmatprep.subr.mxu1 %v4877_v38  ;;  %v7605_v38 = vand.u32 4294901760, %v5135_v45  ;;  %v7609_v45 = vld [vmem:[#allocation146_spill] sm:$0xff]  ;;  %v7634_v23 = vld [vmem:[#allocation167_spill] sm:$0xff] }
 0x147   : > { %1735 = vmatpush1.msra.mxu0 %v7601_v22  ;;  %1859 = vmatpush1.msra.mxu1 %v4894_v59  ;;  %v7606_v59 = vand.u32 4294901760, %v7571_v11  ;;  %v5467_v13 = vand.u32 4294901760, %v7609_v45  ;;  %v7618_v11 = vand.u32 4294901760, %v7617_v1  ;;  %v7635_v22 = vand.u32 4294901760, %v5281_v52  ;;  %v7640_v52 = vld [vmem:[#allocation123_spill] sm:$0xff] }
 0x148   : > { %1739 = vmatprep.subr.mxu0 %v7602_v34  ;;  %1861 = vmatprep.subr.mxu1 %v4904_v29  ;;  %v5461_v29 = vsub.f32 %v7603_v16, %v5445_v55  ;;  %v7636_v34 = vld [vmem:[#allocation126_spill] sm:$0xff] }
 0x149   : > { %1743 = vmatpush1.msra.mxu0 %v7604_v43  ;;  %1863 = vmatpush1.msra.mxu1 %v7569_v10  ;;  %v5489_v10 = vand.u32 4294901760, %v7616_v17  ;;  %v5555_v19 = vand.u32 4294901760, %v7636_v34  ;;  %v7660_v16 = vld [vmem:[#allocation114_spill] sm:$0xff] }
 0x14a   : > { %1747 = vmatprep.subr.mxu0 %v7605_v38  ;;  %1865 = vmatprep.subr.mxu1 %v7570_v40  ;;  %v7058_v41 = vand.u32 4294901760, %v5461_v29  ;;  %v5493_v40 = vsub.f32 %v7609_v45, %v5467_v13  ;;  %v7638_v38 = vld [vmem:[#allocation168_spill] sm:$0xff] }
 0x14b   : > { %1751 = vmatpush1.msra.mxu0 %v7606_v59  ;;  %1867 = vmatpush1.msra.mxu1 %v7572_v61  ;;  %v7619_v61 = vld [vmem:[#allocation138_spill] sm:$0xff]  ;;  %v5535_v14 = vsub.f32 %v7616_v17, %v5489_v10  ;;  %7637 = vst [vmem:[#allocation172_spill] sm:$0xff] %v5555_v19  ;;  %v7639_v59 = vand.u32 4294901760, %v5290_v49 }
 0x14c   : > { %1755 = vmatprep.subr.mxu0 %v7607_v4  ;;  %1869 = vmatprep.subr.mxu1 %v7574_v27  ;;  %v5499_v46 = vand.u32 4294901760, %v7619_v61  ;;  %v7621_v27 = vld [vmem:[#allocation135_spill] sm:$0xff]  ;;  %v5520_v56 = vsub.f32 %v5461_v29, %v7058_v41  ;;  %v7056_v20 = vand.u32 4294901760, %v5493_v40 }
 0x14d   : > { %1759 = vmatpush1.msra.mxu0 %v7608_v42  ;;  %1871 = vmatpush1.msra.mxu1 %v7575_v63  ;;  %v5505_v63 = vand.u32 4294901760, %v7621_v27  ;;  %v7061_v1 = vand.u32 4294901760, %v5535_v14  ;;  %v7652_v41 = vld [vmem:[#allocation115_spill] sm:$0xff] }
 0x14e   : > { %1763 = vmatprep.subr.mxu0 %v7610_v25  ;;  %1873 = vmatprep.subr.mxu1 %v7576_v35  ;;  %v5509_v35 = vsub.f32 %v7612_v0, %v5476_v21  ;;  %v5548_v50 = vsub.f32 %v7619_v61, %v5499_v46  ;;  %v5567_v25 = vand.u32 4294901760, %v7640_v52  ;;  %v5579_v49 = vsub.f32 %v5493_v40, %v7056_v20 }
 0x14f   : > { %1767 = vmatpush1.msra.mxu0 %v7611_v18  ;;  %1875 = vmatpush1.msra.mxu1 %v7577_v44  ;;  %v7622_v44 = vand.u32 4294901760, %v5251_v60  ;;  %v5559_v43 = vsub.f32 %v7621_v27, %v5505_v63  ;;  %v5616_v20 = vsub.f32 %v7636_v34, %v5555_v19  ;;  %v5627_v4 = vand.u32 4294901760, %v7652_v41  ;;  %v7667_v34 = vld [vmem:[#allocation110_spill] sm:$0xff] }
 0x150   : > { %1771 = vmatprep.subr.mxu0 %v7613_v33  ;;  %1877 = vmatprep.subr.mxu1 %v7578_v9  ;;  %v7623_v9 = vld [vmem:[#allocation134_spill] sm:$0xff]  ;;  %7641 = vst [vmem:[#allocation153_spill] sm:$0xff] %v5567_v25  ;;  %v7642_v33 = vld [vmem:[#allocation175_spill] sm:$0xff]  ;;  %v7654_v0 = vand.u32 4294901760, %v5548_v50  ;;  %v5727_v45 = vand.u32 4294901760, %v7667_v34 }
 0x151   : > { %1775 = vmatpush1.msra.mxu0 %v7615_v53  ;;  %1879 = vmatpush1.msra.mxu1 %v7579_v15  ;;  %v5515_v15 = vand.u32 4294901760, %v7623_v9  ;;  %v7643_v53 = vand.u32 4294901760, %v7642_v33  ;;  %7653 = vst [vmem:[#allocation156_spill] sm:$0xff] %v5627_v4  ;;  %v5631_v33 = vsub.f32 %v7640_v52, %v5567_v25 }
 0x152   : > { %1779 = vmatprep.subr.mxu0 %v7618_v11  ;;  %1881 = vmatprep.subr.mxu1 %v7580_v3  ;;  %v5524_v3 = vsub.f32 %v7614_v6, %v5482_v30  ;;  %v7644_v11 = vld [vmem:[#allocation122_spill] sm:$0xff]  ;;  %7668 = vst [vmem:[#allocation164_spill] sm:$0xff] %v5727_v45 }
 0x153   : > { %1783 = vmatpush1.msra.mxu0 %v7620_v47  ;;  %1883 = vmatpush1.msra.mxu1 %v7581_v62  ;;  %7624 = vst [vmem:[#allocation173_spill] sm:$0xff] %v5515_v15  ;;  %v7627_v62 = vld [vmem:[#allocation131_spill] sm:$0xff]  ;;  %v5571_v18 = vsub.f32 %v7623_v9, %v5515_v15  ;;  %v5583_v47 = vand.u32 4294901760, %v7644_v11 }
 0x154   : > { %1787 = vmatprep.subr.mxu0 %v7622_v44  ;;  %1885 = vmatprep.subr.mxu1 %v7582_v51  ;;  %v5530_v60 = vand.u32 4294901760, %v7627_v62  ;;  %v7632_v51 = vld [vmem:[#allocation127_spill] sm:$0xff]  ;;  %v7059_v42 = vand.u32 4294901760, %v5524_v3 }
 0x155   : > { %1791 = vmatpush1.msra.mxu0 %v7626_v57  ;;  %1887 = vmatpush1.msra.mxu1 %v7583_v36  ;;  %v5544_v54 = vand.u32 4294901760, %v7632_v51  ;;  %v7057_v36 = vand.u32 4294901760, %v5509_v35  ;;  %7645 = vst [vmem:[#allocation162_spill] sm:$0xff] %v5583_v47  ;;  %v7647_v57 = vld [vmem:[#allocation119_spill] sm:$0xff]  ;;  %v5644_v32 = vsub.f32 %v7644_v11, %v5583_v47 }
 0x156   : > { %7628 = vst [vmem:[#allocation150_spill] sm:$0xff] %v5530_v60  ;;  %1795 = vmatprep.subr.mxu0 %v7629_v5  ;;  %1889 = vmatprep.subr.mxu1 %v7634_v23  ;;  %v5587_v44 = vsub.f32 %v7627_v62, %v5530_v60  ;;  %v5593_v5 = vand.u32 4294901760, %v7647_v57  ;;  %v5597_v23 = vsub.f32 %v7630_v37, %v5541_v8  ;;  %v7666_v37 = vand.u32 4294901760, %v5616_v20 }
 0x157   : > { %7633 = vst [vmem:[#allocation152_spill] sm:$0xff] %v5544_v54  ;;  %1799 = vmatpush1.msra.mxu0 %v7635_v22  ;;  %1891 = vmatpush1.msra.mxu1 %v7638_v38  ;;  %v5601_v22 = vsub.f32 %v7632_v51, %v5544_v54  ;;  %v7649_v38 = vld [vmem:[#allocation169_spill] sm:$0xff] }
 0x158   : > { %1803 = vmatprep.subr.mxu0 %v7639_v59  ;;  %1893 = vmatprep.subr.mxu1 %v5145_v26  ;;  %v7646_v26 = vld [vmem:[#allocation161_spill] sm:$0xff]  ;;  %7648 = vst [vmem:[#allocation154_spill] sm:$0xff] %v5593_v5  ;;  %v5608_v59 = vsub.f32 %v5509_v35, %v7057_v36  ;;  %v5657_v36 = vsub.f32 %v7647_v57, %v5593_v5 }
 0x159   : > { %1807 = vmatpush1.msra.mxu0 %v7643_v53  ;;  %1840 = vmatprep.mubr.f32.mxu0 %v7428_v2  ;;  %v7650_v53 = vld [vmem:[#allocation118_spill] sm:$0xff]  ;;  %v7663_v27 = vand.u32 4294901760, %v5601_v22 }
 0x15a   : > { %1895 = vmatpush1.msra.mxu1 %v7646_v26  ;;  %1842 = vmatmul.mubr.f32.vlgmr.msra.gmra.mxu0 %v7649_v38  ;;  %v5612_v26 = vand.u32 4294901760, %v7650_v53  ;;  %v2144_v6 = vand.u32 4294901760, %v5608_v59  ;;  %v7677_v61 = vand.u32 4294901760, %v5657_v36 }
 0x15b   : > { %1897 = vmatprep.subr.mxu1 %v5169_v12  ;;  %2021 = vmatprep.subr.mxu0 %v5445_v55  ;;  %v5623_v12 = vsub.f32 %v5524_v3, %v7059_v42  ;;  %v5639_v42 = vsub.f32 %v5535_v14, %v7061_v1 }
 0x15c   : > { %7651 = vst [vmem:[#allocation155_spill] sm:$0xff] %v5612_v26  ;;  %1899 = vmatpush1.msra.mxu1 %v5190_v24  ;;  %2023 = vmatpush1.msra.mxu0 %v5467_v13  ;;  %v2138_v24 = vand.u32 4294901760, %v5579_v49  ;;  %v5670_v1 = vsub.f32 %v7650_v53, %v5612_v26  ;;  %v5760_v62 = vsub.f32 %v5657_v36, %v7677_v61  ;;  %v7682_v61 = vld [vmem:[#allocation102_spill] sm:$0xff] }
 0x15d   : > { %1901 = vmatprep.subr.mxu1 %v5199_v48  ;;  %2025 = vmatprep.subr.mxu0 %v5476_v21  ;;  %v5651_v48 = vsub.f32 %v5548_v50, %v7654_v0  ;;  %v2150_v49 = vand.u32 4294901760, %v5623_v12  ;;  %v5683_v0 = vsub.f32 %v7652_v41, %v5627_v4  ;;  %v2156_v11 = vand.u32 4294901760, %v5639_v42  ;;  %v7671_v41 = vld [vmem:[#allocation107_spill] sm:$0xff] }
 0x15e   : > { %1903 = vmatpush1.msra.mxu1 %v5203_v28  ;;  %2027 = vmatpush1.msra.mxu0 %v5482_v30  ;;  %v7655_v28 = vand.u32 4294901760, %v5559_v43  ;;  %7656 = vst [vmem:[#allocation157_spill] sm:$0xff] %v5670_v1  ;;  %v5740_v53 = vand.u32 4294901760, %v7671_v41 }
 0x15f   : > { %1905 = vmatprep.subr.mxu1 %v5213_v7  ;;  %2029 = vmatprep.subr.mxu0 %v5489_v10  ;;  %v7657_v7 = vand.u32 4294901760, %v5571_v18  ;;  %7658 = vst [vmem:[#allocation158_spill] sm:$0xff] %v5683_v0  ;;  %v2162_v17 = vand.u32 4294901760, %v5651_v48 }
 0x160   : > { %v5665_v9 = vsub.f32 %v5559_v43, %v7655_v28  ;;  %1907 = vmatpush1.msra.mxu1 %v5234_v58  ;;  %2031 = vmatpush1.msra.mxu0 %v5499_v46  ;;  %v7659_v58 = vand.u32 4294901760, %v5587_v44  ;;  %v7664_v28 = vld [vmem:[#allocation111_spill] sm:$0xff]  ;;  %7672 = vst [vmem:[#allocation165_spill] sm:$0xff] %v5740_v53 }
 0x161   : > { %v5678_v59 = vsub.f32 %v5571_v18, %v7657_v7  ;;  %1909 = vmatprep.subr.mxu1 %v5246_v31  ;;  %v5694_v7 = vand.u32 4294901760, %v7660_v16  ;;  %2033 = vmatprep.subr.mxu0 %v5505_v63  ;;  %v7662_v31 = vand.u32 4294901760, %v5597_v23  ;;  %v5715_v48 = vand.u32 4294901760, %v7664_v28 }
 0x162   : > { %v5691_v12 = vsub.f32 %v5587_v44, %v7659_v58  ;;  %1911 = vmatpush1.msra.mxu1 %v5258_v39  ;;  %v5708_v58 = vsub.f32 %v5601_v22, %v7663_v27  ;;  %1944 = vmatprep.mubr.f32.mxu1 %v7428_v2  ;;  %v2168_v39 = vand.u32 4294901760, %v5665_v9  ;;  %v7669_v9 = vand.u32 4294901760, %v5631_v33 }
 0x163   : > { %7661 = vst [vmem:[#allocation159_spill] sm:$0xff] %v5694_v7  ;;  %v5703_v42 = vsub.f32 %v5597_v23, %v7662_v31  ;;  %2035 = vmatpush1.msra.mxu0 %v5515_v15  ;;  %7665 = vst [vmem:[#allocation160_spill] sm:$0xff] %v5715_v48  ;;  %v5720_v31 = vsub.f32 %v5616_v20, %v7666_v37  ;;  %1946 = vmatmul.mubr.f32.vlgmr.msra.gmra.mxu1 %v7649_v38  ;;  %v2174_v27 = vand.u32 4294901760, %v5678_v59 }
 0x164   : > { %2037 = vmatprep.subr.mxu0 %v5530_v60  ;;  %v5732_v51 = vsub.f32 %v5631_v33, %v7669_v9  ;;  %v7670_v37 = vand.u32 4294901760, %v5520_v56  ;;  %v2180_v38 = vand.u32 4294901760, %v5691_v12  ;;  %v7673_v59 = vand.u32 4294901760, %v5644_v32  ;;  %v7675_v12 = vld [vmem:[#allocation106_spill] sm:$0xff]  ;;  %2116 = vmatprep.mubr.f32.mxu0 %v7428_v2 }
 0x165   : > { %2039 = vmatpush1.msra.mxu0 %v5541_v8  ;;  %v5749_v9 = vsub.f32 %v7660_v16, %v5694_v7  ;;  %v2186_v56 = vand.u32 4294901760, %v5703_v42  ;;  %v5755_v52 = vand.u32 4294901760, %v7675_v12  ;;  %v7680_v42 = vand.u32 4294901760, %v5670_v1  ;;  %v2017_v8 = vld [vmem:[#allocation5] sm:$0x3]  ;;  %2352 = vmatprep.mubr.f32.mxu1 %v7428_v2 }
 0x166   : > { %2133 = vmatprep.subr.mxu1 %v7670_v37  ;;  %v5745_v57 = vsub.f32 %v5644_v32, %v7673_v59  ;;  %2041 = vmatprep.subr.mxu0 %v5544_v54  ;;  %v2192_v37 = vand.u32 4294901760, %v5708_v58  ;;  %v2198_v59 = vand.u32 4294901760, %v5720_v31  ;;  %v5774_v54 = vsub.f32 %v7664_v28, %v5715_v48  ;;  %v7685_v28 = vld [vmem:[#allocation99_spill] sm:$0xff] }
 0x167   : > { %7674 = vst [vmem:[#allocation166_spill] sm:$0xff] %v5749_v9  ;;  %2139 = vmatpush1.msra.mxu1 %v2138_v24  ;;  %7676 = vst [vmem:[#allocation170_spill] sm:$0xff] %v5755_v52  ;;  %2043 = vmatpush1.msra.mxu0 %v5555_v19  ;;  %v7678_v24 = vld [vmem:[#allocation103_spill] sm:$0xff]  ;;  %v5770_v58 = vsub.f32 %v5670_v1, %v7680_v42  ;;  %v5779_v31 = vand.u32 4294901760, %v7682_v61  ;;  %v7684_v19 = vand.u32 4294901760, %v5683_v0 }
 0x168   : > { %2145 = vmatprep.subr.mxu1 %v2144_v6  ;;  %v5765_v16 = vand.u32 4294901760, %v7678_v24  ;;  %7681 = vst [vmem:[#allocation174_spill] sm:$0xff] %v5774_v54  ;;  %2045 = vmatprep.subr.mxu0 %v5567_v25  ;;  %v2204_v6 = vand.u32 4294901760, %v5732_v51  ;;  %v5788_v42 = vsub.f32 %v7667_v34, %v5727_v45  ;;  %v5793_v25 = vand.u32 4294901760, %v7685_v28  ;;  %v7686_v34 = vld [vmem:[#allocation98_spill] sm:$0xff] }
 0x169   : > { %2151 = vmatpush1.msra.mxu1 %v2150_v49  ;;  %7683 = vst [vmem:[#allocation163_spill] sm:$0xff] %v5779_v31  ;;  %v5784_v60 = vsub.f32 %v5683_v0, %v7684_v19  ;;  %2047 = vmatpush1.msra.mxu0 %v5583_v47  ;;  %v2210_v49 = vand.u32 4294901760, %v5745_v57  ;;  %v5798_v15 = vsub.f32 %v7671_v41, %v5740_v53  ;;  %v2216_v19 = vand.u32 4294901760, %v5760_v62  ;;  %v7688_v41 = vld [vmem:[#allocation95_spill] sm:$0xff]  ;;  %v7689_v0 = vld [vmem:[#allocation94_spill] sm:$0xff] }
 0x16a   : > { %7679 = vst [vmem:[#allocation171_spill] sm:$0xff] %v5765_v16  ;;  %2157 = vmatprep.subr.mxu1 %v2156_v11  ;;  %2049 = vmatprep.subr.mxu0 %v5593_v5  ;;  %v5803_v11 = vand.u32 4294901760, %v7686_v34  ;;  %v5807_v57 = vsub.f32 %v7675_v12, %v5755_v52  ;;  %v5809_v47 = vand.u32 4294901760, %v2017_v8  ;;  %v2222_v51 = vand.u32 4294901760, %v5770_v58 }
 0x16b   : > { %2163 = vmatpush1.msra.mxu1 %v2162_v17  ;;  %2051 = vmatpush1.msra.mxu0 %v5612_v26  ;;  %v5814_v17 = vand.u32 4294901760, %v7688_v41  ;;  %v5819_v62 = vsub.f32 %v7678_v24, %v5765_v16  ;;  %v2228_v12 = vand.u32 4294901760, %v5784_v60  ;;  %v5829_v58 = vsub.f32 %v7682_v61, %v5779_v31  ;;  %v7691_v24 = vld [vmem:[#allocation91_spill] sm:$0xff]  ;;  %v7692_v26 = vld [vmem:[#allocation90_spill] sm:$0xff] }
 0x16c   : > { %7687 = vst [vmem:[#allocation167_spill] sm:$0xff] %v5809_v47  ;;  %2169 = vmatprep.subr.mxu1 %v2168_v39  ;;  %2053 = vmatprep.subr.mxu0 %v5627_v4  ;;  %v5824_v39 = vand.u32 4294901760, %v7689_v0  ;;  %v7690_v5 = vand.u32 4294901760, %v5749_v9  ;;  %v5836_v4 = vand.u32 4294901760, %v7691_v24  ;;  %v5841_v1 = vsub.f32 %v7685_v28, %v5793_v25  ;;  %v7696_v28 = vld [vmem:[#allocation87_spill] sm:$0xff] }
 0x16d   : > { %2175 = vmatpush1.msra.mxu1 %v2174_v27  ;;  %2055 = vmatpush1.msra.mxu0 %v5694_v7  ;;  %v5849_v7 = vsub.f32 %v2017_v8, %v5809_v47  ;;  %v7695_v60 = vand.u32 4294901760, %v5774_v54  ;;  %v5865_v8 = vsub.f32 %v7688_v41, %v5814_v17 }
 0x16e   : > { %2181 = vmatprep.subr.mxu1 %v2180_v38  ;;  %v2233_v27 = vsub.f32 %v5749_v9, %v7690_v5  ;;  %2057 = vmatprep.subr.mxu0 %v5715_v48  ;;  %v5845_v38 = vand.u32 4294901760, %v7692_v26  ;;  %v5853_v5 = vsub.f32 %v7686_v34, %v5803_v11  ;;  %v5860_v48 = vand.u32 4294901760, %v7696_v28  ;;  %v7698_v34 = vld [vmem:[#allocation86_spill] sm:$0xff] }
 0x16f   : > { %2187 = vmatpush1.msra.mxu1 %v2186_v56  ;;  %7693 = vst [vmem:[#allocation168_spill] sm:$0xff] %v5849_v7  ;;  %2059 = vmatpush1.msra.mxu0 %v5727_v45  ;;  %v2239_v56 = vsub.f32 %v5774_v54, %v7695_v60  ;;  %v5872_v45 = vand.u32 4294901760, %v7698_v34  ;;  %v5877_v54 = vsub.f32 %v7689_v0, %v5824_v39  ;;  %v7700_v60 = vand.u32 4294901760, %v5807_v57 }
 0x170   : > { %7694 = vst [vmem:[#allocation175_spill] sm:$0xff] %v5853_v5  ;;  %2193 = vmatprep.subr.mxu1 %v2192_v37  ;;  %2061 = vmatprep.subr.mxu0 %v5740_v53  ;;  %v7697_v37 = vand.u32 4294901760, %v5788_v42  ;;  %v2234_v9 = vand.u32 4294901760, %v2233_v27  ;;  %v5893_v0 = vand.u32 4294901760, %v5849_v7 }
 0x171   : > { %2199 = vmatpush1.msra.mxu1 %v2198_v59  ;;  %2063 = vmatpush1.msra.mxu0 %v5755_v52  ;;  %v7699_v59 = vand.u32 4294901760, %v5798_v15  ;;  %v2240_v53 = vand.u32 4294901760, %v2239_v56 }
 0x172   : > { %v2245_v61 = vsub.f32 %v5788_v42, %v7697_v37  ;;  %2205 = vmatprep.subr.mxu1 %v2204_v6  ;;  %v5886_v37 = vsub.f32 %v7691_v24, %v5836_v4  ;;  %2065 = vmatprep.subr.mxu0 %v5765_v16  ;;  %v2257_v6 = vsub.f32 %v5807_v57, %v7700_v60  ;;  %v7705_v16 = vand.u32 4294901760, %v5841_v1 }
 0x173   : > { %v2251_v41 = vsub.f32 %v5798_v15, %v7699_v59  ;;  %2211 = vmatpush1.msra.mxu1 %v2210_v49  ;;  %7701 = vst [vmem:[#allocation161_spill] sm:$0xff] %v5893_v0  ;;  %v5898_v59 = vsub.f32 %v7692_v26, %v5845_v38  ;;  %2067 = vmatpush1.msra.mxu0 %v5779_v31  ;;  %v7702_v49 = vand.u32 4294901760, %v5819_v62  ;;  %v7703_v26 = vand.u32 4294901760, %v5829_v58 }
 0x174   : > { %2217 = vmatprep.subr.mxu1 %v2216_v19  ;;  %v5907_v60 = vsub.f32 %v7696_v28, %v5860_v48  ;;  %2069 = vmatprep.subr.mxu0 %v5793_v25  ;;  %v2246_v27 = vand.u32 4294901760, %v2245_v61  ;;  %v5916_v31 = vsub.f32 %v7698_v34, %v5872_v45  ;;  %v2120_v56 = vsub.f32 %v5849_v7, %v5893_v0 }
 0x175   : > { %v2263_v24 = vsub.f32 %v5819_v62, %v7702_v49  ;;  %2223 = vmatpush1.msra.mxu1 %v2222_v51  ;;  %v2269_v19 = vsub.f32 %v5829_v58, %v7703_v26  ;;  %2071 = vmatpush1.msra.mxu0 %v5803_v11  ;;  %v2252_v49 = vand.u32 4294901760, %v2251_v41  ;;  %v2275_v51 = vsub.f32 %v5841_v1, %v7705_v16 }
 0x176   : > { %7704 = vst [vmem:[#allocation169_spill] sm:$0xff] %v5916_v31  ;;  %2229 = vmatprep.subr.mxu1 %v2228_v12  ;;  %2073 = vmatprep.subr.mxu0 %v5814_v17  ;;  %v2258_v26 = vand.u32 4294901760, %v2257_v6  ;;  %v7706_v28 = vand.u32 4294901760, %v5853_v5  ;;  %v7707_v16 = vand.u32 4294901760, %v5865_v8  ;;  %v7708_v0 = vand.u32 4294901760, %v5877_v54 }
 0x177   : > { %2235 = vmatpush1.msra.mxu1 %v2234_v9  ;;  %2075 = vmatpush1.msra.mxu0 %v5824_v39  ;;  %v2264_v41 = vand.u32 4294901760, %v2263_v24  ;;  %v2270_v6 = vand.u32 4294901760, %v2269_v19  ;;  %v7709_v24 = vand.u32 4294901760, %v5886_v37  ;;  %v7711_v61 = vand.u32 4294901760, %v5898_v59 }
 0x178   : > { %v2281_v12 = vsub.f32 %v5853_v5, %v7706_v28  ;;  %2241 = vmatprep.subr.mxu1 %v2240_v53  ;;  %v2287_v9 = vsub.f32 %v5865_v8, %v7707_v16  ;;  %2077 = vmatprep.subr.mxu0 %v5836_v4  ;;  %v2293_v28 = vsub.f32 %v5877_v54, %v7708_v0  ;;  %v2276_v53 = vand.u32 4294901760, %v2275_v51 }
 0x179   : > { %2247 = vmatpush1.msra.mxu1 %v2246_v27  ;;  %2079 = vmatpush1.msra.mxu0 %v5845_v38  ;;  %v2299_v16 = vsub.f32 %v5886_v37, %v7709_v24  ;;  %v5945_v27 = vand.u32 4294901760, %v2120_v56  ;;  %v2305_v0 = vsub.f32 %v5898_v59, %v7711_v61  ;;  %v7712_v51 = vand.u32 4294901760, %v5907_v60  ;;  %v7717_v24 = vld [vmem:[#allocation150_spill] sm:$0xff] }
 0x17a   : > { %2253 = vmatprep.subr.mxu1 %v2252_v49  ;;  %2081 = vmatprep.subr.mxu0 %v5860_v48  ;;  %v2282_v19 = vand.u32 4294901760, %v2281_v12  ;;  %v2288_v49 = vand.u32 4294901760, %v2287_v9  ;;  %v7713_v56 = vand.u32 4294901760, %v5916_v31 }
 0x17b   : > { %2259 = vmatpush1.msra.mxu1 %v2258_v26  ;;  %7710 = vst [vmem:[#allocation176_spill] sm:$0xff] %v5945_v27  ;;  %2083 = vmatpush1.msra.mxu0 %v5872_v45  ;;  %v2311_v34 = vsub.f32 %v5907_v60, %v7712_v51  ;;  %v2294_v26 = vand.u32 4294901760, %v2293_v28  ;;  %v2300_v61 = vand.u32 4294901760, %v2299_v16  ;;  %v7715_v28 = vld [vmem:[#allocation173_spill] sm:$0xff]  ;;  %v7718_v16 = vld [vmem:[#allocation166_spill] sm:$0xff]  ;;  %v7722_v51 = vld [vmem:[#allocation172_spill] sm:$0xff] }
 0x17c   : > { %2265 = vmatprep.subr.mxu1 %v2264_v41  ;;  %v2317_v12 = vsub.f32 %v5916_v31, %v7713_v56  ;;  %2362 = vmatprep.subr.mxu0 %v5461_v29  ;;  %v2306_v41 = vand.u32 4294901760, %v2305_v0  ;;  %v7720_v0 = vld [vmem:[#allocation174_spill] sm:$0xff] }
 0x17d   : > { %2271 = vmatpush1.msra.mxu1 %v2270_v6  ;;  %2122 = vmatmul.mubr.f32.vlgmr.msra.gmra.mxu0 %v5945_v27  ;;  %v2312_v9 = vand.u32 4294901760, %v2311_v34  ;;  %v7714_v34 = vld [vmem:[#allocation157_spill] sm:$0xff]  ;;  %v7724_v56 = vld [vmem:[#allocation162_spill] sm:$0xff]  ;;  %v7730_v27 = vld [vmem:[#allocation164_spill] sm:$0xff] }
 0x17e   : > { %2277 = vmatprep.subr.mxu1 %v2276_v53  ;;  %2365 = vmatpush1.msra.mxu0 %v5493_v40  ;;  %v2318_v6 = vand.u32 4294901760, %v2317_v12  ;;  %v7716_v53 = vld [vmem:[#allocation158_spill] sm:$0xff] }
 0x17f   : > { %2283 = vmatpush1.msra.mxu1 %v2282_v19  ;;  %2368 = vmatprep.subr.mxu0 %v5509_v35  ;;  %v7719_v19 = vld [vmem:[#allocation151_spill] sm:$0xff]  ;;  %v7725_v12 = vld [vmem:[#allocation154_spill] sm:$0xff] }
 0x180   : > { %2289 = vmatprep.subr.mxu1 %v2288_v49  ;;  %2371 = vmatpush1.msra.mxu0 %v5524_v3  ;;  %v7721_v49 = vld [vmem:[#allocation152_spill] sm:$0xff] }
 0x181   : > { %2295 = vmatpush1.msra.mxu1 %v2294_v26  ;;  %2374 = vmatprep.subr.mxu0 %v5535_v14  ;;  %v7723_v26 = vld [vmem:[#allocation153_spill] sm:$0xff] }
 0x182   : > { %2301 = vmatprep.subr.mxu1 %v2300_v61  ;;  %2377 = vmatpush1.msra.mxu0 %v5548_v50  ;;  %v7726_v61 = vld [vmem:[#allocation155_spill] sm:$0xff] }
 0x183   : > { %2307 = vmatpush1.msra.mxu1 %v2306_v41  ;;  %2380 = vmatprep.subr.mxu0 %v5559_v43  ;;  %v7727_v41 = vld [vmem:[#allocation156_spill] sm:$0xff] }
 0x184   : > { %2313 = vmatprep.subr.mxu1 %v2312_v9  ;;  %2383 = vmatpush1.msra.mxu0 %v5571_v18  ;;  %v7728_v9 = vld [vmem:[#allocation159_spill] sm:$0xff] }
 0x185   : > { %2319 = vmatpush1.msra.mxu1 %v2318_v6  ;;  %2386 = vmatprep.subr.mxu0 %v5587_v44  ;;  %v7729_v6 = vld [vmem:[#allocation160_spill] sm:$0xff] }
 0x186   : > { %2354 = vmatmul.mubr.f32.vlgmr.msra.gmra.mxu1 %v5809_v47  ;;  %2498 = vmatprep.subr.mxu1 %v5445_v55  ;;  %v7731_v47 = vld [vmem:[#allocation165_spill] sm:$0xff] }
 0x187   : > { %2389 = vmatpush1.msra.mxu0 %v5597_v23  ;;  %2500 = vmatpush1.msra.mxu1 %v5467_v13 }
 0x188   : > { %2392 = vmatprep.subr.mxu0 %v5601_v22  ;;  %2502 = vmatprep.subr.mxu1 %v5476_v21 }
 0x189   : > { %2395 = vmatpush1.msra.mxu0 %v5616_v20  ;;  %2504 = vmatpush1.msra.mxu1 %v5482_v30 }
 0x18a   : > { %2398 = vmatprep.subr.mxu0 %v5631_v33  ;;  %2506 = vmatprep.subr.mxu1 %v5489_v10 }
 0x18b   : > { %2401 = vmatpush1.msra.mxu0 %v5644_v32  ;;  %2508 = vmatpush1.msra.mxu1 %v5499_v46 }
 0x18c   : > { %2404 = vmatprep.subr.mxu0 %v5657_v36  ;;  %2510 = vmatprep.subr.mxu1 %v5505_v63 }
 0x18d   : > { %2407 = vmatpush1.msra.mxu0 %v7714_v34  ;;  %2512 = vmatpush1.msra.mxu1 %v7715_v28 }
 0x18e   : > { %2410 = vmatprep.subr.mxu0 %v7716_v53  ;;  %2514 = vmatprep.subr.mxu1 %v7717_v24 }
 0x18f   : > { %2413 = vmatpush1.msra.mxu0 %v7718_v16  ;;  %2516 = vmatpush1.msra.mxu1 %v7719_v19 }
 0x190   : > { %2416 = vmatprep.subr.mxu0 %v7720_v0  ;;  %2518 = vmatprep.subr.mxu1 %v7721_v49 }
 0x191   : > { %2419 = vmatpush1.msra.mxu0 %v5788_v42  ;;  %2520 = vmatpush1.msra.mxu1 %v7722_v51 }
 0x192   : > { %2422 = vmatprep.subr.mxu0 %v5798_v15  ;;  %2522 = vmatprep.subr.mxu1 %v7723_v26 }
 0x193   : > { %2425 = vmatpush1.msra.mxu0 %v5807_v57  ;;  %2524 = vmatpush1.msra.mxu1 %v7724_v56 }
 0x194   : > { %2428 = vmatprep.subr.mxu0 %v5819_v62  ;;  %2526 = vmatprep.subr.mxu1 %v7725_v12 }
 0x195   : > { %2431 = vmatpush1.msra.mxu0 %v5829_v58  ;;  %2528 = vmatpush1.msra.mxu1 %v7726_v61 }
 0x196   : > { %2434 = vmatprep.subr.mxu0 %v5841_v1  ;;  %2530 = vmatprep.subr.mxu1 %v7727_v41 }
 0x197   : > { %2437 = vmatpush1.msra.mxu0 %v5853_v5  ;;  %2532 = vmatpush1.msra.mxu1 %v7728_v9  ;;  %v7732_v5 = vld [vmem:[#allocation171_spill] sm:$0xff] }
 0x198   : > { %2440 = vmatprep.subr.mxu0 %v5865_v8  ;;  %2534 = vmatprep.subr.mxu1 %v7729_v6  ;;  %v7733_v6 = vld [vmem:[#allocation163_spill] sm:$0xff] }
 0x199   : > { %2443 = vmatpush1.msra.mxu0 %v5877_v54  ;;  %2536 = vmatpush1.msra.mxu1 %v7730_v27 }
 0x19a   : > { %2446 = vmatprep.subr.mxu0 %v5886_v37  ;;  %2538 = vmatprep.subr.mxu1 %v7731_v47  ;;  %v7734_v47 = vand.u32 4294901760, %v5461_v29  ;;  %v7738_v29 = vand.u32 4294901760, %v5535_v14  ;;  %v7743_v14 = vand.u32 4294901760, %v5587_v44  ;;  %v7756_v44 = vld [vmem:[#allocation148_spill] sm:$0xff] }
 0x19b   : > { %2449 = vmatpush1.msra.mxu0 %v5898_v59  ;;  %2540 = vmatpush1.msra.mxu1 %v5755_v52  ;;  %v7735_v52 = vand.u32 4294901760, %v5493_v40  ;;  %v7739_v40 = vand.u32 4294901760, %v5548_v50  ;;  %v7744_v50 = vand.u32 4294901760, %v5597_v23  ;;  %v7757_v23 = vand.u32 4294901760, %v5798_v15 }
 0x19c   : > { %2452 = vmatprep.subr.mxu0 %v5907_v60  ;;  %2542 = vmatprep.subr.mxu1 %v7732_v5 }
 0x19d   : > { %2455 = vmatpush1.msra.mxu0 %v5916_v31  ;;  %2488 = vmatprep.mubr.f32.mxu0 %v7428_v2  ;;  %v7736_v31 = vand.u32 4294901760, %v5509_v35  ;;  %v7740_v35 = vand.u32 4294901760, %v5559_v43  ;;  %v7745_v43 = vand.u32 4294901760, %v5601_v22  ;;  %v7758_v22 = vld [vmem:[#allocation145_spill] sm:$0xff] }
 0x19e   : > { %2544 = vmatpush1.msra.mxu1 %v7733_v6  ;;  %2491 = vmatmul.mubr.f32.vlgmr.msra.gmra.mxu0 %v5849_v7  ;;  %v7737_v6 = vand.u32 4294901760, %v5524_v3  ;;  %v7741_v3 = vand.u32 4294901760, %v5571_v18  ;;  %v7746_v18 = vand.u32 4294901760, %v5616_v20  ;;  %v7754_v20 = vld [vmem:[#allocation149_spill] sm:$0xff] }
 0x19f   : > { %2546 = vmatprep.subr.mxu1 %v5793_v25  ;;  %2606 = vmatprep.subr.mxu0 %v7734_v47  ;;  %v7747_v47 = vand.u32 4294901760, %v5631_v33  ;;  %v6090_v33 = vand.u32 4294901760, %v7758_v22 }
 0x1a0   : > { %2548 = vmatpush1.msra.mxu1 %v5803_v11  ;;  %2610 = vmatpush1.msra.mxu0 %v7735_v52  ;;  %v7742_v52 = vld [vmem:[#allocation161_spill] sm:$0xff] }
 0x1a1   : > { %2550 = vmatprep.subr.mxu1 %v5814_v17  ;;  %2614 = vmatprep.subr.mxu0 %v7736_v31  ;;  %v7759_v31 = vand.u32 4294901760, %v5807_v57  ;;  %v7763_v57 = vand.u32 4294901760, %v5829_v58  ;;  %v7767_v58 = vld [vmem:[#allocation175_spill] sm:$0xff] }
 0x1a2   : > { %2552 = vmatpush1.msra.mxu1 %v5824_v39  ;;  %2618 = vmatpush1.msra.mxu0 %v7737_v6  ;;  %v7770_v6 = vld [vmem:[#allocation136_spill] sm:$0xff] }
 0x1a3   : > { %2554 = vmatprep.subr.mxu1 %v5836_v4  ;;  %2622 = vmatprep.subr.mxu0 %v7738_v29  ;;  %v6143_v29 = vand.u32 4294901760, %v7770_v6 }
 0x1a4   : > { %2556 = vmatpush1.msra.mxu1 %v5845_v38  ;;  %2626 = vmatpush1.msra.mxu0 %v7739_v40  ;;  %v7772_v40 = vld [vmem:[#allocation160_spill] sm:$0xff] }
 0x1a5   : > { %2558 = vmatprep.subr.mxu1 %v5860_v48  ;;  %2630 = vmatprep.subr.mxu0 %v7740_v35  ;;  %7771 = vst [vmem:[#allocation157_spill] sm:$0xff] %v6143_v29  ;;  %v7773_v35 = vand.u32 4294901760, %v5877_v54 }
 0x1a6   : > { %2560 = vmatpush1.msra.mxu1 %v5872_v45  ;;  %2593 = vmatprep.mubr.f32.mxu1 %v7428_v2 }
 0x1a7   : > { %2634 = vmatpush1.msra.mxu0 %v7741_v3  ;;  %2597 = vmatmul.mubr.f32.vlgmr.msra.gmra.mxu1 %v7742_v52  ;;  %v7774_v3 = vld [vmem:[#allocation133_spill] sm:$0xff] }
 0x1a8   : > { %2638 = vmatprep.subr.mxu0 %v7743_v14  ;;  %2772 = vmatprep.subr.mxu1 %v5445_v55  ;;  %v7748_v55 = vand.u32 4294901760, %v5644_v32  ;;  %v6084_v32 = vand.u32 4294901760, %v7756_v44  ;;  %v6150_v14 = vand.u32 4294901760, %v7774_v3 }
 0x1a9   : > { %2642 = vmatpush1.msra.mxu0 %v7744_v50  ;;  %2774 = vmatpush1.msra.mxu1 %v5467_v13  ;;  %v7749_v13 = vand.u32 4294901760, %v5657_v36  ;;  %v7755_v36 = vand.u32 4294901760, %v5788_v42  ;;  %v7761_v42 = vld [vmem:[#allocation141_spill] sm:$0xff] }
 0x1aa   : > { %2646 = vmatprep.subr.mxu0 %v7745_v43  ;;  %2776 = vmatprep.subr.mxu1 %v5476_v21  ;;  %v7750_v21 = vand.u32 4294901760, %v7714_v34  ;;  %v7760_v34 = vld [vmem:[#allocation144_spill] sm:$0xff]  ;;  %7775 = vst [vmem:[#allocation173_spill] sm:$0xff] %v6150_v14 }
 0x1ab   : > { %2650 = vmatpush1.msra.mxu0 %v7746_v18  ;;  %2778 = vmatpush1.msra.mxu1 %v5482_v30  ;;  %v7751_v30 = vand.u32 4294901760, %v7716_v53  ;;  %v6099_v53 = vand.u32 4294901760, %v7761_v42  ;;  %v7777_v43 = vld [vmem:[#allocation132_spill] sm:$0xff] }
 0x1ac   : > { %2654 = vmatprep.subr.mxu0 %v7747_v47  ;;  %2780 = vmatprep.subr.mxu1 %v5489_v10  ;;  %v7752_v10 = vand.u32 4294901760, %v7718_v16  ;;  %v7764_v16 = vld [vmem:[#allocation140_spill] sm:$0xff]  ;;  %v6161_v18 = vand.u32 4294901760, %v7777_v43 }
 0x1ad   : > { %2658 = vmatpush1.msra.mxu0 %v7748_v55  ;;  %2782 = vmatpush1.msra.mxu1 %v5499_v46  ;;  %v7753_v46 = vand.u32 4294901760, %v7720_v0  ;;  %v6116_v0 = vsub.f32 %v7756_v44, %v6084_v32  ;;  %v7779_v55 = vld [vmem:[#allocation165_spill] sm:$0xff]  ;;  %v7813_v44 = vld [vmem:[#allocation112_spill] sm:$0xff] }
 0x1ae   : > { %2662 = vmatprep.subr.mxu0 %v7749_v13  ;;  %2784 = vmatprep.subr.mxu1 %v5505_v63  ;;  %v6078_v63 = vand.u32 4294901760, %v7754_v20  ;;  %7778 = vst [vmem:[#allocation158_spill] sm:$0xff] %v6161_v18  ;;  %v7780_v13 = vand.u32 4294901760, %v5898_v59  ;;  %v6186_v59 = vsub.f32 %v7770_v6, %v6143_v29  ;;  %v231_v6 = vstv %s4007_s2  ;;  %s229_s2 = sadd.s32 1, %s4007_s2  }
 0x1af   : > { %2666 = vmatpush1.msra.mxu0 %v7750_v21  ;;  %2786 = vmatpush1.msra.mxu1 %v7715_v28  ;;  %v6096_v28 = vand.u32 4294901760, %v7760_v34  ;;  %v7144_v50 = vand.u32 4294901760, %v6116_v0  ;;  %v7781_v21 = vld [vmem:[#allocation129_spill] sm:$0xff]  ;;  %p226_p6 = scmp.ge.s32.totalorder %s229_s2, 8  }
 0x1b0   : > { %2670 = vmatprep.subr.mxu0 %v7751_v30  ;;  %2788 = vmatprep.subr.mxu1 %v7717_v24  ;;  %v7762_v24 = vand.u32 4294901760, %v5819_v62  ;;  %v6106_v15 = vsub.f32 %v7754_v20, %v6078_v63  ;;  %v7765_v62 = vand.u32 4294901760, %v5841_v1  ;;  %v6137_v1 = vsub.f32 %v7761_v42, %v6099_v53  ;;  %s4024_s22 = smov (%p226_p6), [#allocation16]  }
 0x1b1   : > { %2674 = vmatpush1.msra.mxu0 %v7752_v10  ;;  %2790 = vmatpush1.msra.mxu1 %v7719_v19  ;;  %v6112_v19 = vand.u32 4294901760, %v7764_v16  ;;  %v6172_v30 = vand.u32 4294901760, %v7781_v21  ;;  %v7783_v10 = vld [vmem:[#allocation170_spill] sm:$0xff]  ;;  %s3812_s23 = sshll.u32 (%p226_p6), %s4024_s22, 4  ;;  %s3813_s23 = int_to_ptr.vmem [resolvable:$true] %s3812_s23 }
 0x1b2   : > { %2678 = vmatprep.subr.mxu0 %v7753_v46  ;;  %2792 = vmatprep.subr.mxu1 %v7721_v49  ;;  %v7766_v49 = vld [vmem:[#allocation137_spill] sm:$0xff]  ;;  %v7784_v46 = vand.u32 4294901760, %v5907_v60  ;;  %v7787_v60 = vld [vmem:[#allocation128_spill] sm:$0xff]  ;;  %s3973_s24 = scalar_lea.vmem (%p226_p6), %s3813_s23, 64  ;;  %p3978_p8 = scmp.lt.s32.totalorder (%p226_p6), %s3813_s23, %s3813_s23 }
 0x1b3   : > { %2682 = vmatpush1.msra.mxu0 %v7755_v36  ;;  %2794 = vmatpush1.msra.mxu1 %v7722_v51  ;;  %v6122_v51 = vand.u32 4294901760, %v7766_v49  ;;  %7782 = vst [vmem:[#allocation150_spill] sm:$0xff] %v6172_v30  ;;  %p3974_p7 = scmp.ne.s32.totalorder (%p226_p6), %s3813_s23, %s3973_s24  ;;  %p3979_p9 = scmp.lt.s32.totalorder (%p226_p6), %s3973_s24, %s3973_s24 }
 0x1b4   : > { %2686 = vmatprep.subr.mxu0 %v7757_v23  ;;  %2796 = vmatprep.subr.mxu1 %v7723_v26  ;;  %v6126_v26 = vsub.f32 %v7758_v22, %v6090_v33  ;;  %v7785_v23 = vld [vmem:[#allocation169_spill] sm:$0xff] }
 0x1b5   : > { %2690 = vmatpush1.msra.mxu0 %v7759_v31  ;;  %2798 = vmatpush1.msra.mxu1 %v7724_v56  ;;  %v7768_v56 = vand.u32 4294901760, %v7767_v58  ;;  %v6166_v47 = vsub.f32 %v7766_v49, %v6122_v51  ;;  %v7786_v31 = vand.u32 4294901760, %v7785_v23  ;;  %v6202_v58 = vsub.f32 %v7774_v3, %v6150_v14  ;;  %v7793_v23 = vld [vmem:[#allocation124_spill] sm:$0xff]  ;;  %p3980_p10 = por (%p226_p6), %p3979_p9, %p3978_p8 }
 0x1b6   : > { %2694 = vmatprep.subr.mxu0 %v7762_v24  ;;  %2800 = vmatprep.subr.mxu1 %v7725_v12  ;;  %v6133_v12 = vsub.f32 %v7760_v34, %v6096_v28  ;;  %v7142_v54 = vand.u32 4294901760, %v6126_v26  ;;  %v6194_v24 = vsub.f32 %v6116_v0, %v7144_v50  ;;  %v7811_v34 = vld [vmem:[#allocation113_spill] sm:$0xff]  ;;  %v6346_v49 = vand.u32 4294901760, %v7813_v44 }
 0x1b7   : > { %2698 = vmatpush1.msra.mxu0 %v7763_v57  ;;  %2802 = vmatpush1.msra.mxu1 %v7726_v61  ;;  %v7769_v61 = vand.u32 4294901760, %v5865_v8  ;;  %v7776_v8 = vand.u32 4294901760, %v5886_v37  ;;  %v6197_v57 = vand.u32 4294901760, %v7787_v60  ;;  %v6339_v42 = vand.u32 4294901760, %v7811_v34  ;;  %p3981_p11 = pnand (%p226_p6), %p3980_p10, %p3974_p7 }
 0x1b8   : > { %2702 = vmatprep.subr.mxu0 %v7765_v62  ;;  %2804 = vmatprep.subr.mxu1 %v7727_v41  ;;  %v7146_v41 = vand.u32 4294901760, %v6106_v15  ;;  %v7141_v37 = vand.u32 4294901760, %v6133_v12  ;;  %7814 = vst [vmem:[#allocation156_spill] sm:$0xff] %v6346_v49 }
 0x1b9   : > { %2706 = vmatpush1.msra.mxu0 %v7768_v56  ;;  %2806 = vmatpush1.msra.mxu1 %v7728_v9  ;;  %v6155_v9 = vsub.f32 %v7764_v16, %v6112_v19  ;;  %7788 = vst [vmem:[#allocation166_spill] sm:$0xff] %v6197_v57  ;;  %v6209_v56 = vsub.f32 %v6126_v26, %v7142_v54  ;;  %7812 = vst [vmem:[#allocation155_spill] sm:$0xff] %v6339_v42 }
 0x1ba   : > { %2710 = vmatprep.subr.mxu0 %v7769_v61  ;;  %2808 = vmatprep.subr.mxu1 %v7772_v40  ;;  %v6182_v36 = vsub.f32 %v6106_v15, %v7146_v41  ;;  %v7790_v61 = vld [vmem:[#allocation125_spill] sm:$0xff]  ;;  %v6256_v50 = vsub.f32 %v7787_v60, %v6197_v57  ;;  %v6396_v52 = vsub.f32 %v7811_v34, %v6339_v42 }
 0x1bb   : > { %2714 = vmatpush1.msra.mxu0 %v7773_v35  ;;  %2810 = vmatpush1.msra.mxu1 %v7730_v27  ;;  %v7143_v27 = vand.u32 4294901760, %v6137_v1  ;;  %v7145_v62 = vand.u32 4294901760, %v6155_v9  ;;  %v6212_v40 = vand.u32 4294901760, %v7790_v61  ;;  %v7147_v35 = vand.u32 4294901760, %v6166_v47  ;;  %v7829_v34 = vld [vmem:[#allocation101_spill] sm:$0xff] }
 0x1bc   : > { %2718 = vmatprep.subr.mxu0 %v7776_v8  ;;  %2812 = vmatprep.subr.mxu1 %v7779_v55  ;;  %v6217_v8 = vsub.f32 %v7777_v43, %v6161_v18  ;;  %v7792_v55 = vld [vmem:[#allocation167_spill] sm:$0xff]  ;;  %7826 = vst [vmem:[#allocation160_spill] sm:$0xff] %v6396_v52 }
 0x1bd   : > { %2722 = vmatpush1.msra.mxu0 %v7780_v13  ;;  %2814 = vmatpush1.msra.mxu1 %v7783_v10  ;;  %7791 = vst [vmem:[#allocation151_spill] sm:$0xff] %v6212_v40  ;;  %v6224_v13 = vsub.f32 %v6133_v12, %v7141_v37  ;;  %v6229_v10 = vsub.f32 %v6137_v1, %v7143_v27  ;;  %v2993_v27 = vand.u32 4294901760, %v6194_v24 }
 0x1be   : > { %2726 = vmatprep.subr.mxu0 %v7784_v46  ;;  %2816 = vmatprep.subr.mxu1 %v7732_v5  ;;  %v7789_v5 = vld [vmem:[#allocation163_spill] sm:$0xff]  ;;  %v6233_v46 = vsub.f32 %v7781_v21, %v6172_v30  ;;  %v6264_v24 = vsub.f32 %v6166_v47, %v7147_v35  ;;  %v6269_v41 = vsub.f32 %v7790_v61, %v6212_v40  ;;  %v7803_v21 = vld [vmem:[#allocation116_spill] sm:$0xff] }
 0x1bf   : > { %2730 = vmatpush1.msra.mxu0 %v7786_v31  ;;  %2763 = vmatprep.mubr.f32.mxu0 %v7428_v2  ;;  %v6239_v31 = vand.u32 4294901760, %v7793_v23 }
 0x1c0   : > { %2818 = vmatpush1.msra.mxu1 %v7789_v5  ;;  %2765 = vmatmul.mubr.f32.vlgmr.msra.gmra.mxu0 %v7792_v55  ;;  %v7795_v5 = vld [vmem:[#allocation121_spill] sm:$0xff] }
 0x1c1   : > { %2820 = vmatprep.subr.mxu1 %v5793_v25  ;;  %2876 = vmatprep.subr.mxu0 %v6078_v63  ;;  %v2987_v25 = vand.u32 4294901760, %v6182_v36  ;;  %7794 = vst [vmem:[#allocation174_spill] sm:$0xff] %v6239_v31  ;;  %v6242_v37 = vand.u32 4294901760, %v7795_v5  ;;  %v3005_v36 = vand.u32 4294901760, %v6224_v13 }
 0x1c2   : > { %2822 = vmatpush1.msra.mxu1 %v5803_v11  ;;  %2878 = vmatpush1.msra.mxu0 %v6084_v32  ;;  %v6251_v11 = vsub.f32 %v6155_v9, %v7145_v62  ;;  %v7799_v62 = vand.u32 4294901760, %v6186_v59 }
 0x1c3   : > { %7796 = vst [vmem:[#allocation152_spill] sm:$0xff] %v6242_v37  ;;  %2824 = vmatprep.subr.mxu1 %v5814_v17  ;;  %2880 = vmatprep.subr.mxu0 %v6090_v33  ;;  %v2999_v17 = vand.u32 4294901760, %v6209_v56  ;;  %v7797_v56 = vld [vmem:[#allocation120_spill] sm:$0xff]  ;;  %v6293_v13 = vsub.f32 %v7795_v5, %v6242_v37  ;;  %v3023_v5 = vand.u32 4294901760, %v6264_v24  ;;  %v7807_v24 = vld [vmem:[#allocation21_spill] sm:$0xff] }
 0x1c4   : > { %2826 = vmatpush1.msra.mxu1 %v5824_v39  ;;  %2882 = vmatpush1.msra.mxu0 %v6096_v28  ;;  %v3011_v39 = vand.u32 4294901760, %v6229_v10  ;;  %v6276_v54 = vand.u32 4294901760, %v7797_v56  ;;  %v6284_v3 = vsub.f32 %v6186_v59, %v7799_v62  ;;  %v7800_v10 = vld [vmem:[#allocation117_spill] sm:$0xff]  ;;  %v7802_v62 = vand.u32 4294901760, %v6202_v58 }
 0x1c5   : > { %2828 = vmatprep.subr.mxu1 %v5836_v4  ;;  %2884 = vmatprep.subr.mxu0 %v6099_v53  ;;  %v6289_v4 = vsub.f32 %v7793_v23, %v6239_v31  ;;  %v6299_v35 = vand.u32 4294901760, %v7800_v10  ;;  %vm6327_vm0 = vcmp.lt.s32.totalorder %v231_v6, %v7807_v24  ;;  %v7165_v6 = vmov 0  }
 0x1c6   : > { %7798 = vst [vmem:[#allocation172_spill] sm:$0xff] %v6276_v54  ;;  %2830 = vmatpush1.msra.mxu1 %v5845_v38  ;;  %2886 = vmatpush1.msra.mxu0 %v6112_v19  ;;  %v3017_v38 = vand.u32 4294901760, %v6251_v11  ;;  %v6304_v16 = vsub.f32 %v6202_v58, %v7802_v62  ;;  %v7805_v11 = vand.u32 4294901760, %v6217_v8  ;;  %v7806_v62 = vand.u32 4294901760, %v6233_v46 }
 0x1c7   : > { %2832 = vmatprep.subr.mxu1 %v5860_v48  ;;  %7801 = vst [vmem:[#allocation153_spill] sm:$0xff] %v6299_v35  ;;  %2888 = vmatprep.subr.mxu0 %v6122_v51  ;;  %v6311_v48 = vand.u32 4294901760, %v7803_v21  ;;  %v3029_v23 = vand.u32 4294901760, %v6284_v3  ;;  %v6355_v3 = vsub.f32 %v7800_v10, %v6299_v35  ;;  %v7820_v10 = vld [vmem:[#allocation108_spill] sm:$0xff] }
 0x1c8   : > { %2834 = vmatpush1.msra.mxu1 %v5872_v45  ;;  %v6316_v22 = vsub.f32 %v6217_v8, %v7805_v11  ;;  %2867 = vmatprep.mubr.f32.mxu1 %v7428_v2  ;;  %v6324_v45 = vsub.f32 %v6233_v46, %v7806_v62  ;;  %v6333_v11 = vsub.f32 %v7797_v56, %v6276_v54  ;;  %v3035_v43 = vand.u32 4294901760, %v6304_v16  ;;  %v7817_v62 = vld [vmem:[#allocation109_spill] sm:$0xff] }
 0x1c9   : > { %7804 = vst [vmem:[#allocation162_spill] sm:$0xff] %v6311_v48  ;;  %2890 = vmatpush1.msra.mxu0 %v6143_v29  ;;  %2869 = vmatmul.mubr.f32.vlgmr.msra.gmra.mxu1 %v7792_v55  ;;  %v7815_v56 = vand.u32 4294901760, %v6256_v50  ;;  %7816 = vst [vmem:[#allocation159_spill] sm:$0xff] %v6355_v3  ;;  %v2000_v16 = vsel %vm6327_vm0, 1, %v7165_v6  ;;  %v6363_v61 = vand.u32 4294901760, %v7817_v62  ;;  %v6378_v20 = vsub.f32 %v7803_v21, %v6311_v48  ;;  %v7823_v6 = vld [vmem:[#allocation105_spill] sm:$0xff] }
 0x1ca   : > { %7810 = vst [vmem:[#allocation154_spill] sm:$0xff] %v6333_v11  ;;  %2892 = vmatprep.subr.mxu0 %v6150_v14  ;;  %2988 = vmatprep.subr.mxu1 %v2987_v25  ;;  %v3041_v25 = vand.u32 4294901760, %v6316_v22  ;;  %v6373_v22 = vand.u32 4294901760, %v7820_v10  ;;  %v6387_v7 = vand.u32 4294901760, %v7823_v6  ;;  %v7827_v21 = vld [vmem:[#allocation104_spill] sm:$0xff]  ;;  %v7835_v29 = vand.u32 4294901760, %v6355_v3 }
 0x1cb   : > { %2894 = vmatpush1.msra.mxu0 %v6161_v18  ;;  %v6351_v60 = vsub.f32 %v6256_v50, %v7815_v56  ;;  %2994 = vmatpush1.msra.mxu1 %v2993_v27  ;;  %7818 = vst [vmem:[#allocation164_spill] sm:$0xff] %v6363_v61  ;;  %v7819_v56 = vand.u32 4294901760, %v6269_v41  ;;  %v3047_v27 = vand.u32 4294901760, %v6324_v45  ;;  %v7825_v45 = vand.u32 4294901760, %v6293_v13 }
 0x1cc   : > { %2896 = vmatprep.subr.mxu0 %v6172_v30  ;;  %3000 = vmatprep.subr.mxu1 %v2999_v17  ;;  %7821 = vst [vmem:[#allocation171_spill] sm:$0xff] %v6373_v22  ;;  %7824 = vst [vmem:[#allocation175_spill] sm:$0xff] %v6387_v7  ;;  %v6406_v30 = vsub.f32 %v7813_v44, %v6346_v49  ;;  %v6430_v14 = vsub.f32 %v7820_v10, %v6373_v22  ;;  %v7834_v44 = vmov 0  }
 0x1cd   : > { %v6368_v24 = vsub.f32 %v6269_v41, %v7819_v56  ;;  %2898 = vmatpush1.msra.mxu0 %v6197_v57  ;;  %3006 = vmatpush1.msra.mxu1 %v3005_v36  ;;  %v7822_v56 = vand.u32 4294901760, %v6289_v4  ;;  %v6392_v57 = vsub.f32 %v6293_v13, %v7825_v45  ;;  %v3053_v36 = vand.u32 4294901760, %v6351_v60 }
 0x1ce   : > { %2900 = vmatprep.subr.mxu0 %v6212_v40  ;;  %3012 = vmatprep.subr.mxu1 %v3011_v39  ;;  %v6411_v39 = vand.u32 4294901760, %v7829_v34  ;;  %v6418_v60 = vsub.f32 %v7817_v62, %v6363_v61  ;;  %v7832_v40 = vand.u32 4294901760, %v6333_v11  ;;  %v3082_v10 = vsub.f32 %v6355_v3, %v7835_v29 }
 0x1cf   : > { %v6384_v17 = vsub.f32 %v6289_v4, %v7822_v56  ;;  %2902 = vmatpush1.msra.mxu0 %v6239_v31  ;;  %v6401_v56 = vand.u32 4294901760, %v7827_v21  ;;  %3018 = vmatpush1.msra.mxu1 %v3017_v38  ;;  %v3059_v45 = vand.u32 4294901760, %v6368_v24  ;;  %v7831_v31 = vld [vmem:[#allocation100_spill] sm:$0xff]  ;;  %v7833_v24 = vld [vmem:[#allocation97_spill] sm:$0xff]  ;;  %v3071_v62 = vand.u32 4294901760, %v6392_v57 }
 0x1d0   : > { %2904 = vmatprep.subr.mxu0 %v6242_v37  ;;  %7830 = vst [vmem:[#allocation170_spill] sm:$0xff] %v6411_v39  ;;  %v6414_v18 = vand.u32 4294901760, %v7831_v31  ;;  %3024 = vmatprep.subr.mxu1 %v3023_v5  ;;  %v3076_v38 = vsub.f32 %v6333_v11, %v7832_v40  ;;  %v6426_v37 = vand.u32 4294901760, %v7833_v24  ;;  %v6438_v40 = vsub.f32 %v7823_v6, %v6387_v7 }
 0x1d1   : > { %7828 = vst [vmem:[#allocation165_spill] sm:$0xff] %v6401_v56  ;;  %2906 = vmatpush1.msra.mxu0 %v6276_v54  ;;  %3030 = vmatpush1.msra.mxu1 %v3029_v23  ;;  %v3065_v5 = vand.u32 4294901760, %v6384_v17  ;;  %v7836_v23 = vld [vmem:[#allocation96_spill] sm:$0xff]  ;;  %v6450_v57 = vsub.f32 %v7827_v21, %v6401_v56  ;;  %v7837_v54 = vld [vmem:[#allocation93_spill] sm:$0xff]  ;;  %v6462_v29 = vsub.f32 %v7829_v34, %v6411_v39  ;;  %v7839_v21 = vand.u32 4294901760, %v6378_v20 }
 0x1d2   : > { %2908 = vmatprep.subr.mxu0 %v6299_v35  ;;  %3036 = vmatprep.subr.mxu1 %v3035_v43  ;;  %v6445_v11 = vand.u32 4294901760, %v7836_v23  ;;  %v6454_v43 = vand.u32 4294901760, %v7837_v54  ;;  %v3077_v17 = vand.u32 4294901760, %v3076_v38  ;;  %v6471_v6 = vsub.f32 %v7831_v31, %v6414_v18  ;;  %v7844_v31 = vld [vmem:[#allocation88_spill] sm:$0xff] }
 0x1d3   : > { %3866 = vset.pattern.permute.xlu0 %v7834_v44  ;;  %2910 = vmatpush1.msra.mxu0 %v6311_v48  ;;  %v7838_v44 = vld [vmem:[#allocation92_spill] sm:$0xff]  ;;  %v7840_v34 = vand.u32 4294901760, %v6396_v52  ;;  %v3083_v38 = vand.u32 4294901760, %v3082_v10  ;;  %v7850_v10 = vand.u32 4294901760, %v6450_v57 }
 0x1d4   : > { %3042 = vmatpush1.msra.mxu1 %v3041_v25  ;;  %v6458_v35 = vand.u32 4294901760, %v7838_v44  ;;  %2912 = vmatprep.subr.mxu0 %v6339_v42  ;;  %v3088_v25 = vsub.f32 %v6378_v20, %v7839_v21  ;;  %v7841_v42 = vld [vmem:[#allocation89_spill] sm:$0xff]  ;;  %v6483_v21 = vsub.f32 %v7833_v24, %v6426_v37 }
 0x1d5   : > { %3048 = vmatprep.subr.mxu1 %v3047_v27  ;;  %2002 = vperm.xlu0 %3866, %v2000_v16   ;;  %v3094_v3 = vsub.f32 %v6396_v52, %v7840_v34  ;;  %v6478_v27 = vand.u32 4294901760, %v7841_v42  ;;  %v7843_v16 = vand.u32 4294901760, %v6406_v30  ;;  %v6495_v52 = vsub.f32 %v7836_v23, %v6445_v11 }
 0x1d6   : > { %2914 = vmatpush1.msra.mxu0 %v6346_v49  ;;  %7842 = vst [vmem:[#allocation169_spill] sm:$0xff] %v6483_v21  ;;  %3054 = vmatpush1.msra.mxu1 %v3053_v36  ;;  %v6490_v49 = vand.u32 4294901760, %v7844_v31  ;;  %v7845_v36 = vand.u32 4294901760, %v6418_v60  ;;  %v3089_v34 = vand.u32 4294901760, %v3088_v25  ;;  %v7847_v23 = vand.u32 4294901760, %v6430_v14 }
 0x1d7   : > { %2916 = vmatprep.subr.mxu0 %v6363_v61  ;;  %v3100_v48 = vsub.f32 %v6406_v30, %v7843_v16  ;;  %3060 = vmatprep.subr.mxu1 %v3059_v45  ;;  %v6504_v16 = vsub.f32 %v7837_v54, %v6454_v43  ;;  %v7848_v61 = vand.u32 4294901760, %v6438_v40  ;;  %v6522_v54 = vsub.f32 %v7841_v42, %v6478_v27 }
 0x1d8   : > { %2918 = vmatpush1.msra.mxu0 %v6373_v22  ;;  %v3106_v24 = vsub.f32 %v6418_v60, %v7845_v36  ;;  %3066 = vmatpush1.msra.mxu1 %v3065_v5  ;;  %v3112_v45 = vsub.f32 %v6430_v14, %v7847_v23  ;;  %v6513_v22 = vsub.f32 %v7838_v44, %v6458_v35  ;;  %v3095_v36 = vand.u32 4294901760, %v3094_v3 }
 0x1d9   : > { %7846 = vst [vmem:[#allocation163_spill] sm:$0xff] %v6504_v16  ;;  %2920 = vmatprep.subr.mxu0 %v6387_v7  ;;  %3072 = vmatprep.subr.mxu1 %v3071_v62  ;;  %v3118_v5 = vsub.f32 %v6438_v40, %v7848_v61  ;;  %7849 = vst [vmem:[#allocation177_spill] sm:$0xff] %v6522_v54  ;;  %v3101_v23 = vand.u32 4294901760, %v3100_v48  ;;  %v3124_v62 = vsub.f32 %v6450_v57, %v7850_v10 }
 0x1da   : > { %2922 = vmatpush1.msra.mxu0 %v6401_v56  ;;  %3078 = vmatpush1.msra.mxu1 %v3077_v17  ;;  %v6531_v44 = vsub.f32 %v7844_v31, %v6490_v49  ;;  %v3107_v61 = vand.u32 4294901760, %v3106_v24  ;;  %v7852_v25 = vand.u32 4294901760, %v6462_v29  ;;  %v3113_v10 = vand.u32 4294901760, %v3112_v45 }
 0x1db   : > { %2924 = vmatprep.subr.mxu0 %v6411_v39  ;;  %3084 = vmatprep.subr.mxu1 %v3083_v38  ;;  %v7853_v3 = vand.u32 4294901760, %v6471_v6  ;;  %v3119_v24 = vand.u32 4294901760, %v3118_v5  ;;  %v7854_v38 = vand.u32 4294901760, %v6483_v21  ;;  %v7855_v45 = vand.u32 4294901760, %v6495_v52 }
 0x1dc   : > { %7851 = vst [vmem:[#allocation178_spill] sm:$0xff] %v6531_v44  ;;  %2926 = vmatpush1.msra.mxu0 %v6414_v18  ;;  %v3130_v17 = vsub.f32 %v6462_v29, %v7852_v25  ;;  %3090 = vmatpush1.msra.mxu1 %v3089_v34  ;;  %v3125_v34 = vand.u32 4294901760, %v3124_v62  ;;  %v7219_v31 = vand.u32 4294901760, %v6531_v44  ;;  %v7856_v5 = vand.u32 4294901760, %v6504_v16 }
 0x1dd   : > { %2928 = vmatprep.subr.mxu0 %v6426_v37  ;;  %v3136_v42 = vsub.f32 %v6471_v6, %v7853_v3  ;;  %3096 = vmatprep.subr.mxu1 %v3095_v36  ;;  %v3142_v25 = vsub.f32 %v6483_v21, %v7854_v38  ;;  %v3148_v3 = vsub.f32 %v6495_v52, %v7855_v45  ;;  %v7857_v62 = vand.u32 4294901760, %v6513_v22 }
 0x1de   : > { %2930 = vmatpush1.msra.mxu0 %v6445_v11  ;;  %3102 = vmatpush1.msra.mxu1 %v3101_v23  ;;  %v3131_v36 = vand.u32 4294901760, %v3130_v17  ;;  %v3154_v38 = vsub.f32 %v6504_v16, %v7856_v5 }
 0x1df   : > { %2932 = vmatprep.subr.mxu0 %v6454_v43  ;;  %3108 = vmatprep.subr.mxu1 %v3107_v61  ;;  %v3137_v23 = vand.u32 4294901760, %v3136_v42  ;;  %v3160_v48 = vsub.f32 %v6513_v22, %v7857_v62  ;;  %v3143_v45 = vand.u32 4294901760, %v3142_v25  ;;  %v7858_v61 = vand.u32 4294901760, %v6522_v54 }
 0x1e0   : > { %2934 = vmatpush1.msra.mxu0 %v6458_v35  ;;  %3114 = vmatpush1.msra.mxu1 %v3113_v10  ;;  %v3149_v5 = vand.u32 4294901760, %v3148_v3  ;;  %v3172_v42 = vsub.f32 %v6531_v44, %v7219_v31  ;;  %v3155_v10 = vand.u32 4294901760, %v3154_v38  ;;  %v7861_v3 = vld [vmem:[#allocation157_spill] sm:$0xff]  ;;  %v7874_v31 = vld [vmem:[#allocation155_spill] sm:$0xff] }
 0x1e1   : > { %2936 = vmatprep.subr.mxu0 %v6478_v27  ;;  %3120 = vmatprep.subr.mxu1 %v3119_v24  ;;  %v3166_v17 = vsub.f32 %v6522_v54, %v7858_v61  ;;  %v7859_v24 = vld [vmem:[#allocation176_spill] sm:$0xff]  ;;  %v3161_v25 = vand.u32 4294901760, %v3160_v48  ;;  %v7860_v48 = vld [vmem:[#allocation154_spill] sm:$0xff]  ;;  %v7863_v38 = vld [vmem:[#allocation173_spill] sm:$0xff] }
 0x1e2   : > { %2938 = vmatpush1.msra.mxu0 %v6490_v49  ;;  %3126 = vmatpush1.msra.mxu1 %v3125_v34  ;;  %v3173_v34 = vand.u32 4294901760, %v3172_v42  ;;  %v7866_v61 = vld [vmem:[#allocation150_spill] sm:$0xff] }
 0x1e3   : > { %2971 = vmatprep.mubr.f32.mxu0 %v7428_v2  ;;  %3132 = vmatprep.subr.mxu1 %v3131_v36  ;;  %v3167_v62 = vand.u32 4294901760, %v3166_v17  ;;  %v7862_v36 = vld [vmem:[#allocation159_spill] sm:$0xff]  ;;  %v7867_v17 = vld [vmem:[#allocation166_spill] sm:$0xff] }
 0x1e4   : > { %3217 = vmatprep.subr.mxu0 %v6106_v15  ;;  %2977 = vmatmul.mubr.f32.vlgmr.msra.gmra.mxu0 %v7859_v24  ;;  %v7869_v42 = vld [vmem:[#allocation174_spill] sm:$0xff]  ;;  %v7871_v24 = vld [vmem:[#allocation172_spill] sm:$0xff] }
 0x1e5   : > { %3138 = vmatpush1.msra.mxu1 %v3137_v23  ;;  %3220 = vmatpush1.msra.mxu0 %v6116_v0  ;;  %v7864_v23 = vld [vmem:[#allocation158_spill] sm:$0xff] }
 0x1e6   : > { %3144 = vmatprep.subr.mxu1 %v3143_v45  ;;  %3223 = vmatprep.subr.mxu0 %v6126_v26  ;;  %v7865_v45 = vld [vmem:[#allocation160_spill] sm:$0xff] }
 0x1e7   : > { %3150 = vmatpush1.msra.mxu1 %v3149_v5  ;;  %3226 = vmatpush1.msra.mxu0 %v6133_v12  ;;  %v7868_v5 = vld [vmem:[#allocation151_spill] sm:$0xff] }
 0x1e8   : > { %3156 = vmatprep.subr.mxu1 %v3155_v10  ;;  %3229 = vmatprep.subr.mxu0 %v6137_v1  ;;  %v7870_v10 = vld [vmem:[#allocation152_spill] sm:$0xff] }
 0x1e9   : > { %3162 = vmatpush1.msra.mxu1 %v3161_v25  ;;  %3232 = vmatpush1.msra.mxu0 %v6155_v9  ;;  %v7872_v25 = vld [vmem:[#allocation153_spill] sm:$0xff] }
 0x1ea   : > { %3168 = vmatprep.subr.mxu1 %v3167_v62  ;;  %3235 = vmatprep.subr.mxu0 %v6166_v47  ;;  %v7873_v62 = vld [vmem:[#allocation162_spill] sm:$0xff] }
 0x1eb   : > { %3174 = vmatpush1.msra.mxu1 %v3173_v34  ;;  %3207 = vmatprep.mubr.f32.mxu1 %v7428_v2  ;;  %v6617_v34 = vpop.f32.mrf.mxu0 }
 0x1ec   : > { %3238 = vmatpush1.msra.mxu0 %v6186_v59  ;;  %3209 = vmatmul.mubr.f32.vlgmr.msra.gmra.mxu1 %v7792_v55  ;;  %v7875_v55 = vld [vmem:[#allocation156_spill] sm:$0xff] }
 0x1ed   : > { %3241 = vmatprep.subr.mxu0 %v6202_v58  ;;  %3353 = vmatprep.subr.mxu1 %v6078_v63 }
 0x1ee   : > { %3244 = vmatpush1.msra.mxu0 %v6217_v8  ;;  %3355 = vmatpush1.msra.mxu1 %v6084_v32 }
 0x1ef   : > { %3247 = vmatprep.subr.mxu0 %v6233_v46  ;;  %3357 = vmatprep.subr.mxu1 %v6090_v33 }
 0x1f0   : > { %3250 = vmatpush1.msra.mxu0 %v6256_v50  ;;  %3359 = vmatpush1.msra.mxu1 %v6096_v28 }
 0x1f1   : > { %3253 = vmatprep.subr.mxu0 %v6269_v41  ;;  %3361 = vmatprep.subr.mxu1 %v6099_v53 }
 0x1f2   : > { %3256 = vmatpush1.msra.mxu0 %v6289_v4  ;;  %3363 = vmatpush1.msra.mxu1 %v6112_v19 }
 0x1f3   : > { %3259 = vmatprep.subr.mxu0 %v6293_v13  ;;  %3365 = vmatprep.subr.mxu1 %v6122_v51 }
 0x1f4   : > { %3262 = vmatpush1.msra.mxu0 %v7860_v48  ;;  %3367 = vmatpush1.msra.mxu1 %v7861_v3 }
 0x1f5   : > { %3265 = vmatprep.subr.mxu0 %v7862_v36  ;;  %3369 = vmatprep.subr.mxu1 %v7863_v38 }
 0x1f6   : > { %3268 = vmatpush1.msra.mxu0 %v6378_v20  ;;  %3371 = vmatpush1.msra.mxu1 %v7864_v23 }
 0x1f7   : > { %3271 = vmatprep.subr.mxu0 %v7865_v45  ;;  %3373 = vmatprep.subr.mxu1 %v7866_v61 }
 0x1f8   : > { %3274 = vmatpush1.msra.mxu0 %v6406_v30  ;;  %3375 = vmatpush1.msra.mxu1 %v7867_v17 }
 0x1f9   : > { %3277 = vmatprep.subr.mxu0 %v6418_v60  ;;  %3377 = vmatprep.subr.mxu1 %v7868_v5 }
 0x1fa   : > { %3280 = vmatpush1.msra.mxu0 %v6430_v14  ;;  %3379 = vmatpush1.msra.mxu1 %v7869_v42 }
 0x1fb   : > { %3283 = vmatprep.subr.mxu0 %v6438_v40  ;;  %3381 = vmatprep.subr.mxu1 %v7870_v10 }
 0x1fc   : > { %3286 = vmatpush1.msra.mxu0 %v6450_v57  ;;  %3383 = vmatpush1.msra.mxu1 %v7871_v24  ;;  %v7876_v24 = vld [vmem:[#allocation164_spill] sm:$0xff] }
 0x1fd   : > { %3289 = vmatprep.subr.mxu0 %v6462_v29  ;;  %3385 = vmatprep.subr.mxu1 %v7872_v25  ;;  %v7877_v25 = vld [vmem:[#allocation171_spill] sm:$0xff] }
 0x1fe   : > { %3292 = vmatpush1.msra.mxu0 %v6471_v6  ;;  %3387 = vmatpush1.msra.mxu1 %v7873_v62  ;;  %v347_v62 = vpop.f32.mrf.mxu0 }
 0x1ff   : > { %3295 = vmatprep.subr.mxu0 %v6483_v21  ;;  %3389 = vmatprep.subr.mxu1 %v7874_v31  ;;  %v6627_v21 = vpop.f32.mrf.mxu1 }
 0x200   : > { %3298 = vmatpush1.msra.mxu0 %v6495_v52  ;;  %3391 = vmatpush1.msra.mxu1 %v7875_v55 }
 0x201   : > { %3301 = vmatprep.subr.mxu0 %v6504_v16  ;;  %3393 = vmatprep.subr.mxu1 %v7876_v24  ;;  %v6633_v16 = vpop.f32.mrf.mxu0  ;;  %v7878_v24 = vld [vmem:[#allocation168_spill] sm:$0xff] }
 0x202   : > { %3304 = vmatpush1.msra.mxu0 %v6513_v22  ;;  %3395 = vmatpush1.msra.mxu1 %v7877_v25  ;;  %v7879_v25 = vand.u32 4294901760, %v6106_v15  ;;  %v7883_v15 = vand.u32 4294901760, %v6137_v1  ;;  %v7887_v1 = vld [vmem:[#allocation161_spill] sm:$0xff] }
 0x203   : > { %3307 = vmatprep.subr.mxu0 %v6522_v54  ;;  %3397 = vmatprep.subr.mxu1 %v6387_v7  ;;  %v579_v54 = vpop.f32.mrf.mxu1  ;;  %v7880_v7 = vand.u32 4294901760, %v6116_v0  ;;  %v7884_v0 = vand.u32 4294901760, %v6155_v9 }
 0x204   : > { %3310 = vmatpush1.msra.mxu0 %v6531_v44  ;;  %3343 = vmatprep.mubr.f32.mxu0 %v7428_v2  ;;  %v7881_v44 = vand.u32 4294901760, %v6126_v26 }
 0x205   : > { %3399 = vmatpush1.msra.mxu1 %v6401_v56  ;;  %3346 = vmatmul.mubr.f32.vlgmr.msra.gmra.mxu0 %v7878_v24  ;;  %v716_v56 = vpop.f32.mrf.mxu0  ;;  %v6646_v24 = vpop.f32.mrf.mxu1 }
 0x206   : > { %3401 = vmatprep.subr.mxu1 %v6411_v39  ;;  %3461 = vmatprep.subr.mxu0 %v7879_v25  ;;  %v7882_v39 = vand.u32 4294901760, %v6133_v12  ;;  %v7886_v12 = vand.u32 4294901760, %v6186_v59 }
 0x207   : > { %3403 = vmatpush1.msra.mxu1 %v6414_v18  ;;  %3465 = vmatpush1.msra.mxu0 %v7880_v7  ;;  %v6654_v7 = vpop.f32.mrf.mxu0  ;;  %v822_v26 = vpop.f32.mrf.mxu1 }
 0x208   : > { %3405 = vmatprep.subr.mxu1 %v6426_v37  ;;  %3469 = vmatprep.subr.mxu0 %v7881_v44  ;;  %v7885_v44 = vand.u32 4294901760, %v6166_v47  ;;  %v7889_v47 = vand.u32 4294901760, %v6217_v8  ;;  %v7893_v8 = vand.u32 4294901760, %v6289_v4  ;;  %v7899_v4 = vand.u32 4294901760, %v6406_v30 }
 0x209   : > { %3407 = vmatpush1.msra.mxu1 %v6445_v11  ;;  %3473 = vmatpush1.msra.mxu0 %v7882_v39  ;;  %v7888_v39 = vand.u32 4294901760, %v6202_v58  ;;  %v990_v9 = vpop.f32.mrf.mxu0  ;;  %v6668_v25 = vpop.f32.mrf.mxu1  ;;  %v7892_v58 = vand.u32 4294901760, %v6269_v41  ;;  %v7896_v41 = vand.u32 4294901760, %v7862_v36 }
 0x20a   : > { %3409 = vmatprep.subr.mxu1 %v6454_v43  ;;  %3477 = vmatprep.subr.mxu0 %v7883_v15  ;;  %v7890_v15 = vand.u32 4294901760, %v6233_v46 }
 0x20b   : > { %3411 = vmatpush1.msra.mxu1 %v6458_v35  ;;  %3481 = vmatpush1.msra.mxu0 %v7884_v0  ;;  %v1200_v59 = vpop.f32.mrf.mxu0  ;;  %v7891_v0 = vand.u32 4294901760, %v6256_v50  ;;  %v7898_v50 = vand.u32 4294901760, %v7865_v45 }
 0x20c   : > { %3413 = vmatprep.subr.mxu1 %v6478_v27  ;;  %3485 = vmatprep.subr.mxu0 %v7885_v44 }
 0x20d   : > { %3415 = vmatpush1.msra.mxu1 %v6490_v49  ;;  %3448 = vmatprep.mubr.f32.mxu1 %v7428_v2 }
 0x20e   : > { %3489 = vmatpush1.msra.mxu0 %v7886_v12  ;;  %3452 = vmatmul.mubr.f32.vlgmr.msra.gmra.mxu1 %v7887_v1  ;;  %v7909_v1 = vld [vmem:[#allocation169_spill] sm:$0xff] }
 0x20f   : > { %3493 = vmatprep.subr.mxu0 %v7888_v39  ;;  %3627 = vmatprep.subr.mxu1 %v6078_v63  ;;  %v1094_v63 = vpop.f32.mrf.mxu1  ;;  %v7910_v39 = vand.u32 4294901760, %v7909_v1 }
 0x210   : > { %3497 = vmatpush1.msra.mxu0 %v7889_v47  ;;  %3629 = vmatpush1.msra.mxu1 %v6084_v32  ;;  %v7894_v32 = vand.u32 4294901760, %v6293_v13  ;;  %v580_v13 = vadd.f32 %v579_v54, %v347_v62  ;;  %v7902_v54 = vand.u32 4294901760, %v6438_v40  ;;  %v7905_v40 = vand.u32 4294901760, %v6462_v29 }
 0x211   : > { %3501 = vmatprep.subr.mxu0 %v7890_v15  ;;  %3631 = vmatprep.subr.mxu1 %v6090_v33  ;;  %v1202_v33 = vpop.f32.mrf.mxu0  ;;  %v1432_v46 = vpop.f32.mrf.mxu1  ;;  %v234_v47 = vstv %s233_s4 }
 0x212   : > { %3505 = vmatpush1.msra.mxu0 %v7891_v0  ;;  %3633 = vmatpush1.msra.mxu1 %v6096_v28  ;;  %v7895_v28 = vand.u32 4294901760, %v7860_v48  ;;  %v7900_v48 = vand.u32 4294901760, %v6418_v60  ;;  %v4022_v60 = vmov 1983009808  }
 0x213   : > { %3509 = vmatprep.subr.mxu0 %v7892_v58  ;;  %3635 = vmatprep.subr.mxu1 %v6099_v53  ;;  %v1569_v53 = vpop.f32.mrf.mxu0  ;;  %v1959_v45 = vunpack.c.l.s4 %v4022_v60 }
 0x214   : > { %3513 = vmatpush1.msra.mxu0 %v7893_v8  ;;  %3637 = vmatpush1.msra.mxu1 %v6112_v19  ;;  %v7897_v19 = vand.u32 4294901760, %v6378_v20  ;;  %v578_v20 = vadd.f32 %v6627_v21, %v6617_v34  ;;  %v7903_v21 = vand.u32 4294901760, %v6450_v57  ;;  %v7906_v34 = vld [vmem:[#allocation153_spill] sm:$0xff]  ;;  %v7907_v57 = vand.u32 4294901760, %v6471_v6  ;;  %v7912_v8 = vld [vmem:[#allocation163_spill] sm:$0xff] }
 0x215   : > { %3517 = vmatprep.subr.mxu0 %v7894_v32  ;;  %3639 = vmatprep.subr.mxu1 %v6122_v51  ;;  %v1434_v51 = vpop.f32.mrf.mxu1  ;;  %v1960_v15 = vunpack.c.0.s8 %v1959_v45  ;;  %v7911_v6 = vand.u32 4294901760, %v6495_v52  ;;  %v7913_v32 = vand.u32 4294901760, %v7912_v8 }
 0x216   : > { %3521 = vmatpush1.msra.mxu0 %v7895_v28  ;;  %3641 = vmatpush1.msra.mxu1 %v7861_v3  ;;  %v1571_v3 = vpop.f32.mrf.mxu0  ;;  %v715_v30 = vadd.f32 %v6633_v16, %v578_v20  ;;  %v7916_v28 = vld [vmem:[#allocation21_spill] sm:$0xff] }
 0x217   : > { %3525 = vmatprep.subr.mxu0 %v7896_v41  ;;  %3643 = vmatprep.subr.mxu1 %v7863_v38  ;;  %v1675_v36 = vpop.f32.mrf.mxu1  ;;  %v7901_v38 = vand.u32 4294901760, %v6430_v14  ;;  %vm235_vm1 = vcmp.lt.s32.totalorder %v234_v47, %v7916_v28  ;;  %v2009_v47 = vld [vmem:[#allocation4] sm:$0x3] }
 0x218   : > { %3529 = vmatpush1.msra.mxu0 %v7897_v19  ;;  %3645 = vmatpush1.msra.mxu1 %v7864_v23  ;;  %v717_v23 = vadd.f32 %v716_v56, %v580_v13  ;;  %v1433_v56 = vadd.f32 %v1432_v46, %v1200_v59  ;;  %v821_v16 = vadd.f32 %v6646_v24, %v715_v30 }
 0x219   : > { %3533 = vmatprep.subr.mxu0 %v7898_v50  ;;  %3647 = vmatprep.subr.mxu1 %v7866_v61  ;;  %v1961_v61 = vlaneseq  ;;  %v1677_v62 = vpop.f32.mrf.mxu1  ;;  %v7920_v50 = vld [vmem:[#allocation175_spill] sm:$0xff] }
 0x21a   : > { %3537 = vmatpush1.msra.mxu0 %v7899_v4  ;;  %3649 = vmatpush1.msra.mxu1 %v7867_v17  ;;  %v1843_v17 = vpop.f32.mrf.mxu0  ;;  %v823_v14 = vadd.f32 %v822_v26, %v717_v23  ;;  %v1570_v44 = vadd.f32 %v1569_v53, %v1433_v56  ;;  %v7908_v26 = vld [vmem:[#allocation162_spill] sm:$0xff]  ;;  %v989_v29 = vadd.f32 %v6654_v7, %v821_v16  ;;  %v7915_v7 = vand.u32 4294901760, %v6513_v22  ;;  %v7925_v23 = vld [vmem:[#allocation167_spill] sm:$0xff] }
 0x21b   : > { %3541 = vmatprep.subr.mxu0 %v7900_v48  ;;  %3651 = vmatprep.subr.mxu1 %v7868_v5  ;;  %v1435_v5 = vadd.f32 %v1434_v51, %v1202_v33  ;;  %v1962_v24 = vshrl.u32 %v1961_v61, 7  ;;  %v7914_v33 = vld [vmem:[#allocation164_spill] sm:$0xff]  ;;  %v7921_v51 = vld [vmem:[#allocation178_spill] sm:$0xff]  ;;  %v7923_v48 = vld [vmem:[#allocation165_spill] sm:$0xff] }
 0x21c   : > { %3545 = vmatpush1.msra.mxu0 %v7901_v38  ;;  %3653 = vmatpush1.msra.mxu1 %v7869_v42  ;;  %v7904_v42 = vld [vmem:[#allocation172_spill] sm:$0xff]  ;;  %v1676_v0 = vadd.f32 %v1675_v36, %v1570_v44  ;;  %v1093_v52 = vadd.f32 %v6668_v25, %v989_v29  ;;  %v7922_v4 = vand.u32 4294901760, %v7921_v51  ;;  %v238_v38 = vld [vmem:[%s237_s19] sm:$0xf] }
 0x21d   : > { %3549 = vmatprep.subr.mxu0 %v7902_v54  ;;  %3655 = vmatprep.subr.mxu1 %v7870_v10  ;;  %v991_v10 = vadd.f32 %v990_v9, %v823_v14  ;;  %v1572_v12 = vadd.f32 %v1571_v3, %v1435_v5  ;;  %v1845_v9 = vpop.f32.mrf.mxu0  ;;  %v6747_v19 = vsub.s32 %v1960_v15, %v1962_v24  ;;  %v7924_v3 = vmov 0   ;;  %v7926_v54 = vld [vmem:[#allocation170_spill] sm:$0xff]  ;;  %v3887_v24 = vld [vmem:[#allocation2] sm:$0x3] }
 0x21e   : > { %3553 = vmatpush1.msra.mxu0 %v7903_v21  ;;  %3657 = vmatpush1.msra.mxu1 %v7904_v42  ;;  %v1844_v53 = vadd.f32 %v1843_v17, %v1676_v0  ;;  %v3778_v36 = vsel %vm235_vm1, 1, %v7924_v3  ;;  %v241_v45 = vunpack.c.l.bf16 %v238_v38 }
 0x21f   : > { %3557 = vmatprep.subr.mxu0 %v7905_v40  ;;  %3659 = vmatprep.subr.mxu1 %v7906_v34  ;;  %v1095_v59 = vadd.f32 %v1094_v63, %v991_v10  ;;  %v1678_v58 = vadd.f32 %v1677_v62, %v1572_v12  ;;  %v7918_v63 = vld [vmem:[#allocation177_spill] sm:$0xff] }
 0x220   : > { %3561 = vmatpush1.msra.mxu0 %v7907_v57  ;;  %3661 = vmatpush1.msra.mxu1 %v7908_v26  ;;  %v7919_v41 = vand.u32 4294901760, %v7918_v63 }
 0x221   : > { %3565 = vmatprep.subr.mxu0 %v7910_v39  ;;  %3663 = vmatprep.subr.mxu1 %v7874_v31  ;;  %v7917_v31 = vld [vmem:[#allocation171_spill] sm:$0xff]  ;;  %v1956_v13 = vcombine.low %v1093_v52, %v1095_v59 }
 0x222   : > { %3569 = vmatpush1.msra.mxu0 %v7911_v6  ;;  %3665 = vmatpush1.msra.mxu1 %v7875_v55  ;;  %v1846_v55 = vadd.f32 %v1845_v9, %v1678_v58 }
 0x223   : > { %3573 = vmatprep.subr.mxu0 %v7913_v32  ;;  %3667 = vmatprep.subr.mxu1 %v7914_v33  ;;  %v1947_v46 = vpop.f32.mrf.mxu1  ;;  %v1964_v60 = vrot.slane %v1956_v13, %v6747_v19 }
 0x224   : > { %3577 = vmatpush1.msra.mxu0 %v7915_v7  ;;  %3669 = vmatpush1.msra.mxu1 %v7917_v31  ;;  %v1948_v25 = vadd.f32 %v1947_v46, %v1844_v53 }
 0x225   : > { %3581 = vmatprep.subr.mxu0 %v7919_v41  ;;  %3671 = vmatprep.subr.mxu1 %v7920_v50  ;;  %v1949_v22 = vpop.f32.mrf.mxu1 }
 0x226   : > { %3585 = vmatpush1.msra.mxu0 %v7922_v4  ;;  %3618 = vmatprep.mubr.f32.mxu0 %v7428_v2  ;;  %v1950_v20 = vadd.f32 %v1949_v22, %v1846_v55 }
 0x227   : > { %3673 = vmatpush1.msra.mxu1 %v7923_v48  ;;  %3620 = vmatmul.mubr.f32.vlgmr.msra.gmra.mxu0 %v7925_v23 }
 0x228   : > { %3675 = vmatprep.subr.mxu1 %v7926_v54  ;;  %3722 = vmatprep.mubr.f32.mxu1 %v7428_v2  ;;  %v1957_v30 = vcombine.low %v1948_v25, %v1950_v20 }
 0x229   : > { %3677 = vmatpush1.msra.mxu1 %v6414_v18  ;;  %3780 = vperm.xlu0 %3866, %v3778_v36  }
 0x22a   : > { %3679 = vmatprep.subr.mxu1 %v6426_v37  ;;  %v1971_v61 = vrot.slane %v1957_v30, %v6747_v19 }
 0x22b   : > { %3681 = vmatpush1.msra.mxu1 %v6445_v11 }
 0x22c   : > { %3683 = vmatprep.subr.mxu1 %v6454_v43  ;;  %v1972_v21 = vcombine.low %v1964_v60, %v1971_v61 }
 0x22d   : > { %3685 = vmatpush1.msra.mxu1 %v6458_v35 }
 0x22e   : > { %3687 = vmatprep.subr.mxu1 %v6478_v27  ;;  %v1974_v2 = vadd.f32 %v1972_v21, %v241_v45  ;;  %v240_v27 = vld [vmem:[#allocation3] sm:$0x3] }
 0x22f   : > { %3689 = vmatpush1.msra.mxu1 %v6490_v49 }
 0x230   : > { %3724 = vmatmul.mubr.f32.vlgmr.msra.gmra.mxu1 %v7925_v23  ;;  %v1975_v18 = vmul.f32 0.5, %v1974_v2  ;;  %v1980_v37 = vrot.slane %v1974_v2, 2  ;;  %v1986_v14 = vrot.slane %v1974_v2, 4  ;;  %v1989_v11 = vrot.slane %v1974_v2, 6 }
 0x232   : > { %v1982_v17 = vmul.f32 0.5, %v1980_v37  ;;  %3867 = vtanh.f32 %v1975_v18  ;;  %v1991_v56 = vmul.f32 0.5, %v1989_v11 }
 0x234   : > { %3869 = vtanh.f32 %v1982_v17 }
 0x235   : > { %3871 = vtanh.f32 %v1986_v14 }
 0x236   : > { %3873 = vtanh.f32 %v1991_v56 }
 0x23d   : > { %v2123_v59 = vpop.f32.mrf.mxu0 }
 0x23f   : > { %v3868_v43 = vpop.eup %3867  ;;  %v2125_v0 = vpop.f32.mrf.mxu0 }
 0x240   : > { %v1977_v35 = vmul.f32 0.5, %v3868_v43 }
 0x241   : > { %v3870_v5 = vpop.eup %3869 }
 0x242   : > { %v1984_v42 = vmul.f32 0.5, %v3870_v5  ;;  %v1978_v40 = vadd.f32 0.5, %v1977_v35  ;;  %v3872_v16 = vpop.eup %3871 }
 0x243   : > { %v3874_v10 = vpop.eup %3873 }
 0x244   : > { %v1985_v49 = vadd.f32 0.5, %v1984_v42  ;;  %v1996_v34 = vmul.f32 %v3872_v16, %v1978_v40  ;;  %v1993_v12 = vmul.f32 0.5, %v3874_v10  ;;  %v2016_v40 = vld [vmem:[%s2015_s21] sm:$0xf] }
 0x246   : > { %v1995_v62 = vmul.f32 %v1985_v49, %v240_v27  ;;  %v1994_v1 = vadd.f32 0.5, %v1993_v12  ;;  %v2355_v58 = vpop.f32.mrf.mxu1 }
 0x247   : > { %v2356_v48 = vadd.f32 %v2355_v58, %v2123_v59 }
 0x248   : > { %v1997_v57 = vadd.f32 %v1996_v34, %v1995_v62  ;;  %v2357_v32 = vpop.f32.mrf.mxu1  ;;  %v2019_v62 = vunpack.c.l.bf16 %v2016_v40 }
 0x249   : > { %v2358_v4 = vadd.f32 %v2357_v32, %v2125_v0 }
 0x24a   : > { %3875 = vtanh.f32 %v1997_v57 }
 0x250   : > { %v2003_v44 = vpop.permute.xlu0 %2002 }
 0x251   : > { %vm2004_vm2 = vcmp.eq.s32.totalorder %v2003_v44, 1 }
 0x252   : > { %v2007_v26 = vsel %vm2004_vm2, %v1997_v57, %v240_v27 }
 0x253   : > { %2008 = vst [vmem:[#allocation3] sm:$0x3] %v2007_v26 }
 0x257   : > { %v3876_v39 = vpop.eup %3875 }
 0x258   : > { %v1999_v29 = vmul.f32 %v3876_v39, %v1994_v1 }
 0x25a   : > { %v2010_v15 = vmax.f32 %v2009_v47, %v1999_v29  ;;  %v2005_v6 = vsel %vm2004_vm2, %v1999_v29, %v3887_v24 }
 0x25b   : > { %2006 = vst [vmem:[#allocation2] sm:$0x3] %v2005_v6 }
 0x25c   : > { %v2011_v9 = vsel %vm2004_vm2, %v2010_v15, %v2009_v47 }
 0x25d   : > { %2012 = vst [vmem:[#allocation4] sm:$0x3] %v2011_v9  ;;  %v2018_v9 = vld [vmem:[#allocation6] sm:$0x3] }
 0x25e   : > { %v2492_v8 = vpop.f32.mrf.mxu0 }
 0x25f   : > { %v2493_v3 = vadd.f32 %v2492_v8, %v2356_v48 }
 0x260   : > { %v2494_v33 = vpop.f32.mrf.mxu0 }
 0x261   : > { %v2495_v25 = vadd.f32 %v2494_v33, %v2358_v4  ;;  %v7927_v4 = vld [vmem:[#allocation21_spill] sm:$0xff] (%p226_p6) }
 0x262   :  { %vm3794_vm4 = vcmp.gt.s32.totalorder (%p226_p6), %v7927_v4, 0 }
 0x264   :  { %v3795_v48 = vld [vmem:[#allocation4] sm:$0x3] (%p226_p6) }
 0x267   : > { %v2598_v7 = vpop.f32.mrf.mxu1 }
 0x268   : > { %v2599_v30 = vadd.f32 %v2598_v7, %v2493_v3 }
 0x269   : > { %v2600_v28 = vpop.f32.mrf.mxu1 }
 0x26a   : > { %v2601_v36 = vadd.f32 %v2600_v28, %v2495_v25 }
 0x280   : > { %v2766_v46 = vpop.f32.mrf.mxu0 }
 0x281   : > { %v2767_v2 = vadd.f32 %v2766_v46, %v2599_v30 }
 0x282   : > { %v2768_v52 = vpop.f32.mrf.mxu0 }
 0x283   : > { %v2769_v60 = vadd.f32 %v2768_v52, %v2601_v36 }
 0x289   : > { %v2870_v31 = vpop.f32.mrf.mxu1 }
 0x28a   : > { %v2871_v11 = vadd.f32 %v2870_v31, %v2767_v2 }
 0x28b   : > { %v2872_v41 = vpop.f32.mrf.mxu1 }
 0x28c   : > { %v2873_v18 = vadd.f32 %v2872_v41, %v2769_v60 }
 0x28e   : > { %v3734_v35 = vcombine.low %v2871_v11, %v2873_v18 }
 0x290   : > { %v3742_v16 = vrot.slane %v3734_v35, %v6747_v19 }
 0x2a4   : > { %v2978_v63 = vpop.f32.mrf.mxu0 }
 0x2a6   : > { %v2980_v53 = vpop.f32.mrf.mxu0 }
 0x2ac   : > { %v3210_v55 = vpop.f32.mrf.mxu1 }
 0x2ad   : > { %v3211_v38 = vadd.f32 %v3210_v55, %v2978_v63  ;;  %v3787_v63 = vld [vmem:[#allocation7] sm:$0x3]  ;;  %v3888_v55 = vld [vmem:[#allocation5] sm:$0x3] }
 0x2ae   : > { %v3212_v51 = vpop.f32.mrf.mxu1 }
 0x2af   : > { %v3213_v23 = vadd.f32 %v3212_v51, %v2980_v53 }
 0x2c5   : > { %v3347_v50 = vpop.f32.mrf.mxu0 }
 0x2c6   : > { %v3348_v45 = vadd.f32 %v3347_v50, %v3211_v38 }
 0x2c7   : > { %v3349_v22 = vpop.f32.mrf.mxu0 }
 0x2c8   : > { %v3350_v61 = vadd.f32 %v3349_v22, %v3213_v23  ;;  %v4023_v22 = vmov (%p226_p6), 0  }
 0x2c9   :  { %3889 = vset.pattern.permute.xlu0 (%p226_p6), %v4023_v22 }
 0x2ce   : > { %v3453_v13 = vpop.f32.mrf.mxu1 }
 0x2cf   : > { %v3454_v37 = vadd.f32 %v3453_v13, %v3348_v45  ;;  %v3796_v13 = vsel (%p226_p6), %vm3794_vm4, 1, %v4023_v22 }
 0x2d0   : > { %v3455_v54 = vpop.f32.mrf.mxu1  ;;  %3798 = vperm.xlu0 (%p226_p6), %3889, %v3796_v13  }
 0x2d1   : > { %v3456_v17 = vadd.f32 %v3455_v54, %v3350_v61 }
 0x2e7   : > { %v3621_v20 = vpop.f32.mrf.mxu0 }
 0x2e8   : > { %v3622_v56 = vadd.f32 %v3621_v20, %v3454_v37 }
 0x2e9   : > { %v3623_v21 = vpop.f32.mrf.mxu0 }
 0x2ea   : > { %v3624_v43 = vadd.f32 %v3623_v21, %v3456_v17 }
 0x2f0   : > { %v3725_v14 = vpop.f32.mrf.mxu1 }
 0x2f1   : > { %v3726_v42 = vadd.f32 %v3725_v14, %v3622_v56 }
 0x2f2   : > { %v3727_v5 = vpop.f32.mrf.mxu1 }
 0x2f3   : > { %v3728_v27 = vadd.f32 %v3727_v5, %v3624_v43 }
 0x2f5   : > { %v3735_v49 = vcombine.low %v3726_v42, %v3728_v27 }
 0x2f7   : > { %v3749_v34 = vrot.slane %v3735_v49, %v6747_v19  ;;  %v3781_v19 = vpop.permute.xlu0 %3780 }
 0x2f8   : > { %vm3782_vm3 = vcmp.eq.s32.totalorder %v3781_v19, 1 }
 0x2f9   : > { %v3750_v57 = vcombine.low %v3742_v16, %v3749_v34 }
 0x2fb   : > { %v3752_v10 = vadd.f32 %v3750_v57, %v2019_v62 }
 0x2fd   : > { %v3753_v44 = vmul.f32 0.5, %v3752_v10  ;;  %v3758_v12 = vrot.slane %v3752_v10, 2  ;;  %v3764_v1 = vrot.slane %v3752_v10, 4  ;;  %v3767_v39 = vrot.slane %v3752_v10, 6 }
 0x2ff   : > { %v3760_v26 = vmul.f32 0.5, %v3758_v12  ;;  %3877 = vtanh.f32 %v3753_v44  ;;  %v3769_v47 = vmul.f32 0.5, %v3767_v39 }
 0x301   : > { %3879 = vtanh.f32 %v3760_v26 }
 0x302   : > { %3881 = vtanh.f32 %v3764_v1 }
 0x303   : > { %3883 = vtanh.f32 %v3769_v47 }
 0x30c   : > { %v3878_v29 = vpop.eup %3877 }
 0x30d   : > { %v3755_v24 = vmul.f32 0.5, %v3878_v29 }
 0x30e   : > { %v3880_v15 = vpop.eup %3879 }
 0x30f   : > { %v3762_v6 = vmul.f32 0.5, %v3880_v15  ;;  %v3756_v59 = vadd.f32 0.5, %v3755_v24  ;;  %v3882_v58 = vpop.eup %3881 }
 0x310   : > { %v3884_v46 = vpop.eup %3883 }
 0x311   : > { %v3763_v0 = vadd.f32 0.5, %v3762_v6  ;;  %v3774_v32 = vmul.f32 %v3882_v58, %v3756_v59  ;;  %v3771_v28 = vmul.f32 0.5, %v3884_v46 }
 0x313   : > { %v3773_v8 = vmul.f32 %v3763_v0, %v2018_v9  ;;  %v3772_v52 = vadd.f32 0.5, %v3771_v28 }
 0x315   : > { %v3775_v33 = vadd.f32 %v3774_v32, %v3773_v8 }
 0x317   : > { %3885 = vtanh.f32 %v3775_v33  ;;  %v3785_v7 = vsel %vm3782_vm3, %v3775_v33, %v2018_v9 }
 0x318   : > { %3786 = vst [vmem:[#allocation6] sm:$0x3] %v3785_v7 }
 0x324   : > { %v3886_v31 = vpop.eup %3885 }
 0x325   : > { %v3777_v41 = vmul.f32 %v3886_v31, %v3772_v52 }
 0x326   :  { %228 = sbr.rel (!%p226_p6) target bundleno = 123 (0x7b), region = 75 }
 0x327   : > { %v3788_v53 = vmax.f32 %v3787_v63, %v3777_v41  ;;  %v3783_v50 = vsel %vm3782_vm3, %v3777_v41, %v3888_v55 }
 0x328   : > { %3784 = vst [vmem:[#allocation5] sm:$0x3] %v3783_v50 }
 0x329   : > { %v3789_v51 = vsel %vm3782_vm3, %v3788_v53, %v3787_v63 }
 0x32a   : > { %3790 = vst [vmem:[#allocation7] sm:$0x3] %v3789_v51 }
 0x331   :  { %v3803_v25 = vld [vmem:[#allocation7] sm:$0x3] }
 0x34b   :  { %v3799_v20 = vpop.permute.xlu0 %3798 }
 0x34c   :  { %vm3800_vm5 = vcmp.eq.s32.totalorder %v3799_v20, 1 }
 0x34d   :  { %v3801_v3 = vsel %vm3800_vm5, %v3795_v48, 0.0  ;;  %v3804_v36 = vsel %vm3800_vm5, %v3803_v25, 0.0 }
 0x34e   :  { %3802 = vst [vmem:[#allocation16] sm:$0x3] %v3801_v3  ;;  %3806 = vst [vmem:[#allocation16 + $0x2] sm:$0x3] %v3804_v36 }
 0x34f   :  { %3984 = shalt.err (!%p3981_p11)
}
 0x350   :  { %s4025_s25 = smov 2  }
 0x351   :  { %3818 = dma.vmem_to_hbm [thread:$0]  %s3813_s23, 64, %s6786_s5, [#allocation10], %s4016_s10, %s4016_s10, %s4025_s25  }
 0x352   :  { %4003 = dma.done.wait [#allocation10], 64  }
 0x353   :  { %4004 = vsyncadd [#allocation10], 4294967232 }
 0x354   :  { %3822 = vsyncpa [#allocation9], 1 }
 0x355   :  { %3823 = vsyncpa [#allocation12], 1 }
 0x356   :  { %3824 = vsyncpa [#allocation15], 1 }
 0x357   :  { %3825 = vsyncpa [#allocation10], 1 }

</bundles_post_ra>
